<compile_context>
chip_gen: v7x
topology: tpu7x:2x2x1
jax: 0.10.0
libtpu: 0.0.40
codegen_flags: <defaults>
</compile_context>

<pallas_src>
import functools

import jax
import jax.numpy as jnp
from jax import lax
from jax.experimental import pallas as pl
from jax.experimental.pallas import tpu as pltpu

EMBEDDING_SIZE = 128
HEAD_IN = 320      # channels entering the EfficientNet-B0 head conv
HEAD_OUT = 1280    # channels after the 1x1 head conv / input to nn.Linear


# ----------------------------- Pallas kernel ------------------------------- #
def _head_kernel(x_ref, pool_ref, wh_ref, bh_ref, we_ref, be_ref, o_ref,
                 *, inv_hw, bf16_act):
    """One grid step processes TB images (TB*HW feature rows).

    x_ref   : (TB*HW, 320) bf16  trunk features, TB images stacked row-wise
    pool_ref: (TB, TB*HW)  bf16  0/1 per-image pooling matrix (loop-invariant)
    wh_ref  : (320, 1280)  bf16  1x1 head-conv weight with BN scale folded in
    bh_ref  : (1, 1280)    f32   folded BN bias
    we_ref  : (1280, 128)  bf16  nn.Linear weight (in, out)
    be_ref  : (1, 128)     f32   nn.Linear bias
    o_ref   : (TB, 128)    f32   L2-normalized embeddings
    """
    # features.8: 1x1 conv as one bf16 MXU matmul with f32 accumulation,
    # folded BN bias add.
    h = jnp.dot(x_ref[...], wh_ref[...], preferred_element_type=jnp.float32)
    h = h + bh_ref[...]                                        # (TB*HW, 1280) f32

    # SiLU with sigmoid(x) = 0.5*(1 + tanh(x/2)) -> one EUP push per element.
    # bf16 activation path on v6e/v7x (bf16 VPU/EUP); f32 on v5e.
    if bf16_act:
        hb = h.astype(jnp.bfloat16)
        h16 = hb * (0.5 * (1.0 + jnp.tanh(0.5 * hb)))          # bf16
    else:
        hf = h * (0.5 * (1.0 + jnp.tanh(0.5 * h)))             # f32
        h16 = hf.astype(jnp.bfloat16)

    # AdaptiveAvgPool2d(1) + flatten(1): per-image mean over its HW rows as a
    # small bf16 0/1 matmul (exact sum in the f32 accumulator) scaled by 1/HW
    # in f32.  Pad rows can never mix across images (block-diagonal mask).
    pooled = jnp.dot(pool_ref[...], h16, preferred_element_type=jnp.float32)
    pooled = pooled * jnp.float32(inv_hw)                      # (TB, 1280) f32

    # nn.Linear(1280, E): bf16 operands, f32 accumulation.
    emb = jnp.dot(pooled.astype(jnp.bfloat16), we_ref[...],
                  preferred_element_type=jnp.float32) + be_ref[...]   # (TB, E)

    # F.normalize(p=2, dim=1, eps=1e-12): x / max(||x||, eps)
    #   == x * rsqrt(max(sum(x^2), eps^2))   (rsqrt goes to the EUP slot)
    sumsq = jnp.sum(emb * emb, axis=-1, keepdims=True)
    o_ref[...] = emb * lax.rsqrt(jnp.maximum(sumsq, jnp.float32(1e-24)))


# ------------------------------ tiling policy ------------------------------ #
def _chip_kind():
    try:
        return jax.devices()[0].device_kind.lower()
    except Exception:
        return ""


def _chip_tiling(kind):
    """(target_rows, max_rows, scoped-VMEM cap to request, prefer >=2 grid steps)."""
    if "v5" in kind:
        # 128 MiB physical; 16 MiB default scoped -> must raise it for big tiles.
        return 1024, 2048, 96 << 20, False
    if "v6" in kind:
        # 128 MiB physical / 32 MiB default scoped; long M runs amortize the
        # ~0.35us per-step overhead against the resident weights.
        return 2048, 2048, 96 << 20, False
    # v7x (64 MiB physical, 2 TensorCores) and unknown chips: smaller tiles,
    # keep >=2 grid steps so ("parallel",) shards across both cores.
    return 1024, 1024, 40 << 20, True


def _pick_tb(batch, hw, target_rows, max_rows, prefer_multi_step):
    """Images per grid step.

    TB*HW rows feed one MXU pass.  TB is a multiple of 16 when HW is odd (so
    the bf16 (TB*HW, 320) block is 16-sublane aligned) and 8 otherwise; a TB
    that exactly divides the batch is preferred so no padding copy is needed.
    """
    min_tb = 8 if hw % 2 == 0 else 16
    rows = min(target_rows, max_rows)
    tb_cap = max(min_tb, (rows // hw) // min_tb * min_tb)
    bpad_min = -(-batch // min_tb) * min_tb
    tb_cap = min(tb_cap, bpad_min)
    if prefer_multi_step and bpad_min >= 2 * min_tb:
        tb_cap = min(tb_cap, max(min_tb, (bpad_min // 2) // min_tb * min_tb))
    for cand in range(tb_cap, min_tb - 1, -min_tb):
        if batch % cand == 0:
            return cand, batch                     # exact fit -> no padding
    tb = tb_cap
    return tb, -(-batch // tb) * tb


def _vmem_limit(mb, tb, cap):
    """Explicit scoped-VMEM request sized from the actual per-step footprint."""
    est = (mb * HEAD_OUT * 6                       # f32 matmul acc + bf16 SiLU copy
           + 2 * mb * HEAD_IN * 2                  # double-buffered bf16 input block
           + tb * mb * 2                           # pooling matrix
           + 2 * (HEAD_IN * HEAD_OUT + HEAD_OUT * EMBEDDING_SIZE) * 2  # bf16 weights
           + 2 * tb * EMBEDDING_SIZE * 4           # output blocks
           + (1 << 20))                            # biases + misc
    limit = int(est * 1.5) + (8 << 20)
    limit = max(limit, 32 << 20)
    return min(limit, cap)


# --------------------------------- wrapper ---------------------------------- #
def efficientnet_head(feats, wh, sh, bh, we, be):
    """feats: (B, HW, 320) float32 -> (B, EMBEDDING_SIZE) L2-normalized f32."""
    B, HW, Cin = feats.shape

    kind = _chip_kind()
    bf16_act = "v5" not in kind                       # v5e: no bf16 VPU/EUP
    target_rows, max_rows, vmem_cap, multi_step = _chip_tiling(kind)

    tb, bp = _pick_tb(B, HW, target_rows, max_rows, multi_step)
    mb = tb * HW

    # Fold the eval-mode BN scale into the head-conv weight columns and cast
    # MXU operands to bf16; biases and accumulation/normalization stay in f32.
    wh_f = (wh * sh).astype(jnp.bfloat16)             # (320, 1280)
    bh_f = bh.astype(jnp.float32)                     # (1, 1280)
    we_b = we.astype(jnp.bfloat16)                    # (1280, 128)
    be_f = be.astype(jnp.float32)                     # (1, 128)

    x2d = feats.astype(jnp.bfloat16).reshape(B * HW, Cin)
    if bp != B:
        # Only taken when no multiple-of-min_tb tile divides the batch.
        # TODO(synk): handle the ragged last tile in-kernel (scalar-prefetched
        # real-batch count) to avoid this full-activation HBM copy entirely.
        x2d = jnp.concatenate(
            [x2d, jnp.zeros(((bp - B) * HW, Cin), jnp.bfloat16)], axis=0)

    # Loop-invariant 0/1 pooling matrix: pool[i, r] = 1 iff row r belongs to
    # image i of the tile.  Built once here (hoisted out of the grid body).
    row_img = jnp.arange(mb, dtype=jnp.int32) // HW
    pool = (row_img[None, :] ==
            jnp.arange(tb, dtype=jnp.int32)[:, None]).astype(jnp.bfloat16)

    vmem_limit = _vmem_limit(mb, tb, vmem_cap)

    kernel = functools.partial(_head_kernel, inv_hw=1.0 / HW, bf16_act=bf16_act)

    def _run(single_buffer):
        def const(shape):
            # Loop-invariant operands (constant index_map) are DMA'd once;
            # request a single VMEM buffer for them when supported.
            if single_buffer:
                try:
                    return pl.BlockSpec(shape, lambda b: (0,) * len(shape),
                                        pipeline_mode=pl.Buffered(1))
                except (TypeError, AttributeError):
                    pass
            return pl.BlockSpec(shape, lambda b: (0,) * len(shape))

        return pl.pallas_call(
            kernel,
            out_shape=jax.ShapeDtypeStruct((bp, EMBEDDING_SIZE), jnp.float32),
            grid=(bp // tb,),
            in_specs=[
                pl.BlockSpec((mb, Cin), lambda b: (b, 0)),
                const((tb, mb)),
                const((Cin, HEAD_OUT)),
                const((1, HEAD_OUT)),
                const((HEAD_OUT, EMBEDDING_SIZE)),
                const((1, EMBEDDING_SIZE)),
            ],
            out_specs=pl.BlockSpec((tb, EMBEDDING_SIZE), lambda b: (b, 0)),
            compiler_params=pltpu.CompilerParams(
                dimension_semantics=("parallel",),
                vmem_limit_bytes=vmem_limit),
        )(x2d, pool, wh_f, bh_f, we_b, be_f)

    try:
        out = _run(True)
    except Exception:
        # pipeline_mode=pl.Buffered(1) not supported by this lowering ->
        # fall back to default double-buffering (already budgeted for).
        out = _run(False)
    return out[:B]


# --------------------------- plain-JAX trunk glue --------------------------- #
def _conv_bn_silu(x, w, scale, bias, stride):
    # x: NHWC, w: HWIO; BN folded into (scale, bias) -- frozen eval-mode BN.
    y = lax.conv_general_dilated(
        x, w, window_strides=(stride, stride), padding="SAME",
        dimension_numbers=("NHWC", "HWIO", "NHWC"))
    y = y * scale + bias
    return y * jax.nn.sigmoid(y)


_TRUNK_PLAN = [(3, 32), (32, 64), (64, 128), (128, 192), (192, HEAD_IN)]  # all stride 2


def init_params(key):
    params = {"trunk": []}
    keys = jax.random.split(key, 2 * len(_TRUNK_PLAN) + 4)
    k = 0
    for cin, cout in _TRUNK_PLAN:
        w = jax.random.normal(keys[k], (3, 3, cin, cout), jnp.float32)
        w = w / jnp.sqrt(9.0 * cin)
        s = 1.0 + 0.1 * jax.random.normal(keys[k + 1], (1, 1, 1, cout), jnp.float32)
        b = jnp.zeros((1, 1, 1, cout), jnp.float32)
        params["trunk"].append((w, s, b))
        k += 2
    params["wh"] = jax.random.normal(keys[k], (HEAD_IN, HEAD_OUT), jnp.float32) / jnp.sqrt(float(HEAD_IN))
    params["sh"] = 1.0 + 0.1 * jax.random.normal(keys[k + 1], (1, HEAD_OUT), jnp.float32)
    params["bh"] = jnp.zeros((1, HEAD_OUT), jnp.float32)
    params["we"] = jax.random.normal(keys[k + 2], (HEAD_OUT, EMBEDDING_SIZE), jnp.float32) / jnp.sqrt(float(HEAD_OUT))
    params["be"] = 0.01 * jax.random.normal(keys[k + 3], (1, EMBEDDING_SIZE), jnp.float32)
    return params


def efficientnet_embedding_forward(x_nchw, params):
    """x_nchw: (B, 3, H, W) float32, like the PyTorch module input."""
    x = jnp.transpose(x_nchw, (0, 2, 3, 1))                 # NCHW -> NHWC
    for (w, s, b) in params["trunk"]:
        x = _conv_bn_silu(x, w, s, b, stride=2)             # stand-in feature stages
    B, Hf, Wf, C = x.shape
    feats = x.reshape(B, Hf * Wf, C)                        # [B, HW, 320]
    return efficientnet_head(
        feats, params["wh"], params["sh"], params["bh"], params["we"], params["be"])


if __name__ == "__main__":
    key = jax.random.PRNGKey(0)
    pkey, xkey = jax.random.split(key)
    params = init_params(pkey)

    # small input consistent with NCHW image input (stride-32 trunk -> 2x2 spatial)
    x = jax.random.normal(xkey, (2, 3, 64, 64), jnp.float32)

    out = efficientnet_embedding_forward(x, params)
    out = jax.block_until_ready(out)

    assert out.shape == (2, EMBEDDING_SIZE)
    assert bool(jnp.all(jnp.isfinite(out)))
    # embeddings must be unit-norm after F.normalize (normalization runs in f32;
    # loose tolerance covers bf16 matmul inputs + hardware rsqrt)
    norms = jnp.linalg.norm(out, axis=1)
    assert bool(jnp.all(jnp.abs(norms - 1.0) < 1e-3))
    print("KERNEL_OK")
</pallas_src>

<mosaic_0001>
module attributes {stable_mosaic.version = 11 : i64} {
  func.func @_head_kernel(%arg0: i32, %arg1: memref<32x320xbf16, #tpu.memory_space<vmem>>, %arg2: memref<8x32xbf16, #tpu.memory_space<vmem>>, %arg3: memref<320x1280xbf16, #tpu.memory_space<vmem>>, %arg4: memref<1x1280xf32, #tpu.memory_space<vmem>>, %arg5: memref<1280x128xbf16, #tpu.memory_space<vmem>>, %arg6: memref<1x128xf32, #tpu.memory_space<vmem>>, %arg7: memref<8x128xf32, #tpu.memory_space<vmem>>) attributes {dimension_semantics = [#tpu.dimension_semantics<parallel>], iteration_bounds = array<i64: 1>, scalar_prefetch = 0 : i64, scratch_operands = 0 : i64, tpu.core_type = #tpu.core_type<tc>, window_params = [{transform_indices = @transform_0, window_bounds = array<i64: 32, 320>}, {pipeline_mode = #tpu.pipeline_mode<synchronous>, transform_indices = @transform_1, window_bounds = array<i64: 8, 32>}, {pipeline_mode = #tpu.pipeline_mode<synchronous>, transform_indices = @transform_2, window_bounds = array<i64: 320, 1280>}, {pipeline_mode = #tpu.pipeline_mode<synchronous>, transform_indices = @transform_3, window_bounds = array<i64: 1, 1280>}, {pipeline_mode = #tpu.pipeline_mode<synchronous>, transform_indices = @transform_4, window_bounds = array<i64: 1280, 128>}, {pipeline_mode = #tpu.pipeline_mode<synchronous>, transform_indices = @transform_5, window_bounds = array<i64: 1, 128>}, {transform_indices = @transform_6, window_bounds = array<i64: 8, 128>}]} {
    %c0 = arith.constant 0 : index
    %c0_0 = arith.constant 0 : index
    %0 = vector.load %arg1[%c0, %c0_0] : memref<32x320xbf16, #tpu.memory_space<vmem>>, vector<32x320xbf16>
    %c0_1 = arith.constant 0 : index
    %c0_2 = arith.constant 0 : index
    %1 = vector.load %arg3[%c0_1, %c0_2] : memref<320x1280xbf16, #tpu.memory_space<vmem>>, vector<320x1280xbf16>
    %cst = arith.constant dense<0.000000e+00> : vector<32x1280xf32>
    %2 = tpu.matmul %0, %1, %cst {dimension_numbers = #tpu.dot_dimension_numbers<[1], [0], [0], [1], [0, 0, 1, 1], [], []>} : vector<32x320xbf16>, vector<320x1280xbf16>, vector<32x1280xf32> -> vector<32x1280xf32>
    %c0_3 = arith.constant 0 : index
    %c0_4 = arith.constant 0 : index
    %3 = vector.load %arg4[%c0_3, %c0_4] : memref<1x1280xf32, #tpu.memory_space<vmem>>, vector<1x1280xf32>
    %4 = vector.broadcast %3 : vector<1x1280xf32> to vector<32x1280xf32>
    %5 = arith.addf %2, %4 : vector<32x1280xf32>
    %6 = arith.truncf %5 : vector<32x1280xf32> to vector<32x1280xbf16>
    %cst_5 = arith.constant 5.000000e-01 : bf16
    %7 = vector.broadcast %cst_5 : bf16 to vector<32x1280xbf16>
    %8 = arith.mulf %7, %6 : vector<32x1280xbf16>
    %9 = math.tanh %8 : vector<32x1280xbf16>
    %cst_6 = arith.constant 1.000000e+00 : bf16
    %10 = vector.broadcast %cst_6 : bf16 to vector<32x1280xbf16>
    %11 = arith.addf %10, %9 : vector<32x1280xbf16>
    %cst_7 = arith.constant 5.000000e-01 : bf16
    %12 = vector.broadcast %cst_7 : bf16 to vector<32x1280xbf16>
    %13 = arith.mulf %12, %11 : vector<32x1280xbf16>
    %14 = arith.mulf %6, %13 : vector<32x1280xbf16>
    %c0_8 = arith.constant 0 : index
    %c0_9 = arith.constant 0 : index
    %15 = vector.load %arg2[%c0_8, %c0_9] : memref<8x32xbf16, #tpu.memory_space<vmem>>, vector<8x32xbf16>
    %cst_10 = arith.constant dense<0.000000e+00> : vector<8x1280xf32>
    %16 = tpu.matmul %15, %14, %cst_10 {dimension_numbers = #tpu.dot_dimension_numbers<[1], [0], [0], [1], [0, 0, 1, 1], [], []>} : vector<8x32xbf16>, vector<32x1280xbf16>, vector<8x1280xf32> -> vector<8x1280xf32>
    %cst_11 = arith.constant 2.500000e-01 : f32
    %17 = vector.broadcast %cst_11 : f32 to vector<8x1280xf32>
    %18 = arith.mulf %16, %17 : vector<8x1280xf32>
    %19 = arith.truncf %18 : vector<8x1280xf32> to vector<8x1280xbf16>
    %c0_12 = arith.constant 0 : index
    %c0_13 = arith.constant 0 : index
    %20 = vector.load %arg5[%c0_12, %c0_13] : memref<1280x128xbf16, #tpu.memory_space<vmem>>, vector<1280x128xbf16>
    %cst_14 = arith.constant dense<0.000000e+00> : vector<8x128xf32>
    %21 = tpu.matmul %19, %20, %cst_14 {dimension_numbers = #tpu.dot_dimension_numbers<[1], [0], [0], [1], [0, 0, 1, 1], [], []>} : vector<8x1280xbf16>, vector<1280x128xbf16>, vector<8x128xf32> -> vector<8x128xf32>
    %c0_15 = arith.constant 0 : index
    %c0_16 = arith.constant 0 : index
    %22 = vector.load %arg6[%c0_15, %c0_16] : memref<1x128xf32, #tpu.memory_space<vmem>>, vector<1x128xf32>
    %23 = vector.broadcast %22 : vector<1x128xf32> to vector<8x128xf32>
    %24 = arith.addf %21, %23 : vector<8x128xf32>
    %25 = arith.mulf %24, %24 : vector<8x128xf32>
    %cst_17 = arith.constant dense<0.000000e+00> : vector<8xf32>
    %26 = vector.multi_reduction <add>, %25, %cst_17 [1] : vector<8x128xf32> to vector<8xf32>
    %27 = vector.shape_cast %26 : vector<8xf32> to vector<8x1xf32>
    %cst_18 = arith.constant 1.000000e-24 : f32
    %28 = vector.broadcast %cst_18 : f32 to vector<8x1xf32>
    %29 = arith.maximumf %27, %28 : vector<8x1xf32>
    %30 = math.rsqrt %29 : vector<8x1xf32>
    %31 = vector.broadcast %30 : vector<8x1xf32> to vector<8x128xf32>
    %32 = arith.mulf %24, %31 : vector<8x128xf32>
    %c0_19 = arith.constant 0 : index
    %c0_20 = arith.constant 0 : index
    %33 = vector.load %arg7[%c0_19, %c0_20] : memref<8x128xf32, #tpu.memory_space<vmem>>, vector<8x128xf32>
    tpu.vector_store %arg7[%c0_19, %c0_20], %32 {strides = array<i32>} : memref<8x128xf32, #tpu.memory_space<vmem>>, vector<8x128xf32>,
    return
  }
  func.func @transform_0(%arg0: i32) -> (i32, i32) {
    %c0_i32 = arith.constant 0 : i32
    %c0_i32_0 = arith.constant 0 : i32
    return %arg0, %c0_i32 : i32, i32
  }
  func.func @transform_1(%arg0: i32) -> (i32, i32) {
    %c0_i32 = arith.constant 0 : i32
    %c0_i32_0 = arith.constant 0 : i32
    %c0_i32_1 = arith.constant 0 : i32
    return %c0_i32, %c0_i32_0 : i32, i32
  }
  func.func @transform_2(%arg0: i32) -> (i32, i32) {
    %c0_i32 = arith.constant 0 : i32
    %c0_i32_0 = arith.constant 0 : i32
    %c0_i32_1 = arith.constant 0 : i32
    return %c0_i32, %c0_i32_0 : i32, i32
  }
  func.func @transform_3(%arg0: i32) -> (i32, i32) {
    %c0_i32 = arith.constant 0 : i32
    %c0_i32_0 = arith.constant 0 : i32
    %c0_i32_1 = arith.constant 0 : i32
    return %c0_i32, %c0_i32_0 : i32, i32
  }
  func.func @transform_4(%arg0: i32) -> (i32, i32) {
    %c0_i32 = arith.constant 0 : i32
    %c0_i32_0 = arith.constant 0 : i32
    %c0_i32_1 = arith.constant 0 : i32
    return %c0_i32, %c0_i32_0 : i32, i32
  }
  func.func @transform_5(%arg0: i32) -> (i32, i32) {
    %c0_i32 = arith.constant 0 : i32
    %c0_i32_0 = arith.constant 0 : i32
    %c0_i32_1 = arith.constant 0 : i32
    return %c0_i32, %c0_i32_0 : i32, i32
  }
  func.func @transform_6(%arg0: i32) -> (i32, i32) {
    %c0_i32 = arith.constant 0 : i32
    %c0_i32_0 = arith.constant 0 : i32
    return %arg0, %c0_i32 : i32, i32
  }
}

module attributes {stable_mosaic.version = 11 : i64} {
  func.func @_head_kernel(%arg0: i32, %arg1: memref<32x320xbf16, #tpu.memory_space<vmem>>, %arg2: memref<8x32xbf16, #tpu.memory_space<vmem>>, %arg3: memref<320x1280xbf16, #tpu.memory_space<vmem>>, %arg4: memref<1x1280xf32, #tpu.memory_space<vmem>>, %arg5: memref<1280x128xbf16, #tpu.memory_space<vmem>>, %arg6: memref<1x128xf32, #tpu.memory_space<vmem>>, %arg7: memref<8x128xf32, #tpu.memory_space<vmem>>) attributes {dimension_semantics = [#tpu.dimension_semantics<parallel>], iteration_bounds = array<i64: 1>, scalar_prefetch = 0 : i64, scratch_operands = 0 : i64, tpu.core_type = #tpu.core_type<tc>, window_params = [{transform_indices = @transform_0, window_bounds = array<i64: 32, 320>}, {pipeline_mode = #tpu.pipeline_mode<synchronous>, transform_indices = @transform_1, window_bounds = array<i64: 8, 32>}, {pipeline_mode = #tpu.pipeline_mode<synchronous>, transform_indices = @transform_2, window_bounds = array<i64: 320, 1280>}, {pipeline_mode = #tpu.pipeline_mode<synchronous>, transform_indices = @transform_3, window_bounds = array<i64: 1, 1280>}, {pipeline_mode = #tpu.pipeline_mode<synchronous>, transform_indices = @transform_4, window_bounds = array<i64: 1280, 128>}, {pipeline_mode = #tpu.pipeline_mode<synchronous>, transform_indices = @transform_5, window_bounds = array<i64: 1, 128>}, {transform_indices = @transform_6, window_bounds = array<i64: 8, 128>}]} {
    %c0 = arith.constant 0 : index
    %c0_0 = arith.constant 0 : index
    %0 = vector.load %arg1[%c0, %c0_0] : memref<32x320xbf16, #tpu.memory_space<vmem>>, vector<32x320xbf16>
    %c0_1 = arith.constant 0 : index
    %c0_2 = arith.constant 0 : index
    %1 = vector.load %arg3[%c0_1, %c0_2] : memref<320x1280xbf16, #tpu.memory_space<vmem>>, vector<320x1280xbf16>
    %cst = arith.constant dense<0.000000e+00> : vector<32x1280xf32>
    %2 = tpu.matmul %0, %1, %cst {dimension_numbers = #tpu.dot_dimension_numbers<[1], [0], [0], [1], [0, 0, 1, 1], [], []>} : vector<32x320xbf16>, vector<320x1280xbf16>, vector<32x1280xf32> -> vector<32x1280xf32>
    %c0_3 = arith.constant 0 : index
    %c0_4 = arith.constant 0 : index
    %3 = vector.load %arg4[%c0_3, %c0_4] : memref<1x1280xf32, #tpu.memory_space<vmem>>, vector<1x1280xf32>
    %4 = vector.broadcast %3 : vector<1x1280xf32> to vector<32x1280xf32>
    %5 = arith.addf %2, %4 : vector<32x1280xf32>
    %6 = arith.truncf %5 : vector<32x1280xf32> to vector<32x1280xbf16>
    %cst_5 = arith.constant 5.000000e-01 : bf16
    %7 = vector.broadcast %cst_5 : bf16 to vector<32x1280xbf16>
    %8 = arith.mulf %7, %6 : vector<32x1280xbf16>
    %9 = math.tanh %8 : vector<32x1280xbf16>
    %cst_6 = arith.constant 1.000000e+00 : bf16
    %10 = vector.broadcast %cst_6 : bf16 to vector<32x1280xbf16>
    %11 = arith.addf %10, %9 : vector<32x1280xbf16>
    %cst_7 = arith.constant 5.000000e-01 : bf16
    %12 = vector.broadcast %cst_7 : bf16 to vector<32x1280xbf16>
    %13 = arith.mulf %12, %11 : vector<32x1280xbf16>
    %14 = arith.mulf %6, %13 : vector<32x1280xbf16>
    %c0_8 = arith.constant 0 : index
    %c0_9 = arith.constant 0 : index
    %15 = vector.load %arg2[%c0_8, %c0_9] : memref<8x32xbf16, #tpu.memory_space<vmem>>, vector<8x32xbf16>
    %cst_10 = arith.constant dense<0.000000e+00> : vector<8x1280xf32>
    %16 = tpu.matmul %15, %14, %cst_10 {dimension_numbers = #tpu.dot_dimension_numbers<[1], [0], [0], [1], [0, 0, 1, 1], [], []>} : vector<8x32xbf16>, vector<32x1280xbf16>, vector<8x1280xf32> -> vector<8x1280xf32>
    %cst_11 = arith.constant 2.500000e-01 : f32
    %17 = vector.broadcast %cst_11 : f32 to vector<8x1280xf32>
    %18 = arith.mulf %16, %17 : vector<8x1280xf32>
    %19 = arith.truncf %18 : vector<8x1280xf32> to vector<8x1280xbf16>
    %c0_12 = arith.constant 0 : index
    %c0_13 = arith.constant 0 : index
    %20 = vector.load %arg5[%c0_12, %c0_13] : memref<1280x128xbf16, #tpu.memory_space<vmem>>, vector<1280x128xbf16>
    %cst_14 = arith.constant dense<0.000000e+00> : vector<8x128xf32>
    %21 = tpu.matmul %19, %20, %cst_14 {dimension_numbers = #tpu.dot_dimension_numbers<[1], [0], [0], [1], [0, 0, 1, 1], [], []>} : vector<8x1280xbf16>, vector<1280x128xbf16>, vector<8x128xf32> -> vector<8x128xf32>
    %c0_15 = arith.constant 0 : index
    %c0_16 = arith.constant 0 : index
    %22 = vector.load %arg6[%c0_15, %c0_16] : memref<1x128xf32, #tpu.memory_space<vmem>>, vector<1x128xf32>
    %23 = vector.broadcast %22 : vector<1x128xf32> to vector<8x128xf32>
    %24 = arith.addf %21, %23 : vector<8x128xf32>
    %25 = arith.mulf %24, %24 : vector<8x128xf32>
    %cst_17 = arith.constant dense<0.000000e+00> : vector<8xf32>
    %26 = vector.multi_reduction <add>, %25, %cst_17 [1] : vector<8x128xf32> to vector<8xf32>
    %27 = vector.shape_cast %26 : vector<8xf32> to vector<8x1xf32>
    %cst_18 = arith.constant 1.000000e-24 : f32
    %28 = vector.broadcast %cst_18 : f32 to vector<8x1xf32>
    %29 = arith.maximumf %27, %28 : vector<8x1xf32>
    %30 = math.rsqrt %29 : vector<8x1xf32>
    %31 = vector.broadcast %30 : vector<8x1xf32> to vector<8x128xf32>
    %32 = arith.mulf %24, %31 : vector<8x128xf32>
    %c0_19 = arith.constant 0 : index
    %c0_20 = arith.constant 0 : index
    %33 = vector.load %arg7[%c0_19, %c0_20] : memref<8x128xf32, #tpu.memory_space<vmem>>, vector<8x128xf32>
    tpu.vector_store %arg7[%c0_19, %c0_20], %32 {strides = array<i32>} : memref<8x128xf32, #tpu.memory_space<vmem>>, vector<8x128xf32>,
    return
  }
  func.func @transform_0(%arg0: i32) -> (i32, i32) {
    %c0_i32 = arith.constant 0 : i32
    %c0_i32_0 = arith.constant 0 : i32
    return %arg0, %c0_i32 : i32, i32
  }
  func.func @transform_1(%arg0: i32) -> (i32, i32) {
    %c0_i32 = arith.constant 0 : i32
    %c0_i32_0 = arith.constant 0 : i32
    %c0_i32_1 = arith.constant 0 : i32
    return %c0_i32, %c0_i32_0 : i32, i32
  }
  func.func @transform_2(%arg0: i32) -> (i32, i32) {
    %c0_i32 = arith.constant 0 : i32
    %c0_i32_0 = arith.constant 0 : i32
    %c0_i32_1 = arith.constant 0 : i32
    return %c0_i32, %c0_i32_0 : i32, i32
  }
  func.func @transform_3(%arg0: i32) -> (i32, i32) {
    %c0_i32 = arith.constant 0 : i32
    %c0_i32_0 = arith.constant 0 : i32
    %c0_i32_1 = arith.constant 0 : i32
    return %c0_i32, %c0_i32_0 : i32, i32
  }
  func.func @transform_4(%arg0: i32) -> (i32, i32) {
    %c0_i32 = arith.constant 0 : i32
    %c0_i32_0 = arith.constant 0 : i32
    %c0_i32_1 = arith.constant 0 : i32
    return %c0_i32, %c0_i32_0 : i32, i32
  }
  func.func @transform_5(%arg0: i32) -> (i32, i32) {
    %c0_i32 = arith.constant 0 : i32
    %c0_i32_0 = arith.constant 0 : i32
    %c0_i32_1 = arith.constant 0 : i32
    return %c0_i32, %c0_i32_0 : i32, i32
  }
  func.func @transform_6(%arg0: i32) -> (i32, i32) {
    %c0_i32 = arith.constant 0 : i32
    %c0_i32_0 = arith.constant 0 : i32
    return %arg0, %c0_i32 : i32, i32
  }
}

</mosaic_0001>

<bundles_post_ra>
// kernel: tpu_custom_call.1
= control target key start
LH: loop header
LB: loop body
LE: loop exit
PB: predicated region body
PF: predicated region fallthrough
CT: control target
= control target key end

     0   :  { %11 = vsyncpa [#allocation3], 0  ;;  %s4420_s0 = inlined_call_operand.hbm [shape: bf16[32,320], index: 0, kind: input, shape index: {}]   ;;  %s4421_s1 = inlined_call_operand.hbm [shape: bf16[8,32], index: 1, kind: input, shape index: {}]   ;;  %s4422_s2 = inlined_call_operand.hbm [shape: bf16[320,1280], index: 2, kind: input, shape index: {}]   ;;  %s4423_s3 = inlined_call_operand.vmem [shape: f32[1,1280], index: 3, kind: input, shape index: {}]   ;;  %s4424_s4 = inlined_call_operand.hbm [shape: bf16[1280,128], index: 4, kind: input, shape index: {}]   ;;  %s4425_s5 = inlined_call_operand.vmem [shape: f32[1,128], index: 5, kind: input, shape index: {}]   ;;  %s4426_s6 = inlined_call_operand.hbm [shape: f32[8,128], index: 6, kind: output, shape index: {}]  }
   0x1   :  { %12 = vsyncpa [#allocation6], 0 }
   0x2   :  { %13 = vsyncpa [#allocation9], 0 }
   0x3   :  { %14 = vsyncpa [#allocation4], 0  ;;  %s4187_s21 = smov [#allocation5]   ;;  %s4188_s23 = smov [#allocation2]  }
   0x4   :  { %s33_s22 = sshll.u32 %s4187_s21, 4  ;;  %s20_s24 = sshll.u32 %s4188_s23, 4  ;;  %s34_s22 = int_to_ptr.vmem [resolvable:$true] %s33_s22  ;;  %s4234_s24 = int_to_ptr.vmem [resolvable:$true] %s20_s24 }
   0x5   :  { %s4069_s27 = scalar_lea.hbm %s4421_s1, 64 }
   0x6   :  { %p4070_p0 = scmp.ne.s32.totalorder %s4421_s1, %s4069_s27  ;;  %p4073_p1 = scmp.lt.u32.totalorder %s4069_s27, %s4421_s1 }
   0x8   :  { %p4075_p2 = pnand %p4073_p1, %p4070_p0 }
   0xa   :  { %4078 = shalt.err (!%p4075_p2)
}
   0xb   :  { %s4079_s8 = scalar_lea.vmem %s34_s22, 64  ;;  %p4084_p4 = scmp.lt.s32.totalorder %s34_s22, %s34_s22 }
   0xc   :  { %p4080_p3 = scmp.ne.s32.totalorder %s34_s22, %s4079_s8  ;;  %p4085_p5 = scmp.lt.s32.totalorder %s4079_s8, %s4079_s8 }
   0xe   :  { %p4086_p6 = por %p4085_p5, %p4084_p4 }
  0x10   :  { %p4087_p7 = pnand %p4086_p6, %p4080_p3 }
  0x12   :  { %4090 = shalt.err (!%p4087_p7)
}
  0x13   :  { %36 = dma.hbm_to_vmem [thread:$0]  %s4421_s1, 64, %s34_s22, [#allocation6]  }
  0x14   :  { %s4091_s13 = scalar_lea.hbm %s4420_s0, 768 }
  0x15   :  { %p4092_p8 = scmp.ne.s32.totalorder %s4420_s0, %s4091_s13  ;;  %p4095_p9 = scmp.lt.u32.totalorder %s4091_s13, %s4420_s0 }
  0x17   :  { %p4097_p10 = pnand %p4095_p9, %p4092_p8 }
  0x19   :  { %4100 = shalt.err (!%p4097_p10)
}
  0x1a   :  { %s4101_s18 = scalar_lea.vmem %s4234_s24, 768  ;;  %p4106_p12 = scmp.lt.s32.totalorder %s4234_s24, %s4234_s24 }
  0x1b   :  { %p4102_p11 = scmp.ne.s32.totalorder %s4234_s24, %s4101_s18  ;;  %p4107_p13 = scmp.lt.s32.totalorder %s4101_s18, %s4101_s18 }
  0x1d   :  { %p4108_p0 = por %p4107_p13, %p4106_p12 }
  0x1f   :  { %p4109_p1 = pnand %p4108_p0, %p4102_p11 }
  0x21   :  { %4112 = shalt.err (!%p4109_p1)
}
  0x22   :  { %s4189_s1 = smov 192   ;;  %s4190_s19 = smov 12  }
  0x23   :  { %26 = dma.hbm_to_vmem [thread:$0]  %s4420_s0, 768, %s4234_s24, [#allocation3], %s4189_s1, %s4189_s1, %s4190_s19  }
  0x24   :  { %s4191_s22 = smov [#allocation7]   ;;  %s4113_s27 = scalar_lea.hbm %s4422_s2, 25600 }
  0x25   :  { %s42_s23 = sshll.u32 %s4191_s22, 4  ;;  %p4114_p2 = scmp.ne.s32.totalorder %s4422_s2, %s4113_s27  ;;  %s43_s23 = int_to_ptr.vmem [resolvable:$true] %s42_s23 }
  0x26   :  { %p4117_p3 = scmp.lt.u32.totalorder %s4113_s27, %s4422_s2 }
  0x28   :  { %p4119_p4 = pnand %p4117_p3, %p4114_p2 }
  0x2a   :  { %4122 = shalt.err (!%p4119_p4)
}
  0x2b   :  { %s4123_s8 = scalar_lea.vmem %s43_s23, 25600  ;;  %p4128_p6 = scmp.lt.s32.totalorder %s43_s23, %s43_s23 }
  0x2c   :  { %p4124_p5 = scmp.ne.s32.totalorder %s43_s23, %s4123_s8  ;;  %p4129_p7 = scmp.lt.s32.totalorder %s4123_s8, %s4123_s8 }
  0x2e   :  { %p4130_p8 = por %p4129_p7, %p4128_p6 }
  0x30   :  { %p4131_p9 = pnand %p4130_p8, %p4124_p5 }
  0x32   :  { %4134 = shalt.err (!%p4131_p9)
}
  0x33   :  { %s4192_s0 = smov 640   ;;  %s4193_s24 = smov 40  }
  0x34   :  { %48 = dma.hbm_to_vmem [thread:$0]  %s4422_s2, 25600, %s43_s23, [#allocation6], %s4192_s0, %s4192_s0, %s4193_s24  }
  0x35   :  { %s4194_s11 = smov [#allocation8]   ;;  %s4135_s15 = scalar_lea.hbm %s4424_s4, 10240 }
  0x36   :  { %s56_s12 = sshll.u32 %s4194_s11, 4  ;;  %p4136_p10 = scmp.ne.s32.totalorder %s4424_s4, %s4135_s15  ;;  %s57_s12 = int_to_ptr.vmem [resolvable:$true] %s56_s12 }
  0x37   :  { %p4139_p11 = scmp.lt.u32.totalorder %s4135_s15, %s4424_s4 }
  0x39   :  { %p4141_p12 = pnand %p4139_p11, %p4136_p10 }
  0x3b   :  { %4144 = shalt.err (!%p4141_p12)
}
  0x3c   :  { %s4145_s19 = scalar_lea.vmem %s57_s12, 10240  ;;  %p4150_p0 = scmp.lt.s32.totalorder %s57_s12, %s57_s12 }
  0x3d   :  { %p4146_p13 = scmp.ne.s32.totalorder %s57_s12, %s4145_s19  ;;  %p4151_p1 = scmp.lt.s32.totalorder %s4145_s19, %s4145_s19 }
  0x3f   :  { %p4152_p2 = por %p4151_p1, %p4150_p0 }
  0x41   :  { %p4153_p3 = pnand %p4152_p2, %p4146_p13 }
  0x43   :  { %4156 = shalt.err (!%p4153_p3)
}
  0x44   :  { %s4195_s2 = smov 64   ;;  %s4196_s20 = smov 4  }
  0x45   :  { %62 = dma.hbm_to_vmem [thread:$0]  %s4424_s4, 10240, %s57_s12, [#allocation9], %s4195_s2, %s4195_s2, %s4196_s20  }
  0x46   :  { %4179 = dma.done.wait [#allocation3], 768  }
  0x47   :  { %4180 = vsyncadd [#allocation3], 4294966528 }
  0x48   :  { %4181 = dma.done.wait [#allocation6], 25664  }
  0x49   :  { %4182 = vsyncadd [#allocation6], 4294941632 }
  0x4a   :  { %4183 = dma.done.wait [#allocation9], 10240  }
  0x4b   :  { %4184 = vsyncadd [#allocation9], 4294957056  ;;  %v3634_v0 = vld [vmem:[#allocation7 + $0x4] ss:$40 sps:$4 sm:$0xff]   ;;  %v3636_v1 = vld [vmem:[#allocation7] ss:$40 sps:$4 sm:$0xff]  }
  0x4c   :  { %1379 = vmatprep.subr.bf16.mxu0 %v3634_v0  ;;  %v3637_v2 = vld [vmem:[#allocation7 + $0x54] ss:$40 sps:$4 sm:$0xff]   ;;  %v3639_v3 = vld [vmem:[#allocation7 + $0x50] ss:$40 sps:$4 sm:$0xff]   ;;  %v3640_v4 = vld [vmem:[#allocation7 + $0xa4] ss:$40 sps:$4 sm:$0xff]  }
  0x4d   :  { %1380 = vmatpush1.bf16.msra.mxu0 %v3636_v1  ;;  %v3642_v5 = vld [vmem:[#allocation7 + $0xa0] ss:$40 sps:$4 sm:$0xff]   ;;  %v3643_v6 = vld [vmem:[#allocation7 + $0xf4] ss:$40 sps:$4 sm:$0xff]   ;;  %v3645_v9 = vld [vmem:[#allocation7 + $0xf0] ss:$40 sps:$4 sm:$0xff]  }
  0x4e   :  { %1381 = vmatprep.subr.bf16.mxu0 %v3637_v2  ;;  %v3652_v7 = vld [vmem:[#allocation7 + $0xc] ss:$40 sps:$4 sm:$0xff]   ;;  %v3654_v8 = vld [vmem:[#allocation7 + $0x8] ss:$40 sps:$4 sm:$0xff]   ;;  %v3658_v10 = vld [vmem:[#allocation7 + $0x5c] ss:$40 sps:$4 sm:$0xff]  }
  0x4f   :  { %1485 = vmatprep.subr.bf16.mxu1 %v3652_v7  ;;  %v3660_v11 = vld [vmem:[#allocation7 + $0x58] ss:$40 sps:$4 sm:$0xff]   ;;  %v3646_v12 = vld [vmem:[#allocation7 + $0x144] ss:$40 sps:$4 sm:$0xff]   ;;  %v3649_v15 = vld [vmem:[#allocation7 + $0x194] ss:$40 sps:$4 sm:$0xff]  }
  0x50   :  { %1486 = vmatpush1.bf16.msra.mxu1 %v3654_v8  ;;  %v3648_v13 = vld [vmem:[#allocation7 + $0x140] ss:$40 sps:$4 sm:$0xff]   ;;  %v3664_v14 = vld [vmem:[#allocation7 + $0xac] ss:$40 sps:$4 sm:$0xff]   ;;  %v3670_v17 = vld [vmem:[#allocation7 + $0xfc] ss:$40 sps:$4 sm:$0xff]  }
  0x51   :  { %1382 = vmatpush1.bf16.msra.mxu0 %v3639_v3  ;;  %1487 = vmatprep.subr.bf16.mxu1 %v3658_v10  ;;  %v3666_v16 = vld [vmem:[#allocation7 + $0xa8] ss:$40 sps:$4 sm:$0xff]   ;;  %v3655_v19 = vld [vmem:[#allocation7 + $0x1e4] ss:$40 sps:$4 sm:$0xff]   ;;  %v3672_v20 = vld [vmem:[#allocation7 + $0xf8] ss:$40 sps:$4 sm:$0xff]  }
  0x52   :  { %1383 = vmatprep.subr.bf16.mxu0 %v3640_v4  ;;  %v3651_v18 = vld [vmem:[#allocation7 + $0x190] ss:$40 sps:$4 sm:$0xff]   ;;  %v3676_v21 = vld [vmem:[#allocation7 + $0x14c] ss:$40 sps:$4 sm:$0xff]   ;;  %v3657_v22 = vld [vmem:[#allocation7 + $0x1e0] ss:$40 sps:$4 sm:$0xff]  }
  0x53   :  { %v3661_v23 = vld [vmem:[#allocation7 + $0x234] ss:$40 sps:$4 sm:$0xff]   ;;  %v3678_v24 = vld [vmem:[#allocation7 + $0x148] ss:$40 sps:$4 sm:$0xff]   ;;  %v3667_v27 = vld [vmem:[#allocation7 + $0x284] ss:$40 sps:$4 sm:$0xff]  }
  0x54   :  { %1488 = vmatpush1.bf16.msra.mxu1 %v3660_v11  ;;  %v3682_v25 = vld [vmem:[#allocation7 + $0x19c] ss:$40 sps:$4 sm:$0xff]   ;;  %v3663_v26 = vld [vmem:[#allocation7 + $0x230] ss:$40 sps:$4 sm:$0xff]   ;;  %v3688_v29 = vld [vmem:[#allocation7 + $0x1ec] ss:$40 sps:$4 sm:$0xff]  }
  0x55   :  { %1384 = vmatpush1.bf16.msra.mxu0 %v3642_v5  ;;  %1489 = vmatprep.subr.bf16.mxu1 %v3664_v14  ;;  %v3684_v28 = vld [vmem:[#allocation7 + $0x198] ss:$40 sps:$4 sm:$0xff]   ;;  %v3673_v31 = vld [vmem:[#allocation7 + $0x2d4] ss:$40 sps:$4 sm:$0xff]   ;;  %v3690_v32 = vld [vmem:[#allocation7 + $0x1e8] ss:$40 sps:$4 sm:$0xff]  }
  0x56   :  { %1385 = vmatprep.subr.bf16.mxu0 %v3643_v6  ;;  %v3669_v30 = vld [vmem:[#allocation7 + $0x280] ss:$40 sps:$4 sm:$0xff]   ;;  %v3694_v33 = vld [vmem:[#allocation7 + $0x23c] ss:$40 sps:$4 sm:$0xff]   ;;  %v3675_v34 = vld [vmem:[#allocation7 + $0x2d0] ss:$40 sps:$4 sm:$0xff]  }
  0x57   :  { %v3679_v35 = vld [vmem:[#allocation7 + $0x324] ss:$40 sps:$4 sm:$0xff]   ;;  %v3696_v36 = vld [vmem:[#allocation7 + $0x238] ss:$40 sps:$4 sm:$0xff]   ;;  %v4289_v38 = vld [vmem:[#allocation2 + $0x4] ss:$12 sps:$4 sm:$0xff]  }
  0x58   :  { %1490 = vmatpush1.bf16.msra.mxu1 %v3666_v16  ;;  %v3700_v37 = vld [vmem:[#allocation7 + $0x28c] ss:$40 sps:$4 sm:$0xff]   ;;  %v3681_v39 = vld [vmem:[#allocation7 + $0x320] ss:$40 sps:$4 sm:$0xff]   ;;  %1411 = vmatprep.mubr.bf16.mxu0 %v4289_v38  ;;  %v3706_v42 = vld [vmem:[#allocation7 + $0x2dc] ss:$40 sps:$4 sm:$0xff]  }
  0x59   :  { %1386 = vmatpush1.bf16.msra.mxu0 %v3645_v9  ;;  %1491 = vmatprep.subr.bf16.mxu1 %v3670_v17  ;;  %v3685_v40 = vld [vmem:[#allocation7 + $0x374] ss:$40 sps:$4 sm:$0xff]   ;;  %v3702_v41 = vld [vmem:[#allocation7 + $0x288] ss:$40 sps:$4 sm:$0xff]   ;;  %v3691_v44 = vld [vmem:[#allocation7 + $0x3c4] ss:$40 sps:$4 sm:$0xff]  }
  0x5a   :  { %1387 = vmatprep.subr.bf16.mxu0 %v3646_v12  ;;  %1517 = vmatprep.mubr.bf16.mxu1 %v4289_v38  ;;  %v3687_v43 = vld [vmem:[#allocation7 + $0x370] ss:$40 sps:$4 sm:$0xff]   ;;  %v3712_v46 = vld [vmem:[#allocation7 + $0x32c] ss:$40 sps:$4 sm:$0xff]   ;;  %v3693_v47 = vld [vmem:[#allocation7 + $0x3c0] ss:$40 sps:$4 sm:$0xff]  }
  0x5b   :  { %v3708_v45 = vld [vmem:[#allocation7 + $0x2d8] ss:$40 sps:$4 sm:$0xff]   ;;  %v3697_v48 = vld [vmem:[#allocation7 + $0x414] ss:$40 sps:$4 sm:$0xff]   ;;  %v3714_v49 = vld [vmem:[#allocation7 + $0x328] ss:$40 sps:$4 sm:$0xff]  }
  0x5c   :  { %1492 = vmatpush1.bf16.msra.mxu1 %v3672_v20  ;;  %v3721_v50 = vld [vmem:[#allocation7 + $0x37c] ss:$40 sps:$4 sm:$0xff]   ;;  %v3699_v51 = vld [vmem:[#allocation7 + $0x410] ss:$40 sps:$4 sm:$0xff]   ;;  %v3727_v54 = vld [vmem:[#allocation7 + $0x3cc] ss:$40 sps:$4 sm:$0xff]  }
  0x5d   :  { %1388 = vmatpush1.bf16.msra.mxu0 %v3648_v13  ;;  %1493 = vmatprep.subr.bf16.mxu1 %v3676_v21  ;;  %v3723_v52 = vld [vmem:[#allocation7 + $0x378] ss:$40 sps:$4 sm:$0xff]   ;;  %v3703_v53 = vld [vmem:[#allocation7 + $0x464] ss:$40 sps:$4 sm:$0xff]   ;;  %v3709_v56 = vld [vmem:[#allocation7 + $0x4b4] ss:$40 sps:$4 sm:$0xff]  }
  0x5e   :  { %1389 = vmatprep.subr.bf16.mxu0 %v3649_v15  ;;  %v3705_v55 = vld [vmem:[#allocation7 + $0x460] ss:$40 sps:$4 sm:$0xff]   ;;  %v3736_v58 = vld [vmem:[#allocation7 + $0x41c] ss:$40 sps:$4 sm:$0xff]   ;;  %v3711_v59 = vld [vmem:[#allocation7 + $0x4b0] ss:$40 sps:$4 sm:$0xff]  }
  0x5f   :  { %v3729_v57 = vld [vmem:[#allocation7 + $0x3c8] ss:$40 sps:$4 sm:$0xff]   ;;  %v3738_v60 = vld [vmem:[#allocation7 + $0x418] ss:$40 sps:$4 sm:$0xff]   ;;  %v3720_v61 = vld [vmem:[#allocation7 + $0x504] ss:$40 sps:$4 sm:$0xff]  }
  0x60   :  { %1494 = vmatpush1.bf16.msra.mxu1 %v3678_v24  ;;  %v3742_v62 = vld [vmem:[#allocation7 + $0x46c] ss:$40 sps:$4 sm:$0xff]   ;;  %v3718_v0 = vld [vmem:[#allocation7 + $0x500] ss:$40 sps:$4 sm:$0xff]   ;;  %v3749_v4 = vld [vmem:[#allocation7 + $0x4bc] ss:$40 sps:$4 sm:$0xff]  }
  0x61   :  { %1390 = vmatpush1.bf16.msra.mxu0 %v3651_v18  ;;  %1495 = vmatprep.subr.bf16.mxu1 %v3682_v25  ;;  %v4293_v63 = vld [vmem:[#allocation2] ss:$12 sps:$4 sm:$0xff]   ;;  %v4295_v1 = vld [vmem:[#allocation2 + $0x1c] ss:$12 sps:$4 sm:$0xff]   ;;  %v4299_v9 = vld [vmem:[#allocation2 + $0x18] ss:$12 sps:$4 sm:$0xff]  }
  0x62   :  { %1391 = vmatprep.subr.bf16.mxu0 %v3655_v19  ;;  %v3726_v2 = vld [vmem:[#allocation7 + $0x554] ss:$40 sps:$4 sm:$0xff]   ;;  %v3744_v3 = vld [vmem:[#allocation7 + $0x468] ss:$40 sps:$4 sm:$0xff]   ;;  %v3735_v6 = vld [vmem:[#allocation7 + $0x5a4] ss:$40 sps:$4 sm:$0xff]  }
  0x63   :  { %v3724_v5 = vld [vmem:[#allocation7 + $0x550] ss:$40 sps:$4 sm:$0xff]   ;;  %v3757_v8 = vld [vmem:[#allocation7 + $0x50c] ss:$40 sps:$4 sm:$0xff]   ;;  %v3733_v10 = vld [vmem:[#allocation7 + $0x5a0] ss:$40 sps:$4 sm:$0xff]  }
  0x64   :  { %1496 = vmatpush1.bf16.msra.mxu1 %v3684_v28  ;;  %v3751_v7 = vld [vmem:[#allocation7 + $0x4b8] ss:$40 sps:$4 sm:$0xff]   ;;  %v3741_v11 = vld [vmem:[#allocation7 + $0x5f4] ss:$40 sps:$4 sm:$0xff]   ;;  %v3755_v12 = vld [vmem:[#allocation7 + $0x508] ss:$40 sps:$4 sm:$0xff]  }
  0x65   :  { %1392 = vmatpush1.bf16.msra.mxu0 %v3657_v22  ;;  %1497 = vmatprep.subr.bf16.mxu1 %v3688_v29  ;;  %v3764_v13 = vld [vmem:[#allocation7 + $0x55c] ss:$40 sps:$4 sm:$0xff]   ;;  %v3739_v14 = vld [vmem:[#allocation7 + $0x5f0] ss:$40 sps:$4 sm:$0xff]   ;;  %v4197_v15 = vmov 0   ;;  %vm1372_vm0 = vcmask 523264  }
  0x66   :  { %1393 = vmatprep.subr.bf16.mxu0 %v3661_v23  ;;  %v3748_v16 = vld [vmem:[#allocation7 + $0x14] ss:$40 sps:$4 sm:$0xff]   ;;  %v3762_v18 = vld [vmem:[#allocation7 + $0x558] ss:$40 sps:$4 sm:$0xff]   ;;  %v3754_v21 = vld [vmem:[#allocation7 + $0x64] ss:$40 sps:$4 sm:$0xff]  }
  0x67   :  { %v4304_v17 = vld [vmem:[#allocation2 + $0x8] ss:$12 sps:$4 sm:$0xff]   ;;  %v3746_v20 = vld [vmem:[#allocation7 + $0x10] ss:$40 sps:$4 sm:$0xff]   ;;  %v3776_v23 = vld [vmem:[#allocation7 + $0x5fc] ss:$40 sps:$4 sm:$0xff]  }
  0x68   :  { %1498 = vmatpush1.bf16.msra.mxu1 %v3690_v32  ;;  %v3770_v19 = vld [vmem:[#allocation7 + $0x5ac] ss:$40 sps:$4 sm:$0xff]   ;;  %v3768_v22 = vld [vmem:[#allocation7 + $0x5a8] ss:$40 sps:$4 sm:$0xff]   ;;  %v3782_v28 = vld [vmem:[#allocation7 + $0x1c] ss:$40 sps:$4 sm:$0xff]  }
  0x69   :  { %1394 = vmatpush1.bf16.msra.mxu0 %v3663_v26  ;;  %1499 = vmatprep.subr.bf16.mxu1 %v3694_v33  ;;  %v3752_v24 = vld [vmem:[#allocation7 + $0x60] ss:$40 sps:$4 sm:$0xff]   ;;  %v3761_v25 = vld [vmem:[#allocation7 + $0xb4] ss:$40 sps:$4 sm:$0xff]   ;;  %v4311_v26 = vld [vmem:[#allocation2 + $0x20] ss:$12 sps:$4 sm:$0xff]  }
  0x6a   :  { %1395 = vmatprep.subr.bf16.mxu0 %v3667_v27  ;;  %v3774_v27 = vld [vmem:[#allocation7 + $0x5f8] ss:$40 sps:$4 sm:$0xff]   ;;  %v3788_v32 = vld [vmem:[#allocation7 + $0x6c] ss:$40 sps:$4 sm:$0xff]   ;;  %vm2030_vm1 = vcmask 261120  }
  0x6b   :  { %v3759_v29 = vld [vmem:[#allocation7 + $0xb0] ss:$40 sps:$4 sm:$0xff]   ;;  %v3765_v33 = vld [vmem:[#allocation7 + $0x100] ss:$40 sps:$4 sm:$0xff]  }
  0x6c   :  { %1500 = vmatpush1.bf16.msra.mxu1 %v3696_v36  ;;  %v3794_v36 = vld [vmem:[#allocation7 + $0xbc] ss:$40 sps:$4 sm:$0xff]  }
  0x6d   :  { %1396 = vmatpush1.bf16.msra.mxu0 %v3669_v30  ;;  %1501 = vmatprep.subr.bf16.mxu1 %v3700_v37  ;;  %v3767_v30 = vld [vmem:[#allocation7 + $0x104] ss:$40 sps:$4 sm:$0xff]   ;;  %v3771_v37 = vld [vmem:[#allocation7 + $0x150] ss:$40 sps:$4 sm:$0xff]  }
  0x6e   :  { %1397 = vmatprep.subr.bf16.mxu0 %v3673_v31  ;;  %v3780_v31 = vld [vmem:[#allocation7 + $0x18] ss:$40 sps:$4 sm:$0xff]  }
  0x70   :  { %1502 = vmatpush1.bf16.msra.mxu1 %v3702_v41  ;;  %v3800_v41 = vld [vmem:[#allocation7 + $0x10c] ss:$40 sps:$4 sm:$0xff]  }
  0x71   :  { %1398 = vmatpush1.bf16.msra.mxu0 %v3675_v34  ;;  %1503 = vmatprep.subr.bf16.mxu1 %v3706_v42  ;;  %v3773_v34 = vld [vmem:[#allocation7 + $0x154] ss:$40 sps:$4 sm:$0xff]   ;;  %v3777_v42 = vld [vmem:[#allocation7 + $0x1a0] ss:$40 sps:$4 sm:$0xff]  }
  0x72   :  { %1399 = vmatprep.subr.bf16.mxu0 %v3679_v35  ;;  %v3786_v35 = vld [vmem:[#allocation7 + $0x68] ss:$40 sps:$4 sm:$0xff]  }
  0x74   :  { %1504 = vmatpush1.bf16.msra.mxu1 %v3708_v45  ;;  %v3806_v45 = vld [vmem:[#allocation7 + $0x15c] ss:$40 sps:$4 sm:$0xff]  }
  0x75   :  { %1400 = vmatpush1.bf16.msra.mxu0 %v3681_v39  ;;  %1505 = vmatprep.subr.bf16.mxu1 %v3712_v46  ;;  %v3779_v39 = vld [vmem:[#allocation7 + $0x1a4] ss:$40 sps:$4 sm:$0xff]   ;;  %v3783_v46 = vld [vmem:[#allocation7 + $0x1f0] ss:$40 sps:$4 sm:$0xff]  }
  0x76   :  { %1401 = vmatprep.subr.bf16.mxu0 %v3685_v40  ;;  %v3792_v40 = vld [vmem:[#allocation7 + $0xb8] ss:$40 sps:$4 sm:$0xff]  }
  0x78   :  { %1506 = vmatpush1.bf16.msra.mxu1 %v3714_v49  ;;  %v3812_v49 = vld [vmem:[#allocation7 + $0x1ac] ss:$40 sps:$4 sm:$0xff]  }
  0x79   :  { %1402 = vmatpush1.bf16.msra.mxu0 %v3687_v43  ;;  %1507 = vmatprep.subr.bf16.mxu1 %v3721_v50  ;;  %v3785_v43 = vld [vmem:[#allocation7 + $0x1f4] ss:$40 sps:$4 sm:$0xff]   ;;  %v3789_v50 = vld [vmem:[#allocation7 + $0x240] ss:$40 sps:$4 sm:$0xff]  }
  0x7a   :  { %1403 = vmatprep.subr.bf16.mxu0 %v3691_v44  ;;  %v3798_v44 = vld [vmem:[#allocation7 + $0x108] ss:$40 sps:$4 sm:$0xff]  }
  0x7c   :  { %1508 = vmatpush1.bf16.msra.mxu1 %v3723_v52  ;;  %v3810_v52 = vld [vmem:[#allocation7 + $0x1a8] ss:$40 sps:$4 sm:$0xff]  }
  0x7d   :  { %1404 = vmatpush1.bf16.msra.mxu0 %v3693_v47  ;;  %1509 = vmatprep.subr.bf16.mxu1 %v3727_v54  ;;  %v3791_v47 = vld [vmem:[#allocation7 + $0x244] ss:$40 sps:$4 sm:$0xff]  }
  0x7e   :  { %1405 = vmatprep.subr.bf16.mxu0 %v3697_v48  ;;  %v3804_v48 = vld [vmem:[#allocation7 + $0x158] ss:$40 sps:$4 sm:$0xff]   ;;  %v3803_v54 = vld [vmem:[#allocation7 + $0x2e4] ss:$40 sps:$4 sm:$0xff]  }
  0x80   :  { %1510 = vmatpush1.bf16.msra.mxu1 %v3729_v57  ;;  %v3801_v57 = vld [vmem:[#allocation7 + $0x2e0] ss:$40 sps:$4 sm:$0xff]  }
  0x81   :  { %1406 = vmatpush1.bf16.msra.mxu0 %v3699_v51  ;;  %1511 = vmatprep.subr.bf16.mxu1 %v3736_v58  ;;  %v3797_v51 = vld [vmem:[#allocation7 + $0x294] ss:$40 sps:$4 sm:$0xff]  }
  0x82   :  { %1407 = vmatprep.subr.bf16.mxu0 %v3703_v53  ;;  %v3818_v53 = vld [vmem:[#allocation7 + $0x1fc] ss:$40 sps:$4 sm:$0xff]  }
  0x83   :  { %v3809_v58 = vld [vmem:[#allocation7 + $0x334] ss:$40 sps:$4 sm:$0xff]  }
  0x84   :  { %1512 = vmatpush1.bf16.msra.mxu1 %v3738_v60  ;;  %v3830_v60 = vld [vmem:[#allocation7 + $0x29c] ss:$40 sps:$4 sm:$0xff]  }
  0x85   :  { %1408 = vmatpush1.bf16.msra.mxu0 %v3705_v55  ;;  %1513 = vmatprep.subr.bf16.mxu1 %v3742_v62  ;;  %v3816_v55 = vld [vmem:[#allocation7 + $0x1f8] ss:$40 sps:$4 sm:$0xff]   ;;  %v3815_v62 = vld [vmem:[#allocation7 + $0x384] ss:$40 sps:$4 sm:$0xff]  }
  0x86   :  { %1409 = vmatprep.subr.bf16.mxu0 %v3709_v56  ;;  %v3824_v56 = vld [vmem:[#allocation7 + $0x24c] ss:$40 sps:$4 sm:$0xff]  }
  0x88   :  { %1514 = vmatpush1.bf16.msra.mxu1 %v3744_v3  ;;  %v3813_v3 = vld [vmem:[#allocation7 + $0x380] ss:$40 sps:$4 sm:$0xff]  }
  0x89   :  { %1410 = vmatpush1.bf16.msra.mxu0 %v3711_v59  ;;  %1515 = vmatprep.subr.bf16.mxu1 %v3749_v4  ;;  %v3822_v59 = vld [vmem:[#allocation7 + $0x248] ss:$40 sps:$4 sm:$0xff]   ;;  %v3821_v4 = vld [vmem:[#allocation7 + $0x3d4] ss:$40 sps:$4 sm:$0xff]  }
  0x8a   :  { %1432 = vmatprep.subr.bf16.mxu0 %v3720_v61  ;;  %v3807_v61 = vld [vmem:[#allocation7 + $0x330] ss:$40 sps:$4 sm:$0xff]  }
  0x8c   :  { %1412 = vmatmul.mubr.bf16.vlgmr.msra.gmra.mrb[0].mxu0 %v4293_v63  ;;  %1516 = vmatpush1.bf16.msra.mxu1 %v3751_v7  ;;  %v3819_v7 = vld [vmem:[#allocation7 + $0x3d0] ss:$40 sps:$4 sm:$0xff]  }
  0x8d   :  { %1433 = vmatpush1.bf16.msra.mxu0 %v3718_v0  ;;  %1421 = vmatprep.mubr.bf16.mxu0 %v4295_v1  ;;  %v3828_v0 = vld [vmem:[#allocation7 + $0x298] ss:$40 sps:$4 sm:$0xff]  }
  0x8e   :  { %1434 = vmatprep.subr.bf16.mxu0 %v3726_v2  ;;  %1538 = vmatprep.subr.bf16.mxu1 %v3757_v8  ;;  %v3836_v2 = vld [vmem:[#allocation7 + $0x2ec] ss:$40 sps:$4 sm:$0xff]  }
  0x8f   :  { %1518 = vmatmul.mubr.bf16.vlgmr.msra.gmra.mrb[0].mxu1 %v4293_v63  ;;  %v3827_v8 = vld [vmem:[#allocation7 + $0x424] ss:$40 sps:$4 sm:$0xff]  }
  0x90   :  { %1539 = vmatpush1.bf16.msra.mxu1 %v3755_v12  ;;  %1527 = vmatprep.mubr.bf16.mxu1 %v4295_v1  ;;  %v3825_v12 = vld [vmem:[#allocation7 + $0x420] ss:$40 sps:$4 sm:$0xff]  }
  0x91   :  { %1435 = vmatpush1.bf16.msra.mxu0 %v3724_v5  ;;  %1540 = vmatprep.subr.bf16.mxu1 %v3764_v13  ;;  %v3834_v5 = vld [vmem:[#allocation7 + $0x2e8] ss:$40 sps:$4 sm:$0xff]   ;;  %v3833_v13 = vld [vmem:[#allocation7 + $0x474] ss:$40 sps:$4 sm:$0xff]  }
  0x92   :  { %1436 = vmatprep.subr.bf16.mxu0 %v3735_v6  ;;  %v3842_v6 = vld [vmem:[#allocation7 + $0x33c] ss:$40 sps:$4 sm:$0xff]  }
  0x94   :  { %1422 = vmatmul.mubr.bf16.gmra.mrb[4].mxu0 %v4299_v9  ;;  %1541 = vmatpush1.bf16.msra.mxu1 %v3762_v18  ;;  %v3831_v18 = vld [vmem:[#allocation7 + $0x470] ss:$40 sps:$4 sm:$0xff]  }
  0x95   :  { %1437 = vmatpush1.bf16.msra.mxu0 %v3733_v10  ;;  %1464 = vmatprep.mubr.bf16.mxu0 %v4197_v15  ;;  %v3840_v10 = vld [vmem:[#allocation7 + $0x338] ss:$40 sps:$4 sm:$0xff]  }
  0x96   :  { %1438 = vmatprep.subr.bf16.mxu0 %v3741_v11  ;;  %1542 = vmatprep.subr.bf16.mxu1 %v3770_v19  ;;  %v3848_v11 = vld [vmem:[#allocation7 + $0x38c] ss:$40 sps:$4 sm:$0xff]  }
  0x97   :  { %1528 = vmatmul.mubr.bf16.gmra.mrb[4].mxu1 %v4299_v9  ;;  %v3839_v19 = vld [vmem:[#allocation7 + $0x4c4] ss:$40 sps:$4 sm:$0xff]  }
  0x98   :  { %1543 = vmatpush1.bf16.msra.mxu1 %v3768_v22  ;;  %1570 = vmatprep.mubr.bf16.mxu1 %v4197_v15  ;;  %v3845_v22 = vld [vmem:[#allocation7 + $0x514] ss:$40 sps:$4 sm:$0xff]  }
  0x99   :  { %1439 = vmatpush1.bf16.msra.mxu0 %v3739_v14  ;;  %1544 = vmatprep.subr.bf16.mxu1 %v3776_v23  ;;  %v3846_v14 = vld [vmem:[#allocation7 + $0x388] ss:$40 sps:$4 sm:$0xff]   ;;  %v3860_v23 = vld [vmem:[#allocation7 + $0x42c] ss:$40 sps:$4 sm:$0xff]  }
  0x9a   :  { %1591 = vmatprep.subr.bf16.mxu0 %v3748_v16  ;;  %v3854_v16 = vld [vmem:[#allocation7 + $0x3dc] ss:$40 sps:$4 sm:$0xff]  }
  0x9c   :  { %3336 = vmatmul.mubr.msk.bf16.vlgmr.msra.gmra.mrb[0].mxu0 %vm1372_vm0, %v4304_v17  ;;  %1545 = vmatpush1.bf16.msra.mxu1 %v3774_v27  ;;  %v3843_v27 = vld [vmem:[#allocation7 + $0x510] ss:$40 sps:$4 sm:$0xff]  }
  0x9d   :  { %1592 = vmatpush1.bf16.msra.mxu0 %v3746_v20  ;;  %1474 = vmatprep.mubr.bf16.mxu0 %v4197_v15  ;;  %v3837_v20 = vld [vmem:[#allocation7 + $0x4c0] ss:$40 sps:$4 sm:$0xff]  }
  0x9e   :  { %1593 = vmatprep.subr.bf16.mxu0 %v3754_v21  ;;  %1697 = vmatprep.subr.bf16.mxu1 %v3782_v28  ;;  %v3852_v21 = vld [vmem:[#allocation7 + $0x3d8] ss:$40 sps:$4 sm:$0xff]   ;;  %v3851_v28 = vld [vmem:[#allocation7 + $0x564] ss:$40 sps:$4 sm:$0xff]  }
  0x9f   :  { %3338 = vmatmul.mubr.msk.bf16.vlgmr.msra.gmra.mrb[0].mxu1 %vm1372_vm0, %v4304_v17 }
  0xa0   :  { %1698 = vmatpush1.bf16.msra.mxu1 %v3780_v31  ;;  %1580 = vmatprep.mubr.bf16.mxu1 %v4197_v15  ;;  %v3849_v31 = vld [vmem:[#allocation7 + $0x560] ss:$40 sps:$4 sm:$0xff]  }
  0xa1   :  { %1594 = vmatpush1.bf16.msra.mxu0 %v3752_v24  ;;  %1699 = vmatprep.subr.bf16.mxu1 %v3788_v32  ;;  %v3858_v24 = vld [vmem:[#allocation7 + $0x428] ss:$40 sps:$4 sm:$0xff]   ;;  %v3857_v32 = vld [vmem:[#allocation7 + $0x5b4] ss:$40 sps:$4 sm:$0xff]  }
  0xa2   :  { %1595 = vmatprep.subr.bf16.mxu0 %v3761_v25  ;;  %v3866_v25 = vld [vmem:[#allocation7 + $0x47c] ss:$40 sps:$4 sm:$0xff]  }
  0xa4   :  { %3337 = vmatmul.mubr.msk.bf16.gmra.mrb[4].mxu0 %vm1372_vm0, %v4311_v26  ;;  %1700 = vmatpush1.bf16.msra.mxu1 %v3786_v35  ;;  %v3855_v35 = vld [vmem:[#allocation7 + $0x5b0] ss:$40 sps:$4 sm:$0xff]  }
  0xa5   :  { %1596 = vmatpush1.bf16.msra.mxu0 %v3759_v29  ;;  %1623 = vmatprep.mubr.bf16.mxu0 %v4289_v38  ;;  %v3864_v29 = vld [vmem:[#allocation7 + $0x478] ss:$40 sps:$4 sm:$0xff]  }
  0xa6   :  { %1597 = vmatprep.subr.bf16.mxu0 %v3767_v30  ;;  %1701 = vmatprep.subr.bf16.mxu1 %v3794_v36  ;;  %v3872_v30 = vld [vmem:[#allocation7 + $0x4cc] ss:$40 sps:$4 sm:$0xff]  }
  0xa7   :  { %3339 = vmatmul.mubr.msk.bf16.gmra.mrb[4].mxu1 %vm1372_vm0, %v4311_v26  ;;  %v3863_v36 = vld [vmem:[#allocation7 + $0x604] ss:$40 sps:$4 sm:$0xff]  }
  0xa8   :  { %1702 = vmatpush1.bf16.msra.mxu1 %v3792_v40  ;;  %1729 = vmatprep.mubr.bf16.mxu1 %v4289_v38  ;;  %v3795_v38 = vld [vmem:[#allocation7 + $0x290] ss:$40 sps:$4 sm:$0xff]   ;;  %v3861_v40 = vld [vmem:[#allocation7 + $0x600] ss:$40 sps:$4 sm:$0xff]  }
  0xa9   :  { %1598 = vmatpush1.bf16.msra.mxu0 %v3765_v33  ;;  %1703 = vmatprep.subr.bf16.mxu1 %v3800_v41  ;;  %v3870_v33 = vld [vmem:[#allocation7 + $0x4c8] ss:$40 sps:$4 sm:$0xff]   ;;  %v3869_v41 = vld [vmem:[#allocation7 + $0x24] ss:$40 sps:$4 sm:$0xff]  }
  0xaa   :  { %1599 = vmatprep.subr.bf16.mxu0 %v3773_v34  ;;  %v3878_v34 = vld [vmem:[#allocation7 + $0x51c] ss:$40 sps:$4 sm:$0xff]  }
  0xac   :  { %1704 = vmatpush1.bf16.msra.mxu1 %v3798_v44  ;;  %v3867_v44 = vld [vmem:[#allocation7 + $0x20] ss:$40 sps:$4 sm:$0xff]  }
  0xad   :  { %1600 = vmatpush1.bf16.msra.mxu0 %v3771_v37  ;;  %1705 = vmatprep.subr.bf16.mxu1 %v3806_v45  ;;  %v3876_v37 = vld [vmem:[#allocation7 + $0x518] ss:$40 sps:$4 sm:$0xff]   ;;  %v3875_v45 = vld [vmem:[#allocation7 + $0x74] ss:$40 sps:$4 sm:$0xff]  }
  0xae   :  { %1601 = vmatprep.subr.bf16.mxu0 %v3779_v39  ;;  %v3884_v39 = vld [vmem:[#allocation7 + $0x56c] ss:$40 sps:$4 sm:$0xff]  }
  0xb0   :  { %1706 = vmatpush1.bf16.msra.mxu1 %v3804_v48  ;;  %v3873_v48 = vld [vmem:[#allocation7 + $0x70] ss:$40 sps:$4 sm:$0xff]  }
  0xb1   :  { %1602 = vmatpush1.bf16.msra.mxu0 %v3777_v42  ;;  %1707 = vmatprep.subr.bf16.mxu1 %v3812_v49  ;;  %v3882_v42 = vld [vmem:[#allocation7 + $0x568] ss:$40 sps:$4 sm:$0xff]   ;;  %v3881_v49 = vld [vmem:[#allocation7 + $0xc4] ss:$40 sps:$4 sm:$0xff]  }
  0xb2   :  { %1603 = vmatprep.subr.bf16.mxu0 %v3785_v43  ;;  %v3890_v43 = vld [vmem:[#allocation7 + $0x5bc] ss:$40 sps:$4 sm:$0xff]  }
  0xb4   :  { %1708 = vmatpush1.bf16.msra.mxu1 %v3810_v52  ;;  %v3893_v52 = vld [vmem:[#allocation7 + $0x164] ss:$40 sps:$4 sm:$0xff]  }
  0xb5   :  { %1604 = vmatpush1.bf16.msra.mxu0 %v3783_v46  ;;  %1709 = vmatprep.subr.bf16.mxu1 %v3818_v53  ;;  %v3888_v46 = vld [vmem:[#allocation7 + $0x5b8] ss:$40 sps:$4 sm:$0xff]   ;;  %v4064_v53 = vld [vmem:[#allocation2 + $0x4] ss:$12 sps:$4 sm:$0xff]  }
  0xb6   :  { %1605 = vmatprep.subr.bf16.mxu0 %v3791_v47  ;;  %v3896_v47 = vld [vmem:[#allocation7 + $0x60c] ss:$40 sps:$4 sm:$0xff]  }
  0xb8   :  { %1710 = vmatpush1.bf16.msra.mxu1 %v3816_v55  ;;  %v3902_v55 = vld [vmem:[#allocation7 + $0x204] ss:$40 sps:$4 sm:$0xff]  }
  0xb9   :  { %1606 = vmatpush1.bf16.msra.mxu0 %v3789_v50  ;;  %1711 = vmatprep.subr.bf16.mxu1 %v3824_v56  ;;  %v3887_v50 = vld [vmem:[#allocation7 + $0x114] ss:$40 sps:$4 sm:$0xff]   ;;  %v3900_v56 = vld [vmem:[#allocation7 + $0x200] ss:$40 sps:$4 sm:$0xff]  }
  0xba   :  { %1607 = vmatprep.subr.bf16.mxu0 %v3797_v51  ;;  %v3885_v51 = vld [vmem:[#allocation7 + $0x110] ss:$40 sps:$4 sm:$0xff]  }
  0xbc   :  { %1712 = vmatpush1.bf16.msra.mxu1 %v3822_v59  ;;  %v3906_v59 = vld [vmem:[#allocation7 + $0x2a0] ss:$40 sps:$4 sm:$0xff]  }
  0xbd   :  { %1608 = vmatpush1.bf16.msra.mxu0 %v3795_v38  ;;  %1713 = vmatprep.subr.bf16.mxu1 %v3830_v60  ;;  %v3899_v38 = vld [vmem:[#allocation7 + $0x1b4] ss:$40 sps:$4 sm:$0xff]  }
  0xbe   :  { %1609 = vmatprep.subr.bf16.mxu0 %v3803_v54  ;;  %v3897_v54 = vld [vmem:[#allocation7 + $0x1b0] ss:$40 sps:$4 sm:$0xff]   ;;  %v3911_v60 = vld [vmem:[#allocation7 + $0x2f4] ss:$40 sps:$4 sm:$0xff]  }
  0xc0   :  { %1714 = vmatpush1.bf16.msra.mxu1 %v3828_v0  ;;  %v3912_v0 = vld [vmem:[#allocation7 + $0x340] ss:$40 sps:$4 sm:$0xff]  }
  0xc1   :  { %1610 = vmatpush1.bf16.msra.mxu0 %v3801_v57  ;;  %1715 = vmatprep.subr.bf16.mxu1 %v3836_v2  ;;  %v3905_v57 = vld [vmem:[#allocation7 + $0x254] ss:$40 sps:$4 sm:$0xff]  }
  0xc2   :  { %1611 = vmatprep.subr.bf16.mxu0 %v3809_v58  ;;  %v3908_v58 = vld [vmem:[#allocation7 + $0x2a4] ss:$40 sps:$4 sm:$0xff]   ;;  %v3917_v2 = vld [vmem:[#allocation7 + $0x394] ss:$40 sps:$4 sm:$0xff]  }
  0xc4   :  { %1716 = vmatpush1.bf16.msra.mxu1 %v3834_v5  ;;  %v3918_v5 = vld [vmem:[#allocation7 + $0x3e0] ss:$40 sps:$4 sm:$0xff]  }
  0xc5   :  { %1612 = vmatpush1.bf16.msra.mxu0 %v3807_v61  ;;  %1717 = vmatprep.subr.bf16.mxu1 %v3842_v6  ;;  %v3909_v61 = vld [vmem:[#allocation7 + $0x2f0] ss:$40 sps:$4 sm:$0xff]   ;;  %v3923_v6 = vld [vmem:[#allocation7 + $0x434] ss:$40 sps:$4 sm:$0xff]  }
  0xc6   :  { %1613 = vmatprep.subr.bf16.mxu0 %v3815_v62  ;;  %v3914_v62 = vld [vmem:[#allocation7 + $0x344] ss:$40 sps:$4 sm:$0xff]  }
  0xc8   :  { %1718 = vmatpush1.bf16.msra.mxu1 %v3840_v10  ;;  %v3924_v10 = vld [vmem:[#allocation7 + $0x480] ss:$40 sps:$4 sm:$0xff]  }
  0xc9   :  { %1614 = vmatpush1.bf16.msra.mxu0 %v3813_v3  ;;  %1719 = vmatprep.subr.bf16.mxu1 %v3848_v11  ;;  %v3915_v3 = vld [vmem:[#allocation7 + $0x390] ss:$40 sps:$4 sm:$0xff]   ;;  %v3929_v11 = vld [vmem:[#allocation7 + $0x4d4] ss:$40 sps:$4 sm:$0xff]  }
  0xca   :  { %1615 = vmatprep.subr.bf16.mxu0 %v3821_v4  ;;  %v3920_v4 = vld [vmem:[#allocation7 + $0x3e4] ss:$40 sps:$4 sm:$0xff]  }
  0xcc   :  { %1720 = vmatpush1.bf16.msra.mxu1 %v3846_v14  ;;  %v3930_v14 = vld [vmem:[#allocation7 + $0x520] ss:$40 sps:$4 sm:$0xff]  }
  0xcd   :  { %1616 = vmatpush1.bf16.msra.mxu0 %v3819_v7  ;;  %1721 = vmatprep.subr.bf16.mxu1 %v3854_v16  ;;  %v3921_v7 = vld [vmem:[#allocation7 + $0x430] ss:$40 sps:$4 sm:$0xff]   ;;  %v3935_v16 = vld [vmem:[#allocation7 + $0x574] ss:$40 sps:$4 sm:$0xff]  }
  0xce   :  { %1617 = vmatprep.subr.bf16.mxu0 %v3827_v8  ;;  %v3926_v8 = vld [vmem:[#allocation7 + $0x484] ss:$40 sps:$4 sm:$0xff]  }
  0xd0   :  { %1722 = vmatpush1.bf16.msra.mxu1 %v3852_v21  ;;  %v3938_v21 = vld [vmem:[#allocation7 + $0x5c4] ss:$40 sps:$4 sm:$0xff]  }
  0xd1   :  { %1618 = vmatpush1.bf16.msra.mxu0 %v3825_v12  ;;  %1723 = vmatprep.subr.bf16.mxu1 %v3860_v23  ;;  %v3927_v12 = vld [vmem:[#allocation7 + $0x4d0] ss:$40 sps:$4 sm:$0xff]   ;;  %v3941_v23 = vld [vmem:[#allocation7 + $0x614] ss:$40 sps:$4 sm:$0xff]  }
  0xd2   :  { %1619 = vmatprep.subr.bf16.mxu0 %v3833_v13  ;;  %v3932_v13 = vld [vmem:[#allocation7 + $0x524] ss:$40 sps:$4 sm:$0xff]  }
  0xd4   :  { %1724 = vmatpush1.bf16.msra.mxu1 %v3858_v24  ;;  %v4067_v24 = vld [vmem:[#allocation2 + $0x18] ss:$12 sps:$4 sm:$0xff]  }
  0xd5   :  { %1620 = vmatpush1.bf16.msra.mxu0 %v3831_v18  ;;  %1725 = vmatprep.subr.bf16.mxu1 %v3866_v25  ;;  %v4065_v18 = vld [vmem:[#allocation2] ss:$12 sps:$4 sm:$0xff]  }
  0xd6   :  { %1621 = vmatprep.subr.bf16.mxu0 %v3839_v19  ;;  %v3933_v19 = vld [vmem:[#allocation7 + $0x570] ss:$40 sps:$4 sm:$0xff]  }
  0xd7   :  { %v3939_v25 = vld [vmem:[#allocation7 + $0x610] ss:$40 sps:$4 sm:$0xff]  }
  0xd8   :  { %1726 = vmatpush1.bf16.msra.mxu1 %v3864_v29 }
  0xd9   :  { %1622 = vmatpush1.bf16.msra.mxu0 %v3837_v20  ;;  %1727 = vmatprep.subr.bf16.mxu1 %v3872_v30  ;;  %v4066_v20 = vld [vmem:[#allocation2 + $0x1c] ss:$12 sps:$4 sm:$0xff]  }
  0xda   :  { %1644 = vmatprep.subr.bf16.mxu0 %v3845_v22  ;;  %v3936_v22 = vld [vmem:[#allocation7 + $0x5c0] ss:$40 sps:$4 sm:$0xff]  }
  0xdc   :  { %1624 = vmatmul.mubr.bf16.vlgmr.msra.gmra.mrb[8].mxu0 %v4293_v63  ;;  %1728 = vmatpush1.bf16.msra.mxu1 %v3870_v33 }
  0xdd   :  { %1645 = vmatpush1.bf16.msra.mxu0 %v3843_v27  ;;  %1633 = vmatprep.mubr.bf16.mxu0 %v4295_v1  ;;  %v4068_v27 = vld [vmem:[#allocation2 + $0x8] ss:$12 sps:$4 sm:$0xff]  }
  0xde   :  { %1646 = vmatprep.subr.bf16.mxu0 %v3851_v28  ;;  %1750 = vmatprep.subr.bf16.mxu1 %v3878_v34  ;;  %v292_v28 = vlaneseq }
  0xdf   :  { %1730 = vmatmul.mubr.bf16.vlgmr.msra.gmra.mrb[8].mxu1 %v4293_v63  ;;  %v3894_v63 = vld [vmem:[#allocation7 + $0x608] ss:$40 sps:$4 sm:$0xff]  }
  0xe0   :  { %1751 = vmatpush1.bf16.msra.mxu1 %v3876_v37  ;;  %1739 = vmatprep.mubr.bf16.mxu1 %v4295_v1  ;;  %v3879_v1 = vld [vmem:[#allocation7 + $0xc0] ss:$40 sps:$4 sm:$0xff]   ;;  %v4347_v29 = vshrl.u32 %v292_v28, 7 }
  0xe1   :  { %1647 = vmatpush1.bf16.msra.mxu0 %v3849_v31  ;;  %1752 = vmatprep.subr.bf16.mxu1 %v3884_v39  ;;  %v4353_v31 = vld [vmem:[%s4423_s3] sm:$0xff] }
  0xe2   :  { %1648 = vmatprep.subr.bf16.mxu0 %v3857_v32  ;;  %v294_v30 = vsub.s32 0, %v4347_v29  ;;  %v298_v32 = vsub.s32 1, %v4347_v29 }
  0xe4   :  { %1634 = vmatmul.mubr.bf16.gmra.mrb[12].mxu0 %v4299_v9  ;;  %1753 = vmatpush1.bf16.msra.mxu1 %v3882_v42  ;;  %v295_v33 = vrot.slane %v4353_v31, %v294_v30 }
  0xe5   :  { %1649 = vmatpush1.bf16.msra.mxu0 %v3855_v35  ;;  %1676 = vmatprep.mubr.bf16.mxu0 %v4197_v15 }
  0xe6   :  { %1650 = vmatprep.subr.bf16.mxu0 %v3863_v36  ;;  %1754 = vmatprep.subr.bf16.mxu1 %v3890_v43 }
  0xe7   :  { %1740 = vmatmul.mubr.bf16.gmra.mrb[12].mxu1 %v4299_v9  ;;  %v3891_v9 = vld [vmem:[#allocation7 + $0x160] ss:$40 sps:$4 sm:$0xff]  }
  0xe8   :  { %1755 = vmatpush1.bf16.msra.mxu1 %v3888_v46  ;;  %1782 = vmatprep.mubr.bf16.mxu1 %v4197_v15 }
  0xe9   :  { %1651 = vmatpush1.bf16.msra.mxu0 %v3861_v40  ;;  %1756 = vmatprep.subr.bf16.mxu1 %v3896_v47 }
  0xea   :  { %1803 = vmatprep.subr.bf16.mxu0 %v3869_v41  ;;  %v302_v41 = vsub.s32 2, %v4347_v29 }
  0xec   :  { %3340 = vmatmul.mubr.msk.bf16.vlgmr.msra.gmra.mrb[8].mxu0 %vm1372_vm0, %v4304_v17  ;;  %1757 = vmatpush1.bf16.msra.mxu1 %v3894_v63 }
  0xed   :  { %1804 = vmatpush1.bf16.msra.mxu0 %v3867_v44  ;;  %1686 = vmatprep.mubr.bf16.mxu0 %v4197_v15  ;;  %v306_v44 = vsub.s32 3, %v4347_v29 }
  0xee   :  { %1805 = vmatprep.subr.bf16.mxu0 %v3875_v45 }
  0xef   :  { %3342 = vmatmul.mubr.msk.bf16.vlgmr.msra.gmra.mrb[8].mxu1 %vm1372_vm0, %v4304_v17  ;;  %v3903_v17 = vld [vmem:[#allocation7 + $0x250] ss:$40 sps:$4 sm:$0xff]  }
  0xf0   :  { %1792 = vmatprep.mubr.bf16.mxu1 %v4197_v15 }
  0xf1   :  { %1806 = vmatpush1.bf16.msra.mxu0 %v3873_v48  ;;  %v303_v48 = vrot.slane %v4353_v31, %v302_v41 }
  0xf2   :  { %1807 = vmatprep.subr.bf16.mxu0 %v3881_v49 }
  0xf4   :  { %3341 = vmatmul.mubr.msk.bf16.gmra.mrb[12].mxu0 %vm1372_vm0, %v4311_v26 }
  0xf5   :  { %1808 = vmatpush1.bf16.msra.mxu0 %v3879_v1  ;;  %1835 = vmatprep.mubr.bf16.mxu0 %v4064_v53  ;;  %v307_v1 = vrot.slane %v4353_v31, %v306_v44 }
  0xf6   :  { %1809 = vmatprep.subr.bf16.mxu0 %v3887_v50 }
  0xf7   :  { %3343 = vmatmul.mubr.msk.bf16.gmra.mrb[12].mxu1 %vm1372_vm0, %v4311_v26 }
  0xf8   :  { %2066 = vmatprep.mubr.bf16.mxu1 %v4197_v15 }
  0xf9   :  { %1810 = vmatpush1.bf16.msra.mxu0 %v3885_v51 }
  0xfa   :  { %1811 = vmatprep.subr.bf16.mxu0 %v3893_v52 }
  0xfd   :  { %1812 = vmatpush1.bf16.msra.mxu0 %v3891_v9 }
  0xfe   :  { %1813 = vmatprep.subr.bf16.mxu0 %v3899_v38 }
 0x101   :  { %1814 = vmatpush1.bf16.msra.mxu0 %v3897_v54 }
 0x102   :  { %1815 = vmatprep.subr.bf16.mxu0 %v3902_v55 }
 0x105   :  { %1816 = vmatpush1.bf16.msra.mxu0 %v3900_v56 }
 0x106   :  { %1817 = vmatprep.subr.bf16.mxu0 %v3905_v57 }
 0x109   :  { %1818 = vmatpush1.bf16.msra.mxu0 %v3903_v17 }
 0x10a   :  { %1819 = vmatprep.subr.bf16.mxu0 %v3908_v58 }
 0x10d   :  { %1820 = vmatpush1.bf16.msra.mxu0 %v3906_v59 }
 0x10e   :  { %1821 = vmatprep.subr.bf16.mxu0 %v3911_v60 }
 0x111   :  { %1822 = vmatpush1.bf16.msra.mxu0 %v3909_v61 }
 0x112   :  { %1823 = vmatprep.subr.bf16.mxu0 %v3914_v62 }
 0x115   :  { %1824 = vmatpush1.bf16.msra.mxu0 %v3912_v0 }
 0x116   :  { %1825 = vmatprep.subr.bf16.mxu0 %v3917_v2 }
 0x119   :  { %1826 = vmatpush1.bf16.msra.mxu0 %v3915_v3 }
 0x11a   :  { %1827 = vmatprep.subr.bf16.mxu0 %v3920_v4 }
 0x11d   :  { %1828 = vmatpush1.bf16.msra.mxu0 %v3918_v5 }
 0x11e   :  { %1829 = vmatprep.subr.bf16.mxu0 %v3923_v6 }
 0x121   :  { %1830 = vmatpush1.bf16.msra.mxu0 %v3921_v7 }
 0x122   :  { %1831 = vmatprep.subr.bf16.mxu0 %v3926_v8 }
 0x125   :  { %1832 = vmatpush1.bf16.msra.mxu0 %v3924_v10 }
 0x126   :  { %1833 = vmatprep.subr.bf16.mxu0 %v3929_v11 }
 0x129   :  { %1834 = vmatpush1.bf16.msra.mxu0 %v3927_v12 }
 0x12a   :  { %1856 = vmatprep.subr.bf16.mxu0 %v3932_v13 }
 0x12c   :  { %1836 = vmatmul.mubr.bf16.vlgmr.msra.gmra.mrb[16].mxu0 %v4065_v18 }
 0x12d   :  { %1857 = vmatpush1.bf16.msra.mxu0 %v3930_v14  ;;  %1845 = vmatprep.mubr.bf16.mxu0 %v4066_v20 }
 0x12e   :  { %1858 = vmatprep.subr.bf16.mxu0 %v3935_v16 }
 0x131   :  { %1859 = vmatpush1.bf16.msra.mxu0 %v3933_v19 }
 0x132   :  { %1860 = vmatprep.subr.bf16.mxu0 %v3938_v21 }
 0x134   :  { %1846 = vmatmul.mubr.bf16.gmra.mrb[20].mxu0 %v4067_v24 }
 0x135   :  { %1861 = vmatpush1.bf16.msra.mxu0 %v3936_v22  ;;  %1888 = vmatprep.mubr.bf16.mxu0 %v4197_v15 }
 0x136   :  { %1862 = vmatprep.subr.bf16.mxu0 %v3941_v23 }
 0x139   :  { %1863 = vmatpush1.bf16.msra.mxu0 %v3939_v25 }
 0x13c   :  { %3344 = vmatmul.mubr.msk.bf16.vlgmr.msra.gmra.mrb[16].mxu0 %vm1372_vm0, %v4068_v27 }
 0x13d   :  { %1898 = vmatprep.mubr.bf16.mxu0 %v4197_v15 }
 0x144   :  { %3345 = vmatmul.mubr.msk.bf16.gmra.mrb[20].mxu0 %vm1372_vm0, %v4311_v26  ;;  %v299_v26 = vrot.slane %v4353_v31, %v298_v32 }
 0x16f   :  { %v1466_v34 = vpop.f32.mrb[0].mxu0 }
 0x170   :  { %v1468_v35 = vpop.f32.mrb[1].mxu0  ;;  %v3542_v37 = vadd.f32 %v1466_v34, %v295_v33 }
 0x171   :  { %v1470_v36 = vpop.f32.mrb[2].mxu0  ;;  %v3543_v42 = vadd.f32 %v1468_v35, %v299_v26 }
 0x172   :  { %v3544_v39 = vadd.f32 %v1470_v36, %v295_v33  ;;  %v1472_v40 = vpop.f32.mrb[3].mxu0  ;;  %v1572_v52 = vpop.f32.mrb[0].mxu1 }
 0x173   :  { %v3545_v43 = vadd.f32 %v1472_v40, %v299_v26  ;;  %v3550_v54 = vadd.f32 %v1572_v52, %v303_v48  ;;  %v1574_v55 = vpop.f32.mrb[1].mxu1 }
 0x174   :  { %v1909_v45 = vpack.c.bf16 %v3544_v39, %v3542_v37  ;;  %v3551_v17 = vadd.f32 %v1574_v55, %v307_v1  ;;  %v1576_v58 = vpop.f32.mrb[2].mxu1 }
 0x175   :  { %v1910_v46 = vpack.c.bf16 %v3545_v43, %v3543_v42  ;;  %v3552_v60 = vadd.f32 %v1576_v58, %v303_v48  ;;  %v1578_v61 = vpop.f32.mrb[3].mxu1  ;;  %v310_v58 = vsub.s32 4, %v4347_v29 }
 0x176   :  { %v1929_v47 = vmul.bf16 1056980736, %v1909_v45  ;;  %v3553_v0 = vadd.f32 %v1578_v61, %v307_v1  ;;  %v3949_v61 = vld [vmem:[#allocation8 + $0x88] sm:$0xff]  }
 0x177   :  { %v1930_v49 = vmul.bf16 1056980736, %v1910_v46  ;;  %v1476_v63 = vpop.f32.mrb[4].mxu0  ;;  %v1911_v3 = vpack.c.bf16 %v3552_v60, %v3550_v54  ;;  %v3948_v60 = vld [vmem:[#allocation8 + $0xc8] sm:$0xff]  }
 0x178   :  { %4022 = vtanh.bf16 %v1929_v47  ;;  %v1478_v50 = vpop.f32.mrb[5].mxu0  ;;  %v3546_v53 = vadd.f32 %v1476_v63, %v295_v33  ;;  %v1912_v5 = vpack.c.bf16 %v3553_v0, %v3551_v17  ;;  %v3945_v17 = vld [vmem:[#allocation8 + $0x80] sm:$0xff]  }
 0x179   :  { %4024 = vtanh.bf16 %v1930_v49  ;;  %v1480_v51 = vpop.f32.mrb[6].mxu0  ;;  %v3547_v56 = vadd.f32 %v1478_v50, %v299_v26  ;;  %v1931_v6 = vmul.bf16 1056980736, %v1911_v3  ;;  %v4366_v50 = vld [vmem:[#allocation5] sm:$0xf] }
 0x17a   :  { %v3548_v9 = vadd.f32 %v1480_v51, %v295_v33  ;;  %v1482_v38 = vpop.f32.mrb[7].mxu0  ;;  %v1932_v7 = vmul.bf16 1056980736, %v1912_v5  ;;  %v1582_v8 = vpop.f32.mrb[4].mxu1 }
 0x17b   :  { %v3549_v57 = vadd.f32 %v1482_v38, %v299_v26  ;;  %v3554_v10 = vadd.f32 %v1582_v8, %v303_v48  ;;  %v1584_v11 = vpop.f32.mrb[5].mxu1 }
 0x17c   :  { %v1919_v59 = vpack.c.bf16 %v3548_v9, %v3546_v53  ;;  %v3555_v13 = vadd.f32 %v1584_v11, %v307_v1  ;;  %v1586_v14 = vpop.f32.mrb[6].mxu1  ;;  %v318_v11 = vsub.s32 6, %v4347_v29 }
 0x17d   :  { %v1920_v62 = vpack.c.bf16 %v3549_v57, %v3547_v56  ;;  %v3556_v19 = vadd.f32 %v1586_v14, %v303_v48  ;;  %v1588_v20 = vpop.f32.mrb[7].mxu1  ;;  %v3944_v57 = vld [vmem:[#allocation8 + $0xc0] sm:$0xff]   ;;  %v322_v14 = vsub.s32 7, %v4347_v29 }
 0x17e   :  { %v1939_v2 = vmul.bf16 1056980736, %v1919_v59  ;;  %v3557_v22 = vadd.f32 %v1588_v20, %v307_v1  ;;  %3454 = vmatprep.subr.bf16.mxu0 %v3944_v57 }
 0x17f   :  { %v1940_v4 = vmul.bf16 1056980736, %v1920_v62  ;;  %v1921_v24 = vpack.c.bf16 %v3556_v19, %v3554_v10  ;;  %3455 = vmatpush3.bf16.msra.mxu0 %v3945_v17  ;;  %v3957_v19 = vld [vmem:[#allocation8 + $0x98] sm:$0xff]  }
 0x180   :  { %4026 = vtanh.bf16 %v1939_v2  ;;  %v1922_v27 = vpack.c.bf16 %v3557_v22, %v3555_v13  ;;  %3456 = vmatprep.subr.bf16.mxu0 %v3948_v60  ;;  %v319_v22 = vrot.slane %v4353_v31, %v318_v11 }
 0x181   :  { %4028 = vtanh.bf16 %v1940_v4  ;;  %v1941_v28 = vmul.bf16 1056980736, %v1921_v24  ;;  %v3952_v4 = vld [vmem:[#allocation8 + $0xd0] sm:$0xff]  }
 0x182   :  { %4030 = vtanh.bf16 %v1931_v6  ;;  %v1942_v34 = vmul.bf16 1056980736, %v1922_v27 }
 0x183   :  { %v4023_v12 = vpop.eup %4022  ;;  %4032 = vtanh.bf16 %v1932_v7  ;;  %3457 = vmatpush3.bf16.msra.mxu0 %v3949_v61 }
 0x184   :  { %v4025_v16 = vpop.eup %4024  ;;  %v1969_v18 = vadd.bf16 1065369472, %v4023_v12  ;;  %4034 = vtanh.bf16 %v1941_v28  ;;  %3458 = vmatprep.subr.bf16.mxu0 %v3952_v4  ;;  %v3960_v28 = vld [vmem:[#allocation8 + $0xe0] sm:$0xff]  }
 0x185   :  { %v1970_v21 = vadd.bf16 1065369472, %v4025_v16  ;;  %4036 = vtanh.bf16 %v1942_v34 }
 0x186   :  { %v1989_v23 = vmul.bf16 1056980736, %v1969_v18  ;;  %v3956_v18 = vld [vmem:[#allocation8 + $0xd8] sm:$0xff]  }
 0x187   :  { %v1990_v25 = vmul.bf16 1056980736, %v1970_v21 }
 0x188   :  { %v2009_v26 = vmul.bf16 %v1989_v23, %v1909_v45 }
 0x189   :  { %v2010_v33 = vmul.bf16 %v1990_v25, %v1910_v46  ;;  %v323_v25 = vrot.slane %v4353_v31, %v322_v14 }
 0x18b   :  { %v4027_v35 = vpop.eup %4026  ;;  %2034 = vmatprep.subr.bf16.mxu1 %v2010_v33  ;;  %v3961_v33 = vld [vmem:[#allocation8 + $0xa0] sm:$0xff]  }
 0x18c   :  { %v4029_v36 = vpop.eup %4028  ;;  %v1979_v37 = vadd.bf16 1065369472, %v4027_v35  ;;  %2035 = vmatpush1.bf16.msra.mxu1 %v2009_v26 }
 0x18d   :  { %v4031_v39 = vpop.eup %4030  ;;  %v1980_v40 = vadd.bf16 1065369472, %v4029_v36 }
 0x18e   :  { %v4033_v41 = vpop.eup %4032  ;;  %v1999_v42 = vmul.bf16 1056980736, %v1979_v37  ;;  %v1971_v43 = vadd.bf16 1065369472, %v4031_v39 }
 0x18f   :  { %v2000_v44 = vmul.bf16 1056980736, %v1980_v40  ;;  %v1972_v47 = vadd.bf16 1065369472, %v4033_v41  ;;  %v4035_v51 = vpop.eup %4034 }
 0x190   :  { %v1991_v48 = vmul.bf16 1056980736, %v1971_v43  ;;  %v2019_v46 = vmul.bf16 %v1999_v42, %v1919_v59  ;;  %v4037_v52 = vpop.eup %4036  ;;  %v1981_v53 = vadd.bf16 1065369472, %v4035_v51  ;;  %v314_v59 = vsub.s32 5, %v4347_v29 }
 0x191   :  { %v2020_v49 = vmul.bf16 %v2000_v44, %v1920_v62  ;;  %v1992_v63 = vmul.bf16 1056980736, %v1972_v47  ;;  %v1982_v9 = vadd.bf16 1065369472, %v4037_v52  ;;  %v311_v62 = vrot.slane %v4353_v31, %v310_v58 }
 0x192   :  { %v2011_v1 = vmul.bf16 %v1991_v48, %v1911_v3  ;;  %v2001_v38 = vmul.bf16 1056980736, %v1981_v53  ;;  %v315_v2 = vrot.slane %v4353_v31, %v314_v59 }
 0x193   :  { %2036 = vmatprep.subr.bf16.mxu1 %v2020_v49  ;;  %v2012_v45 = vmul.bf16 %v1992_v63, %v1912_v5  ;;  %v2002_v54 = vmul.bf16 1056980736, %v1982_v9  ;;  %v3953_v5 = vld [vmem:[#allocation8 + $0x90] sm:$0xff]   ;;  %v3964_v49 = vld [vmem:[#allocation8 + $0xe8] sm:$0xff]  }
 0x194   :  { %2037 = vmatpush1.bf16.msra.mxu1 %v2019_v46  ;;  %v2021_v55 = vmul.bf16 %v2001_v38, %v1921_v24  ;;  %3459 = vmatpush3.bf16.msra.mxu0 %v3953_v5  ;;  %v3965_v63 = vld [vmem:[#allocation8 + $0xa8] sm:$0xff]  }
 0x195   :  { %2075 = vmatprep.subr.bf16.mxu1 %v2012_v45  ;;  %v2022_v56 = vmul.bf16 %v2002_v54, %v1922_v27  ;;  %3460 = vmatprep.subr.bf16.mxu0 %v3956_v18 }
 0x197   :  { %3346 = vmatmul.mubr.msk.bf16.vlgmr.msra.gmra.mrb[16].mxu1 %vm2030_vm1, %v4366_v50 }
 0x198   :  { %2076 = vmatpush1.bf16.msra.mxu1 %v2011_v1  ;;  %2107 = vmatprep.mubr.bf16.mxu1 %v4197_v15 }
 0x199   :  { %2077 = vmatprep.subr.bf16.mxu1 %v2022_v56  ;;  %3461 = vmatpush3.bf16.msra.mxu0 %v3957_v19 }
 0x19a   :  { %3462 = vmatprep.subr.bf16.mxu0 %v3960_v28 }
 0x19c   :  { %2078 = vmatpush1.bf16.msra.mxu1 %v2021_v55 }
 0x19d   :  { %3463 = vmatpush3.bf16.msra.mxu0 %v3961_v33 }
 0x19e   :  { %3464 = vmatprep.subr.bf16.mxu0 %v3964_v49  ;;  %v289_v49 = vld [vmem:[%s4423_s3 + $0x8] sm:$0x3] }
 0x19f   :  { %3347 = vmatmul.mubr.msk.bf16.vlgmr.msra.gmra.mrb[20].mxu1 %vm2030_vm1, %v4366_v50 }
 0x1a0   :  { %2148 = vmatprep.mubr.bf16.mxu1 %v4197_v15 }
 0x1a1   :  { %3465 = vmatpush3.bf16.msra.mxu0 %v3965_v63  ;;  %v327_v63 = vrot.slane %v289_v49, %v294_v30 }
 0x1bf   :  { %v1678_v0 = vpop.f32.mrb[8].mxu0 }
 0x1c0   :  { %v1680_v3 = vpop.f32.mrb[9].mxu0  ;;  %v3558_v7 = vadd.f32 %v1678_v0, %v311_v62 }
 0x1c1   :  { %v1682_v6 = vpop.f32.mrb[10].mxu0  ;;  %v3559_v12 = vadd.f32 %v1680_v3, %v315_v2 }
 0x1c2   :  { %v3560_v8 = vadd.f32 %v1682_v6, %v311_v62  ;;  %v1684_v10 = vpop.f32.mrb[11].mxu0  ;;  %v1784_v26 = vpop.f32.mrb[8].mxu1 }
 0x1c3   :  { %v3561_v13 = vadd.f32 %v1684_v10, %v315_v2  ;;  %v3566_v39 = vadd.f32 %v1784_v26, %v319_v22  ;;  %v1786_v40 = vpop.f32.mrb[9].mxu1 }
 0x1c4   :  { %v4380_v16 = vpack.c.bf16 %v3560_v8, %v3558_v7  ;;  %v3567_v43 = vadd.f32 %v1786_v40, %v323_v25  ;;  %v1788_v44 = vpop.f32.mrb[10].mxu1 }
 0x1c5   :  { %v4382_v20 = vpack.c.bf16 %v3561_v13, %v3559_v12  ;;  %v3568_v47 = vadd.f32 %v1788_v44, %v319_v22  ;;  %v1790_v48 = vpop.f32.mrb[11].mxu1  ;;  %v3969_v44 = vld [vmem:[#allocation8 + $0xb0] sm:$0xff]  }
 0x1c6   :  { %v1933_v21 = vmul.bf16 1056980736, %v4380_v16  ;;  %v3569_v45 = vadd.f32 %v1790_v48, %v323_v25  ;;  %v3976_v48 = vld [vmem:[#allocation8 + $0x1c0] sm:$0xff]  }
 0x1c7   :  { %v1934_v23 = vmul.bf16 1056980736, %v4382_v20  ;;  %v1688_v24 = vpop.f32.mrb[12].mxu0  ;;  %v1915_v51 = vpack.c.bf16 %v3568_v47, %v3566_v39  ;;  %v3973_v47 = vld [vmem:[#allocation8 + $0xb8] sm:$0xff]  }
 0x1c8   :  { %4038 = vtanh.bf16 %v1933_v21  ;;  %v1690_v27 = vpop.f32.mrb[13].mxu0  ;;  %v3562_v35 = vadd.f32 %v1688_v24, %v311_v62  ;;  %v1916_v53 = vpack.c.bf16 %v3569_v45, %v3567_v43  ;;  %v3968_v43 = vld [vmem:[#allocation8 + $0xf0] sm:$0xff]   ;;  %v331_v45 = vrot.slane %v289_v49, %v298_v32 }
 0x1c9   :  { %4040 = vtanh.bf16 %v1934_v23  ;;  %v1692_v34 = vpop.f32.mrb[14].mxu0  ;;  %v3563_v41 = vadd.f32 %v1690_v27, %v315_v2  ;;  %v1935_v9 = vmul.bf16 1056980736, %v1915_v51  ;;  %3466 = vmatprep.subr.bf16.mxu0 %v3968_v43  ;;  %v3974_v43 = vld [vmem:[#allocation8 + $0x140] sm:$0xff]  }
 0x1ca   :  { %v3564_v36 = vadd.f32 %v1692_v34, %v311_v62  ;;  %v1694_v37 = vpop.f32.mrb[15].mxu0  ;;  %v1936_v38 = vmul.bf16 1056980736, %v1916_v53  ;;  %v1794_v54 = vpop.f32.mrb[12].mxu1  ;;  %3467 = vmatpush3.bf16.msra.mxu0 %v3969_v44 }
 0x1cb   :  { %v3565_v42 = vadd.f32 %v1694_v37, %v315_v2  ;;  %v3570_v55 = vadd.f32 %v1794_v54, %v319_v22  ;;  %v1796_v56 = vpop.f32.mrb[13].mxu1 }
 0x1cc   :  { %v1923_v31 = vpack.c.bf16 %v3564_v36, %v3562_v35  ;;  %v3571_v17 = vadd.f32 %v1796_v56, %v323_v25  ;;  %v1798_v58 = vpop.f32.mrb[14].mxu1 }
 0x1cd   :  { %v1924_v46 = vpack.c.bf16 %v3565_v42, %v3563_v41  ;;  %v3572_v61 = vadd.f32 %v1798_v58, %v319_v22  ;;  %v1800_v62 = vpop.f32.mrb[15].mxu1 }
 0x1ce   :  { %v1943_v1 = vmul.bf16 1056980736, %v1923_v31  ;;  %v3573_v2 = vadd.f32 %v1800_v62, %v323_v25 }
 0x1cf   :  { %v1944_v52 = vmul.bf16 1056980736, %v1924_v46  ;;  %v1925_v4 = vpack.c.bf16 %v3572_v61, %v3570_v55 }
 0x1d0   :  { %4042 = vtanh.bf16 %v1943_v1  ;;  %v1926_v6 = vpack.c.bf16 %v3573_v2, %v3571_v17 }
 0x1d1   :  { %4044 = vtanh.bf16 %v1944_v52  ;;  %v1945_v7 = vmul.bf16 1056980736, %v1925_v4 }
 0x1d2   :  { %4046 = vtanh.bf16 %v1935_v9  ;;  %v1946_v10 = vmul.bf16 1056980736, %v1926_v6 }
 0x1d3   :  { %v4039_v57 = vpop.eup %4038  ;;  %4048 = vtanh.bf16 %v1936_v38 }
 0x1d4   :  { %v4041_v59 = vpop.eup %4040  ;;  %v1973_v60 = vadd.bf16 1065369472, %v4039_v57  ;;  %4050 = vtanh.bf16 %v1945_v7 }
 0x1d5   :  { %v1974_v0 = vadd.bf16 1065369472, %v4041_v59  ;;  %4052 = vtanh.bf16 %v1946_v10 }
 0x1d6   :  { %v1993_v3 = vmul.bf16 1056980736, %v1973_v60 }
 0x1d7   :  { %v1994_v5 = vmul.bf16 1056980736, %v1974_v0 }
 0x1d8   :  { %v2013_v11 = vmul.bf16 %v1993_v3, %v4380_v16 }
 0x1d9   :  { %v2014_v8 = vmul.bf16 %v1994_v5, %v4382_v20 }
 0x1db   :  { %v4043_v12 = vpop.eup %4042  ;;  %2116 = vmatprep.subr.bf16.mxu1 %v2014_v8 }
 0x1dc   :  { %v4045_v13 = vpop.eup %4044  ;;  %v1983_v14 = vadd.bf16 1065369472, %v4043_v12  ;;  %2117 = vmatpush1.bf16.msra.mxu1 %v2013_v11 }
 0x1dd   :  { %v4047_v18 = vpop.eup %4046  ;;  %v1984_v19 = vadd.bf16 1065369472, %v4045_v13 }
 0x1de   :  { %v4049_v21 = vpop.eup %4048  ;;  %v2003_v22 = vmul.bf16 1056980736, %v1983_v14  ;;  %v1975_v23 = vadd.bf16 1065369472, %v4047_v18 }
 0x1df   :  { %v2004_v24 = vmul.bf16 1056980736, %v1984_v19  ;;  %v1976_v25 = vadd.bf16 1065369472, %v4049_v21  ;;  %v4051_v26 = vpop.eup %4050 }
 0x1e0   :  { %v1995_v27 = vmul.bf16 1056980736, %v1975_v23  ;;  %v2023_v33 = vmul.bf16 %v2003_v22, %v1923_v31  ;;  %v4053_v35 = vpop.eup %4052  ;;  %v1985_v36 = vadd.bf16 1065369472, %v4051_v26  ;;  %v3972_v31 = vld [vmem:[#allocation8 + $0xf8] sm:$0xff]  }
 0x1e1   :  { %v2024_v28 = vmul.bf16 %v2004_v24, %v1924_v46  ;;  %v1996_v20 = vmul.bf16 1056980736, %v1976_v25  ;;  %v1986_v37 = vadd.bf16 1065369472, %v4053_v35  ;;  %3468 = vmatprep.subr.bf16.mxu0 %v3972_v31  ;;  %v3942_v24 = vld [vmem:[#allocation8 + $0x40] sm:$0xff]   ;;  %v3955_v26 = vld [vmem:[#allocation8 + $0x18] sm:$0xff]  }
 0x1e2   :  { %v2015_v34 = vmul.bf16 %v1995_v27, %v1915_v51  ;;  %v2005_v39 = vmul.bf16 1056980736, %v1985_v36  ;;  %3469 = vmatpush3.bf16.msra.mxu0 %v3973_v47  ;;  %v3943_v27 = vld [vmem:[#allocation8] sm:$0xff]  }
 0x1e3   :  { %2118 = vmatprep.subr.bf16.mxu1 %v2024_v28  ;;  %v2016_v16 = vmul.bf16 %v1996_v20, %v1916_v53  ;;  %v2006_v40 = vmul.bf16 1056980736, %v1986_v37  ;;  %3498 = vmatprep.subr.bf16.mxu0 %v3976_v48  ;;  %v3946_v28 = vld [vmem:[#allocation8 + $0x48] sm:$0xff]   ;;  %v3958_v35 = vld [vmem:[#allocation8 + $0x60] sm:$0xff]  }
 0x1e4   :  { %2119 = vmatpush1.bf16.msra.mxu1 %v2023_v33  ;;  %v2025_v41 = vmul.bf16 %v2005_v39, %v1925_v4  ;;  %v3947_v20 = vld [vmem:[#allocation8 + $0x8] sm:$0xff]   ;;  %v3950_v33 = vld [vmem:[#allocation8 + $0x50] sm:$0xff]   ;;  %v3959_v36 = vld [vmem:[#allocation8 + $0x20] sm:$0xff]  }
 0x1e5   :  { %2157 = vmatprep.subr.bf16.mxu1 %v2016_v16  ;;  %v2026_v42 = vmul.bf16 %v2006_v40, %v1926_v6  ;;  %v3951_v16 = vld [vmem:[#allocation8 + $0x10] sm:$0xff]   ;;  %v3962_v37 = vld [vmem:[#allocation8 + $0x68] sm:$0xff]  }
 0x1e6   :  { %v3963_v39 = vld [vmem:[#allocation8 + $0x28] sm:$0xff]   ;;  %v3967_v40 = vld [vmem:[#allocation8 + $0x30] sm:$0xff]  }
 0x1e7   :  { %3348 = vmatmul.mubr.msk.bf16.vlgmr.msra.gmra.mrb[24].mxu1 %vm2030_vm1, %v4366_v50 }
 0x1e8   :  { %2158 = vmatpush1.bf16.msra.mxu1 %v2015_v34  ;;  %2189 = vmatprep.mubr.bf16.mxu1 %v4197_v15  ;;  %v3954_v34 = vld [vmem:[#allocation8 + $0x58] sm:$0xff]  }
 0x1e9   :  { %2159 = vmatprep.subr.bf16.mxu1 %v2026_v42  ;;  %v3971_v42 = vld [vmem:[#allocation8 + $0x38] sm:$0xff]  }
 0x1ec   :  { %2160 = vmatpush1.bf16.msra.mxu1 %v2025_v41  ;;  %v3970_v41 = vld [vmem:[#allocation8 + $0x78] sm:$0xff]  }
 0x1ef   :  { %3349 = vmatmul.mubr.msk.bf16.vlgmr.msra.gmra.mrb[28].mxu1 %vm2030_vm1, %v4366_v50 }
 0x1f0   :  { %2230 = vmatprep.mubr.bf16.mxu1 %v4197_v15 }
 0x20f   :  { %v1890_v46 = vpop.f32.mrb[16].mxu0 }
 0x210   :  { %v1892_v1 = vpop.f32.mrb[17].mxu0  ;;  %v3574_v15 = vadd.f32 %v1890_v46, %v327_v63 }
 0x211   :  { %v1894_v51 = vpop.f32.mrb[18].mxu0  ;;  %v3575_v9 = vadd.f32 %v1892_v1, %v331_v45  ;;  %v3975_v1 = vld [vmem:[#allocation8 + $0x100] sm:$0xff]  }
 0x212   :  { %v3576_v52 = vadd.f32 %v1894_v51, %v327_v63  ;;  %v1896_v53 = vpop.f32.mrb[19].mxu0  ;;  %v3978_v51 = vld [vmem:[#allocation8 + $0x148] sm:$0xff]  }
 0x213   :  { %v3577_v38 = vadd.f32 %v1896_v53, %v331_v45 }
 0x214   :  { %v1917_v54 = vpack.c.bf16 %v3576_v52, %v3574_v15  ;;  %v3979_v15 = vld [vmem:[#allocation8 + $0x108] sm:$0xff]   ;;  %v3982_v52 = vld [vmem:[#allocation8 + $0x150] sm:$0xff]  }
 0x215   :  { %v1918_v55 = vpack.c.bf16 %v3577_v38, %v3575_v9 }
 0x216   :  { %v1937_v56 = vmul.bf16 1056980736, %v1917_v54 }
 0x217   :  { %v1938_v57 = vmul.bf16 1056980736, %v1918_v55  ;;  %v1900_v17 = vpop.f32.mrb[20].mxu0 }
 0x218   :  { %4054 = vtanh.bf16 %v1937_v56  ;;  %v1902_v58 = vpop.f32.mrb[21].mxu0  ;;  %v3578_v59 = vadd.f32 %v1900_v17, %v327_v63  ;;  %v3986_v17 = vld [vmem:[#allocation8 + $0x158] sm:$0xff]  }
 0x219   :  { %4056 = vtanh.bf16 %v1938_v57  ;;  %v1904_v30 = vpop.f32.mrb[22].mxu0  ;;  %v3579_v32 = vadd.f32 %v1902_v58, %v331_v45 }
 0x21a   :  { %v3580_v60 = vadd.f32 %v1904_v30, %v327_v63  ;;  %v1906_v29 = vpop.f32.mrb[23].mxu0 }
 0x21b   :  { %v3581_v61 = vadd.f32 %v1906_v29, %v331_v45  ;;  %v3987_v29 = vld [vmem:[#allocation8 + $0x118] sm:$0xff]  }
 0x21c   :  { %v1927_v62 = vpack.c.bf16 %v3580_v60, %v3578_v59  ;;  %v3977_v59 = vld [vmem:[#allocation8 + $0x180] sm:$0xff]   ;;  %v3980_v60 = vld [vmem:[#allocation8 + $0x1c8] sm:$0xff]  }
 0x21d   :  { %v1928_v0 = vpack.c.bf16 %v3581_v61, %v3579_v32  ;;  %v3990_v32 = vld [vmem:[#allocation8 + $0x160] sm:$0xff]   ;;  %v3981_v61 = vld [vmem:[#allocation8 + $0x188] sm:$0xff]  }
 0x21e   :  { %v1947_v2 = vmul.bf16 1056980736, %v1927_v62 }
 0x21f   :  { %v1948_v3 = vmul.bf16 1056980736, %v1928_v0 }
 0x220   :  { %4058 = vtanh.bf16 %v1947_v2  ;;  %v3994_v2 = vld [vmem:[#allocation8 + $0x168] sm:$0xff]  }
 0x221   :  { %4060 = vtanh.bf16 %v1948_v3  ;;  %v3985_v3 = vld [vmem:[#allocation8 + $0x190] sm:$0xff]  }
 0x223   :  { %v4055_v4 = vpop.eup %4054 }
 0x224   :  { %v4057_v5 = vpop.eup %4056  ;;  %v1977_v6 = vadd.bf16 1065369472, %v4055_v4  ;;  %v3988_v4 = vld [vmem:[#allocation8 + $0x1d8] sm:$0xff]  }
 0x225   :  { %v1978_v7 = vadd.bf16 1065369472, %v4057_v5  ;;  %v3995_v5 = vld [vmem:[#allocation8 + $0x128] sm:$0xff]  }
 0x226   :  { %v1997_v8 = vmul.bf16 1056980736, %v1977_v6  ;;  %v3998_v6 = vld [vmem:[#allocation8 + $0x170] sm:$0xff]  }
 0x227   :  { %v1998_v10 = vmul.bf16 1056980736, %v1978_v7  ;;  %v3989_v7 = vld [vmem:[#allocation8 + $0x198] sm:$0xff]  }
 0x228   :  { %v2017_v12 = vmul.bf16 %v1997_v8, %v1917_v54  ;;  %v3992_v8 = vld [vmem:[#allocation8 + $0x1e0] sm:$0xff]  }
 0x229   :  { %v2018_v11 = vmul.bf16 %v1998_v10, %v1918_v55  ;;  %v3983_v55 = vld [vmem:[#allocation8 + $0x110] sm:$0xff]  }
 0x22a   :  { %v3999_v10 = vld [vmem:[#allocation8 + $0x130] sm:$0xff]  }
 0x22b   :  { %v4059_v13 = vpop.eup %4058  ;;  %2198 = vmatprep.subr.bf16.mxu1 %v2018_v11  ;;  %v4002_v11 = vld [vmem:[#allocation8 + $0x178] sm:$0xff]  }
 0x22c   :  { %v4061_v14 = vpop.eup %4060  ;;  %v1987_v18 = vadd.bf16 1065369472, %v4059_v13  ;;  %2199 = vmatpush1.bf16.msra.mxu1 %v2017_v12  ;;  %v3993_v12 = vld [vmem:[#allocation8 + $0x1a0] sm:$0xff]   ;;  %v3996_v13 = vld [vmem:[#allocation8 + $0x1e8] sm:$0xff]  }
 0x22d   :  { %v1988_v19 = vadd.bf16 1065369472, %v4061_v14  ;;  %v4003_v14 = vld [vmem:[#allocation8 + $0x138] sm:$0xff]  }
 0x22e   :  { %v2007_v21 = vmul.bf16 1056980736, %v1987_v18  ;;  %v4006_v18 = vld [vmem:[#allocation8 + $0x240] sm:$0xff]  }
 0x22f   :  { %v2008_v22 = vmul.bf16 1056980736, %v1988_v19  ;;  %v3997_v19 = vld [vmem:[#allocation8 + $0x1a8] sm:$0xff]  }
 0x230   :  { %v2027_v25 = vmul.bf16 %v2007_v21, %v1927_v62  ;;  %v3984_v62 = vld [vmem:[#allocation8 + $0x1d0] sm:$0xff]  }
 0x231   :  { %v2028_v23 = vmul.bf16 %v2008_v22, %v1928_v0  ;;  %v3991_v0 = vld [vmem:[#allocation8 + $0x120] sm:$0xff]   ;;  %v4000_v21 = vld [vmem:[#allocation8 + $0x1f0] sm:$0xff]  }
 0x232   :  { %v4001_v22 = vld [vmem:[#allocation8 + $0x1b0] sm:$0xff]  }
 0x233   :  { %2200 = vmatprep.subr.bf16.mxu1 %v2028_v23  ;;  %v4004_v23 = vld [vmem:[#allocation8 + $0x1f8] sm:$0xff]  }
 0x234   :  { %2201 = vmatpush1.bf16.msra.mxu1 %v2027_v25 }
 0x235   :  { %3432 = vmatprep.subr.bf16.mxu1 %v3942_v24  ;;  %v4005_v24 = vld [vmem:[#allocation8 + $0x1b8] sm:$0xff]  }
 0x237   :  { %3350 = vmatmul.mubr.msk.bf16.vlgmr.msra.gmra.mrb[32].mxu1 %vm2030_vm1, %v4366_v50  ;;  %v3966_v50 = vld [vmem:[#allocation8 + $0x70] sm:$0xff]  }
 0x238   :  { %3433 = vmatpush3.bf16.msra.mxu1 %v3943_v27 }
 0x239   :  { %3434 = vmatprep.subr.bf16.mxu1 %v3946_v28 }
 0x23c   :  { %3435 = vmatpush3.bf16.msra.mxu1 %v3947_v20 }
 0x23d   :  { %3436 = vmatprep.subr.bf16.mxu1 %v3950_v33 }
 0x240   :  { %3437 = vmatpush3.bf16.msra.mxu1 %v3951_v16 }
 0x241   :  { %3438 = vmatprep.subr.bf16.mxu1 %v3954_v34 }
 0x244   :  { %3439 = vmatpush3.bf16.msra.mxu1 %v3955_v26 }
 0x245   :  { %3440 = vmatprep.subr.bf16.mxu1 %v3958_v35  ;;  %v4007_v35 = vld [vmem:[#allocation8 + $0x200] sm:$0xff]  }
 0x248   :  { %3441 = vmatpush3.bf16.msra.mxu1 %v3959_v36  ;;  %v4008_v36 = vld [vmem:[#allocation8 + $0x248] sm:$0xff]  }
 0x249   :  { %3442 = vmatprep.subr.bf16.mxu1 %v3962_v37  ;;  %v4009_v37 = vld [vmem:[#allocation8 + $0x208] sm:$0xff]  }
 0x24c   :  { %3443 = vmatpush3.bf16.msra.mxu1 %v3963_v39  ;;  %v4010_v39 = vld [vmem:[#allocation8 + $0x250] sm:$0xff]  }
 0x24d   :  { %3444 = vmatprep.subr.bf16.mxu1 %v3966_v50 }
 0x250   :  { %3445 = vmatpush3.bf16.msra.mxu1 %v3967_v40 }
 0x251   :  { %3446 = vmatprep.subr.bf16.mxu1 %v3970_v41 }
 0x254   :  { %3447 = vmatpush3.bf16.msra.mxu1 %v3971_v42 }
 0x255   :  { %3476 = vmatprep.subr.bf16.mxu1 %v3974_v43  ;;  %v4011_v43 = vld [vmem:[#allocation8 + $0x210] sm:$0xff]  }
 0x26a   :  { %v2068_v44 = vpop.f32.mrb[16].mxu1 }
 0x26b   :  { %v2239_v31 = vmul.f32 0.25, %v2068_v44  ;;  %v2070_v47 = vpop.f32.mrb[17].mxu1 }
 0x26c   :  { %v2240_v48 = vmul.f32 0.25, %v2070_v47  ;;  %v2072_v49 = vpop.f32.mrb[18].mxu1  ;;  %v4012_v47 = vld [vmem:[#allocation8 + $0x258] sm:$0xff]  }
 0x26d   :  { %v2249_v63 = vpack.c.bf16 %v2239_v31, %v2239_v31  ;;  %v2073_v46 = vpop.f32.mrb[19].mxu1 }
 0x26e   :  { %v2250_v45 = vpack.c.bf16 %v2240_v48, %v2240_v48  ;;  %v4014_v46 = vld [vmem:[#allocation8 + $0x260] sm:$0xff]  }
 0x270   :  { %2938 = vmatprep.mubr.bf16.mxu1 %v2250_v45  ;;  %v4015_v45 = vld [vmem:[#allocation8 + $0x220] sm:$0xff]  }
 0x271   :  { %2939 = vmatmul.mubr.bf16.vlgmr.msra.gmra.mrb[36].mxu1 %v2249_v63  ;;  %v4013_v63 = vld [vmem:[#allocation8 + $0x218] sm:$0xff]  }
 0x272   :  { %3477 = vmatpush3.bf16.msra.mxu1 %v3975_v1  ;;  %v2109_v53 = vpop.f32.mrb[20].mxu1  ;;  %v4016_v1 = vld [vmem:[#allocation8 + $0x268] sm:$0xff]  }
 0x273   :  { %3478 = vmatprep.subr.bf16.mxu1 %v3978_v51  ;;  %v2241_v9 = vmul.f32 0.25, %v2109_v53  ;;  %v2111_v38 = vpop.f32.mrb[21].mxu1  ;;  %v4017_v51 = vld [vmem:[#allocation8 + $0x228] sm:$0xff]   ;;  %v4020_v53 = vld [vmem:[#allocation8 + $0x278] sm:$0xff]  }
 0x274   :  { %v2242_v54 = vmul.f32 0.25, %v2111_v38  ;;  %v2113_v56 = vpop.f32.mrb[22].mxu1 }
 0x275   :  { %v2251_v57 = vpack.c.bf16 %v2241_v9, %v2241_v9  ;;  %v2114_v58 = vpop.f32.mrb[23].mxu1  ;;  %v4021_v9 = vld [vmem:[#allocation8 + $0x238] sm:$0xff]  }
 0x276   :  { %3479 = vmatpush3.bf16.msra.mxu1 %v3979_v15  ;;  %v2252_v30 = vpack.c.bf16 %v2242_v54, %v2242_v54  ;;  %v4018_v15 = vld [vmem:[#allocation8 + $0x270] sm:$0xff]  }
 0x277   :  { %3480 = vmatprep.subr.bf16.mxu1 %v3982_v52  ;;  %v4019_v52 = vld [vmem:[#allocation8 + $0x230] sm:$0xff]  }
 0x278   :  { %2978 = vmatprep.mubr.bf16.mxu0 %v2252_v30 }
 0x279   :  { %2979 = vmatmul.mubr.bf16.vlgmr.msra.gmra.mrb[24].mxu0 %v2251_v57 }
 0x27a   :  { %3481 = vmatpush3.bf16.msra.mxu1 %v3983_v55  ;;  %3499 = vmatpush3.bf16.msra.mxu0 %v3977_v59 }
 0x27b   :  { %3482 = vmatprep.subr.bf16.mxu1 %v3986_v17  ;;  %3500 = vmatprep.subr.bf16.mxu0 %v3980_v60 }
 0x27e   :  { %3483 = vmatpush3.bf16.msra.mxu1 %v3987_v29  ;;  %3501 = vmatpush3.bf16.msra.mxu0 %v3981_v61 }
 0x27f   :  { %3484 = vmatprep.subr.bf16.mxu1 %v3990_v32  ;;  %3502 = vmatprep.subr.bf16.mxu0 %v3984_v62  ;;  %v3351_v62 = vld [vmem:[%s4425_s5] ss:$0 sm:$0xff]  ;;  %s4198_s5 = smov [#allocation10]  }
 0x280   :  { %s3119_s28 = sshll.u32 %s4198_s5, 4  ;;  %s3120_s28 = int_to_ptr.vmem [resolvable:$true] %s3119_s28 }
 0x281   :  { %s4157_s29 = scalar_lea.vmem %s3120_s28, 128  ;;  %p4162_p5 = scmp.lt.s32.totalorder %s3120_s28, %s3120_s28 }
 0x282   :  { %3485 = vmatpush3.bf16.msra.mxu1 %v3991_v0  ;;  %3503 = vmatpush3.bf16.msra.mxu0 %v3985_v3  ;;  %p4158_p4 = scmp.ne.s32.totalorder %s3120_s28, %s4157_s29  ;;  %p4163_p6 = scmp.lt.s32.totalorder %s4157_s29, %s4157_s29 }
 0x283   :  { %3486 = vmatprep.subr.bf16.mxu1 %v3994_v2  ;;  %3504 = vmatprep.subr.bf16.mxu0 %v3988_v4 }
 0x284   :  { %p4164_p7 = por %p4163_p6, %p4162_p5 }
 0x286   :  { %3487 = vmatpush3.bf16.msra.mxu1 %v3995_v5  ;;  %3505 = vmatpush3.bf16.msra.mxu0 %v3989_v7  ;;  %p4165_p8 = pnand %p4164_p7, %p4158_p4 }
 0x287   :  { %3488 = vmatprep.subr.bf16.mxu1 %v3998_v6  ;;  %3506 = vmatprep.subr.bf16.mxu0 %v3992_v8 }
 0x28a   :  { %3489 = vmatpush3.bf16.msra.mxu1 %v3999_v10  ;;  %3507 = vmatpush3.bf16.msra.mxu0 %v3993_v12 }
 0x28b   :  { %3490 = vmatprep.subr.bf16.mxu1 %v4002_v11  ;;  %3508 = vmatprep.subr.bf16.mxu0 %v3996_v13 }
 0x28e   :  { %3491 = vmatpush3.bf16.msra.mxu1 %v4003_v14  ;;  %3509 = vmatpush3.bf16.msra.mxu0 %v3997_v19 }
 0x28f   :  { %3520 = vmatprep.subr.bf16.mxu1 %v4006_v18  ;;  %3510 = vmatprep.subr.bf16.mxu0 %v4000_v21 }
 0x292   :  { %3511 = vmatpush3.bf16.msra.mxu0 %v4001_v22 }
 0x293   :  { %3512 = vmatprep.subr.bf16.mxu0 %v4004_v23 }
 0x296   :  { %3513 = vmatpush3.bf16.msra.mxu0 %v4005_v24 }
 0x2ba   :  { %v2150_v25 = vpop.f32.mrb[24].mxu1 }
 0x2bb   :  { %v2243_v27 = vmul.f32 0.25, %v2150_v25  ;;  %v2152_v28 = vpop.f32.mrb[25].mxu1 }
 0x2bc   :  { %v2244_v20 = vmul.f32 0.25, %v2152_v28  ;;  %v2154_v33 = vpop.f32.mrb[26].mxu1 }
 0x2bd   :  { %v2253_v16 = vpack.c.bf16 %v2243_v27, %v2243_v27  ;;  %v2155_v34 = vpop.f32.mrb[27].mxu1 }
 0x2be   :  { %v2254_v26 = vpack.c.bf16 %v2244_v20, %v2244_v20 }
 0x2c0   :  { %3018 = vmatprep.mubr.bf16.mxu1 %v2254_v26 }
 0x2c1   :  { %3019 = vmatmul.mubr.bf16.vlgmr.msra.gmra.mrb[40].mxu1 %v2253_v16 }
 0x2c2   :  { %3521 = vmatpush3.bf16.msra.mxu1 %v4007_v35  ;;  %v2191_v50 = vpop.f32.mrb[28].mxu1 }
 0x2c3   :  { %3522 = vmatprep.subr.bf16.mxu1 %v4008_v36  ;;  %v2245_v40 = vmul.f32 0.25, %v2191_v50  ;;  %v2193_v41 = vpop.f32.mrb[29].mxu1 }
 0x2c4   :  { %v2246_v42 = vmul.f32 0.25, %v2193_v41  ;;  %v2195_v44 = vpop.f32.mrb[30].mxu1 }
 0x2c5   :  { %v2255_v31 = vpack.c.bf16 %v2245_v40, %v2245_v40  ;;  %v2196_v48 = vpop.f32.mrb[31].mxu1 }
 0x2c6   :  { %3523 = vmatpush3.bf16.msra.mxu1 %v4009_v37  ;;  %v2256_v49 = vpack.c.bf16 %v2246_v42, %v2246_v42 }
 0x2c7   :  { %3524 = vmatprep.subr.bf16.mxu1 %v4010_v39 }
 0x2c8   :  { %3058 = vmatprep.mubr.bf16.mxu0 %v2256_v49 }
 0x2c9   :  { %3059 = vmatmul.mubr.bf16.vlgmr.msra.gmra.mrb[28].mxu0 %v2255_v31 }
 0x2ca   :  { %3525 = vmatpush3.bf16.msra.mxu1 %v4011_v43 }
 0x2cb   :  { %3526 = vmatprep.subr.bf16.mxu1 %v4012_v47 }
 0x2ce   :  { %3527 = vmatpush3.bf16.msra.mxu1 %v4013_v63 }
 0x2cf   :  { %3528 = vmatprep.subr.bf16.mxu1 %v4014_v46 }
 0x2d2   :  { %3529 = vmatpush3.bf16.msra.mxu1 %v4015_v45 }
 0x2d3   :  { %3530 = vmatprep.subr.bf16.mxu1 %v4016_v1 }
 0x2d6   :  { %3531 = vmatpush3.bf16.msra.mxu1 %v4017_v51 }
 0x2d7   :  { %3532 = vmatprep.subr.bf16.mxu1 %v4018_v15 }
 0x2da   :  { %3533 = vmatpush3.bf16.msra.mxu1 %v4019_v52 }
 0x2db   :  { %3534 = vmatprep.subr.bf16.mxu1 %v4020_v53 }
 0x2de   :  { %3535 = vmatpush3.bf16.msra.mxu1 %v4021_v9 }
 0x30a   :  { %v2232_v38 = vpop.f32.mrb[32].mxu1 }
 0x30b   :  { %v2247_v54 = vmul.f32 0.25, %v2232_v38  ;;  %v2234_v55 = vpop.f32.mrb[33].mxu1 }
 0x30c   :  { %v2248_v56 = vmul.f32 0.25, %v2234_v55  ;;  %v2236_v57 = vpop.f32.mrb[34].mxu1 }
 0x30d   :  { %v2237_v17 = vpop.f32.mrb[35].mxu1  ;;  %v2257_v30 = vpack.c.bf16 %v2247_v54, %v2247_v54 }
 0x30e   :  { %v2258_v58 = vpack.c.bf16 %v2248_v56, %v2248_v56 }
 0x310   :  { %3098 = vmatprep.mubr.bf16.mxu1 %v2258_v58 }
 0x311   :  { %3099 = vmatmul.mubr.bf16.vlgmr.msra.gmra.mrb[44].mxu1 %v2257_v30 }
 0x344   :  { %v3448_v59 = vpop.f32.mrb[36].mxu1 }
 0x345   :  { %v3449_v60 = vpop.f32.mrb[37].mxu1 }
 0x346   :  { %v3450_v29 = vadd.f32 %v3449_v60, %v3448_v59  ;;  %v3451_v32 = vpop.f32.mrb[38].mxu1 }
 0x347   :  { %v3452_v61 = vpop.f32.mrb[39].mxu1 }
 0x348   :  { %v2941_v0 = vadd.f32 %v3450_v29, %v3351_v62 }
 0x34c   :  { %v3470_v2 = vpop.f32.mrb[24].mxu0 }
 0x34d   :  { %v3471_v3 = vpop.f32.mrb[25].mxu0 }
 0x34e   :  { %v3472_v4 = vadd.f32 %v3471_v3, %v3470_v2  ;;  %v3473_v5 = vpop.f32.mrb[26].mxu0 }
 0x34f   :  { %v3474_v6 = vpop.f32.mrb[27].mxu0 }
 0x350   :  { %v2981_v7 = vadd.f32 %v3472_v4, %v2941_v0 }
 0x394   :  { %v3492_v8 = vpop.f32.mrb[40].mxu1 }
 0x395   :  { %v3493_v10 = vpop.f32.mrb[41].mxu1 }
 0x396   :  { %v3494_v11 = vadd.f32 %v3493_v10, %v3492_v8  ;;  %v3495_v12 = vpop.f32.mrb[42].mxu1 }
 0x397   :  { %v3496_v13 = vpop.f32.mrb[43].mxu1 }
 0x398   :  { %v3021_v14 = vadd.f32 %v3494_v11, %v2981_v7 }
 0x39c   :  { %v3514_v18 = vpop.f32.mrb[28].mxu0 }
 0x39d   :  { %v3515_v19 = vpop.f32.mrb[29].mxu0 }
 0x39e   :  { %v3516_v21 = vadd.f32 %v3515_v19, %v3514_v18  ;;  %v3517_v22 = vpop.f32.mrb[30].mxu0 }
 0x39f   :  { %v3518_v23 = vpop.f32.mrb[31].mxu0 }
 0x3a0   :  { %v3061_v24 = vadd.f32 %v3516_v21, %v3021_v14 }
 0x3e4   :  { %v3536_v25 = vpop.f32.mrb[44].mxu1 }
 0x3e5   :  { %v3537_v27 = vpop.f32.mrb[45].mxu1 }
 0x3e6   :  { %v3538_v28 = vadd.f32 %v3537_v27, %v3536_v25  ;;  %v3539_v20 = vpop.f32.mrb[46].mxu1 }
 0x3e7   :  { %v3540_v33 = vpop.f32.mrb[47].mxu1 }
 0x3e8   :  { %v3101_v16 = vadd.f32 %v3538_v28, %v3061_v24 }
 0x3ea   :  { %v3106_v34 = vmul.f32 %v3101_v16, %v3101_v16 }
 0x3ec   :  { %3107 = vadd.xlane.f32.xlu0 %v3106_v34 }
 0x479   :  { %v3108_v26 = vpop.xlane.xlu0 %3107 }
 0x47a   :  { %v3109_v35 = vmax.f32 %v3108_v26, 1e-24 }
 0x47c   :  { %4062 = vrsqrt.f32 %v3109_v35 }
 0x486   :  { %v4063_v36 = vpop.eup %4062 }
 0x487   :  { %v3111_v37 = vmul.f32 %v4063_v36, %v3101_v16 }
 0x489   :  { %3112 = vst [vmem:[#allocation10] sm:$0xff] %v3111_v37 }
 0x48a   :  { %4168 = shalt.err (!%p4165_p8)
}
 0x48b   :  { %s4169_s8 = scalar_lea.hbm %s4426_s6, 128 }
 0x48c   :  { %p4170_p9 = scmp.ne.s32.totalorder %s4426_s6, %s4169_s8  ;;  %p4173_p10 = scmp.lt.u32.totalorder %s4169_s8, %s4426_s6 }
 0x48e   :  { %p4175_p11 = pnand %p4173_p10, %p4170_p9 }
 0x490   :  { %4178 = shalt.err (!%p4175_p11)
}
 0x491   :  { %3122 = dma.vmem_to_hbm [thread:$0]  %s3120_s28, 128, %s4426_s6, [#allocation4]  }
 0x492   :  { %4185 = dma.done.wait [#allocation4], 128  }
 0x493   :  { %4186 = vsyncadd [#allocation4], 4294967168 }
 0x494   :  { %3126 = vsyncpa [#allocation3], 1 }
 0x495   :  { %3127 = vsyncpa [#allocation6], 1 }
 0x496   :  { %3128 = vsyncpa [#allocation9], 1 }
 0x497   :  { %3129 = vsyncpa [#allocation4], 1 }

// kernel: tpu_custom_call.1
= control target key start
LH: loop header
LB: loop body
LE: loop exit
PB: predicated region body
PF: predicated region fallthrough
CT: control target
= control target key end

     0   :  { %11 = vsyncpa [#allocation3], 0  ;;  %s4420_s0 = inlined_call_operand.hbm [shape: bf16[32,320], index: 0, kind: input, shape index: {}]   ;;  %s4421_s1 = inlined_call_operand.hbm [shape: bf16[8,32], index: 1, kind: input, shape index: {}]   ;;  %s4422_s2 = inlined_call_operand.hbm [shape: bf16[320,1280], index: 2, kind: input, shape index: {}]   ;;  %s4423_s3 = inlined_call_operand.vmem [shape: f32[1,1280], index: 3, kind: input, shape index: {}]   ;;  %s4424_s4 = inlined_call_operand.hbm [shape: bf16[1280,128], index: 4, kind: input, shape index: {}]   ;;  %s4425_s5 = inlined_call_operand.vmem [shape: f32[1,128], index: 5, kind: input, shape index: {}]   ;;  %s4426_s6 = inlined_call_operand.hbm [shape: f32[8,128], index: 6, kind: output, shape index: {}]  }
   0x1   :  { %12 = vsyncpa [#allocation6], 0 }
   0x2   :  { %13 = vsyncpa [#allocation9], 0 }
   0x3   :  { %14 = vsyncpa [#allocation4], 0  ;;  %s4187_s21 = smov [#allocation5]   ;;  %s4188_s23 = smov [#allocation2]  }
   0x4   :  { %s33_s22 = sshll.u32 %s4187_s21, 4  ;;  %s20_s24 = sshll.u32 %s4188_s23, 4  ;;  %s34_s22 = int_to_ptr.vmem [resolvable:$true] %s33_s22  ;;  %s4234_s24 = int_to_ptr.vmem [resolvable:$true] %s20_s24 }
   0x5   :  { %s4069_s27 = scalar_lea.hbm %s4421_s1, 64 }
   0x6   :  { %p4070_p0 = scmp.ne.s32.totalorder %s4421_s1, %s4069_s27  ;;  %p4073_p1 = scmp.lt.u32.totalorder %s4069_s27, %s4421_s1 }
   0x8   :  { %p4075_p2 = pnand %p4073_p1, %p4070_p0 }
   0xa   :  { %4078 = shalt.err (!%p4075_p2)
}
   0xb   :  { %s4079_s8 = scalar_lea.vmem %s34_s22, 64  ;;  %p4084_p4 = scmp.lt.s32.totalorder %s34_s22, %s34_s22 }
   0xc   :  { %p4080_p3 = scmp.ne.s32.totalorder %s34_s22, %s4079_s8  ;;  %p4085_p5 = scmp.lt.s32.totalorder %s4079_s8, %s4079_s8 }
   0xe   :  { %p4086_p6 = por %p4085_p5, %p4084_p4 }
  0x10   :  { %p4087_p7 = pnand %p4086_p6, %p4080_p3 }
  0x12   :  { %4090 = shalt.err (!%p4087_p7)
}
  0x13   :  { %36 = dma.hbm_to_vmem [thread:$0]  %s4421_s1, 64, %s34_s22, [#allocation6]  }
  0x14   :  { %s4091_s13 = scalar_lea.hbm %s4420_s0, 768 }
  0x15   :  { %p4092_p8 = scmp.ne.s32.totalorder %s4420_s0, %s4091_s13  ;;  %p4095_p9 = scmp.lt.u32.totalorder %s4091_s13, %s4420_s0 }
  0x17   :  { %p4097_p10 = pnand %p4095_p9, %p4092_p8 }
  0x19   :  { %4100 = shalt.err (!%p4097_p10)
}
  0x1a   :  { %s4101_s18 = scalar_lea.vmem %s4234_s24, 768  ;;  %p4106_p12 = scmp.lt.s32.totalorder %s4234_s24, %s4234_s24 }
  0x1b   :  { %p4102_p11 = scmp.ne.s32.totalorder %s4234_s24, %s4101_s18  ;;  %p4107_p13 = scmp.lt.s32.totalorder %s4101_s18, %s4101_s18 }
  0x1d   :  { %p4108_p0 = por %p4107_p13, %p4106_p12 }
  0x1f   :  { %p4109_p1 = pnand %p4108_p0, %p4102_p11 }
  0x21   :  { %4112 = shalt.err (!%p4109_p1)
}
  0x22   :  { %s4189_s1 = smov 192   ;;  %s4190_s19 = smov 12  }
  0x23   :  { %26 = dma.hbm_to_vmem [thread:$0]  %s4420_s0, 768, %s4234_s24, [#allocation3], %s4189_s1, %s4189_s1, %s4190_s19  }
  0x24   :  { %s4191_s22 = smov [#allocation7]   ;;  %s4113_s27 = scalar_lea.hbm %s4422_s2, 25600 }
  0x25   :  { %s42_s23 = sshll.u32 %s4191_s22, 4  ;;  %p4114_p2 = scmp.ne.s32.totalorder %s4422_s2, %s4113_s27  ;;  %s43_s23 = int_to_ptr.vmem [resolvable:$true] %s42_s23 }
  0x26   :  { %p4117_p3 = scmp.lt.u32.totalorder %s4113_s27, %s4422_s2 }
  0x28   :  { %p4119_p4 = pnand %p4117_p3, %p4114_p2 }
  0x2a   :  { %4122 = shalt.err (!%p4119_p4)
}
  0x2b   :  { %s4123_s8 = scalar_lea.vmem %s43_s23, 25600  ;;  %p4128_p6 = scmp.lt.s32.totalorder %s43_s23, %s43_s23 }
  0x2c   :  { %p4124_p5 = scmp.ne.s32.totalorder %s43_s23, %s4123_s8  ;;  %p4129_p7 = scmp.lt.s32.totalorder %s4123_s8, %s4123_s8 }
  0x2e   :  { %p4130_p8 = por %p4129_p7, %p4128_p6 }
  0x30   :  { %p4131_p9 = pnand %p4130_p8, %p4124_p5 }
  0x32   :  { %4134 = shalt.err (!%p4131_p9)
}
  0x33   :  { %s4192_s0 = smov 640   ;;  %s4193_s24 = smov 40  }
  0x34   :  { %48 = dma.hbm_to_vmem [thread:$0]  %s4422_s2, 25600, %s43_s23, [#allocation6], %s4192_s0, %s4192_s0, %s4193_s24  }
  0x35   :  { %s4194_s11 = smov [#allocation8]   ;;  %s4135_s15 = scalar_lea.hbm %s4424_s4, 10240 }
  0x36   :  { %s56_s12 = sshll.u32 %s4194_s11, 4  ;;  %p4136_p10 = scmp.ne.s32.totalorder %s4424_s4, %s4135_s15  ;;  %s57_s12 = int_to_ptr.vmem [resolvable:$true] %s56_s12 }
  0x37   :  { %p4139_p11 = scmp.lt.u32.totalorder %s4135_s15, %s4424_s4 }
  0x39   :  { %p4141_p12 = pnand %p4139_p11, %p4136_p10 }
  0x3b   :  { %4144 = shalt.err (!%p4141_p12)
}
  0x3c   :  { %s4145_s19 = scalar_lea.vmem %s57_s12, 10240  ;;  %p4150_p0 = scmp.lt.s32.totalorder %s57_s12, %s57_s12 }
  0x3d   :  { %p4146_p13 = scmp.ne.s32.totalorder %s57_s12, %s4145_s19  ;;  %p4151_p1 = scmp.lt.s32.totalorder %s4145_s19, %s4145_s19 }
  0x3f   :  { %p4152_p2 = por %p4151_p1, %p4150_p0 }
  0x41   :  { %p4153_p3 = pnand %p4152_p2, %p4146_p13 }
  0x43   :  { %4156 = shalt.err (!%p4153_p3)
}
  0x44   :  { %s4195_s2 = smov 64   ;;  %s4196_s20 = smov 4  }
  0x45   :  { %62 = dma.hbm_to_vmem [thread:$0]  %s4424_s4, 10240, %s57_s12, [#allocation9], %s4195_s2, %s4195_s2, %s4196_s20  }
  0x46   :  { %4179 = dma.done.wait [#allocation3], 768  }
  0x47   :  { %4180 = vsyncadd [#allocation3], 4294966528 }
  0x48   :  { %4181 = dma.done.wait [#allocation6], 25664  }
  0x49   :  { %4182 = vsyncadd [#allocation6], 4294941632 }
  0x4a   :  { %4183 = dma.done.wait [#allocation9], 10240  }
  0x4b   :  { %4184 = vsyncadd [#allocation9], 4294957056  ;;  %v3634_v0 = vld [vmem:[#allocation7 + $0x4] ss:$40 sps:$4 sm:$0xff]   ;;  %v3636_v1 = vld [vmem:[#allocation7] ss:$40 sps:$4 sm:$0xff]  }
  0x4c   :  { %1379 = vmatprep.subr.bf16.mxu0 %v3634_v0  ;;  %v3637_v2 = vld [vmem:[#allocation7 + $0x54] ss:$40 sps:$4 sm:$0xff]   ;;  %v3639_v3 = vld [vmem:[#allocation7 + $0x50] ss:$40 sps:$4 sm:$0xff]   ;;  %v3640_v4 = vld [vmem:[#allocation7 + $0xa4] ss:$40 sps:$4 sm:$0xff]  }
  0x4d   :  { %1380 = vmatpush1.bf16.msra.mxu0 %v3636_v1  ;;  %v3642_v5 = vld [vmem:[#allocation7 + $0xa0] ss:$40 sps:$4 sm:$0xff]   ;;  %v3643_v6 = vld [vmem:[#allocation7 + $0xf4] ss:$40 sps:$4 sm:$0xff]   ;;  %v3645_v9 = vld [vmem:[#allocation7 + $0xf0] ss:$40 sps:$4 sm:$0xff]  }
  0x4e   :  { %1381 = vmatprep.subr.bf16.mxu0 %v3637_v2  ;;  %v3652_v7 = vld [vmem:[#allocation7 + $0xc] ss:$40 sps:$4 sm:$0xff]   ;;  %v3654_v8 = vld [vmem:[#allocation7 + $0x8] ss:$40 sps:$4 sm:$0xff]   ;;  %v3658_v10 = vld [vmem:[#allocation7 + $0x5c] ss:$40 sps:$4 sm:$0xff]  }
  0x4f   :  { %1485 = vmatprep.subr.bf16.mxu1 %v3652_v7  ;;  %v3660_v11 = vld [vmem:[#allocation7 + $0x58] ss:$40 sps:$4 sm:$0xff]   ;;  %v3646_v12 = vld [vmem:[#allocation7 + $0x144] ss:$40 sps:$4 sm:$0xff]   ;;  %v3649_v15 = vld [vmem:[#allocation7 + $0x194] ss:$40 sps:$4 sm:$0xff]  }
  0x50   :  { %1486 = vmatpush1.bf16.msra.mxu1 %v3654_v8  ;;  %v3648_v13 = vld [vmem:[#allocation7 + $0x140] ss:$40 sps:$4 sm:$0xff]   ;;  %v3664_v14 = vld [vmem:[#allocation7 + $0xac] ss:$40 sps:$4 sm:$0xff]   ;;  %v3670_v17 = vld [vmem:[#allocation7 + $0xfc] ss:$40 sps:$4 sm:$0xff]  }
  0x51   :  { %1382 = vmatpush1.bf16.msra.mxu0 %v3639_v3  ;;  %1487 = vmatprep.subr.bf16.mxu1 %v3658_v10  ;;  %v3666_v16 = vld [vmem:[#allocation7 + $0xa8] ss:$40 sps:$4 sm:$0xff]   ;;  %v3655_v19 = vld [vmem:[#allocation7 + $0x1e4] ss:$40 sps:$4 sm:$0xff]   ;;  %v3672_v20 = vld [vmem:[#allocation7 + $0xf8] ss:$40 sps:$4 sm:$0xff]  }
  0x52   :  { %1383 = vmatprep.subr.bf16.mxu0 %v3640_v4  ;;  %v3651_v18 = vld [vmem:[#allocation7 + $0x190] ss:$40 sps:$4 sm:$0xff]   ;;  %v3676_v21 = vld [vmem:[#allocation7 + $0x14c] ss:$40 sps:$4 sm:$0xff]   ;;  %v3657_v22 = vld [vmem:[#allocation7 + $0x1e0] ss:$40 sps:$4 sm:$0xff]  }
  0x53   :  { %v3661_v23 = vld [vmem:[#allocation7 + $0x234] ss:$40 sps:$4 sm:$0xff]   ;;  %v3678_v24 = vld [vmem:[#allocation7 + $0x148] ss:$40 sps:$4 sm:$0xff]   ;;  %v3667_v27 = vld [vmem:[#allocation7 + $0x284] ss:$40 sps:$4 sm:$0xff]  }
  0x54   :  { %1488 = vmatpush1.bf16.msra.mxu1 %v3660_v11  ;;  %v3682_v25 = vld [vmem:[#allocation7 + $0x19c] ss:$40 sps:$4 sm:$0xff]   ;;  %v3663_v26 = vld [vmem:[#allocation7 + $0x230] ss:$40 sps:$4 sm:$0xff]   ;;  %v3688_v29 = vld [vmem:[#allocation7 + $0x1ec] ss:$40 sps:$4 sm:$0xff]  }
  0x55   :  { %1384 = vmatpush1.bf16.msra.mxu0 %v3642_v5  ;;  %1489 = vmatprep.subr.bf16.mxu1 %v3664_v14  ;;  %v3684_v28 = vld [vmem:[#allocation7 + $0x198] ss:$40 sps:$4 sm:$0xff]   ;;  %v3673_v31 = vld [vmem:[#allocation7 + $0x2d4] ss:$40 sps:$4 sm:$0xff]   ;;  %v3690_v32 = vld [vmem:[#allocation7 + $0x1e8] ss:$40 sps:$4 sm:$0xff]  }
  0x56   :  { %1385 = vmatprep.subr.bf16.mxu0 %v3643_v6  ;;  %v3669_v30 = vld [vmem:[#allocation7 + $0x280] ss:$40 sps:$4 sm:$0xff]   ;;  %v3694_v33 = vld [vmem:[#allocation7 + $0x23c] ss:$40 sps:$4 sm:$0xff]   ;;  %v3675_v34 = vld [vmem:[#allocation7 + $0x2d0] ss:$40 sps:$4 sm:$0xff]  }
  0x57   :  { %v3679_v35 = vld [vmem:[#allocation7 + $0x324] ss:$40 sps:$4 sm:$0xff]   ;;  %v3696_v36 = vld [vmem:[#allocation7 + $0x238] ss:$40 sps:$4 sm:$0xff]   ;;  %v4289_v38 = vld [vmem:[#allocation2 + $0x4] ss:$12 sps:$4 sm:$0xff]  }
  0x58   :  { %1490 = vmatpush1.bf16.msra.mxu1 %v3666_v16  ;;  %v3700_v37 = vld [vmem:[#allocation7 + $0x28c] ss:$40 sps:$4 sm:$0xff]   ;;  %v3681_v39 = vld [vmem:[#allocation7 + $0x320] ss:$40 sps:$4 sm:$0xff]   ;;  %1411 = vmatprep.mubr.bf16.mxu0 %v4289_v38  ;;  %v3706_v42 = vld [vmem:[#allocation7 + $0x2dc] ss:$40 sps:$4 sm:$0xff]  }
  0x59   :  { %1386 = vmatpush1.bf16.msra.mxu0 %v3645_v9  ;;  %1491 = vmatprep.subr.bf16.mxu1 %v3670_v17  ;;  %v3685_v40 = vld [vmem:[#allocation7 + $0x374] ss:$40 sps:$4 sm:$0xff]   ;;  %v3702_v41 = vld [vmem:[#allocation7 + $0x288] ss:$40 sps:$4 sm:$0xff]   ;;  %v3691_v44 = vld [vmem:[#allocation7 + $0x3c4] ss:$40 sps:$4 sm:$0xff]  }
  0x5a   :  { %1387 = vmatprep.subr.bf16.mxu0 %v3646_v12  ;;  %1517 = vmatprep.mubr.bf16.mxu1 %v4289_v38  ;;  %v3687_v43 = vld [vmem:[#allocation7 + $0x370] ss:$40 sps:$4 sm:$0xff]   ;;  %v3712_v46 = vld [vmem:[#allocation7 + $0x32c] ss:$40 sps:$4 sm:$0xff]   ;;  %v3693_v47 = vld [vmem:[#allocation7 + $0x3c0] ss:$40 sps:$4 sm:$0xff]  }
  0x5b   :  { %v3708_v45 = vld [vmem:[#allocation7 + $0x2d8] ss:$40 sps:$4 sm:$0xff]   ;;  %v3697_v48 = vld [vmem:[#allocation7 + $0x414] ss:$40 sps:$4 sm:$0xff]   ;;  %v3714_v49 = vld [vmem:[#allocation7 + $0x328] ss:$40 sps:$4 sm:$0xff]  }
  0x5c   :  { %1492 = vmatpush1.bf16.msra.mxu1 %v3672_v20  ;;  %v3721_v50 = vld [vmem:[#allocation7 + $0x37c] ss:$40 sps:$4 sm:$0xff]   ;;  %v3699_v51 = vld [vmem:[#allocation7 + $0x410] ss:$40 sps:$4 sm:$0xff]   ;;  %v3727_v54 = vld [vmem:[#allocation7 + $0x3cc] ss:$40 sps:$4 sm:$0xff]  }
  0x5d   :  { %1388 = vmatpush1.bf16.msra.mxu0 %v3648_v13  ;;  %1493 = vmatprep.subr.bf16.mxu1 %v3676_v21  ;;  %v3723_v52 = vld [vmem:[#allocation7 + $0x378] ss:$40 sps:$4 sm:$0xff]   ;;  %v3703_v53 = vld [vmem:[#allocation7 + $0x464] ss:$40 sps:$4 sm:$0xff]   ;;  %v3709_v56 = vld [vmem:[#allocation7 + $0x4b4] ss:$40 sps:$4 sm:$0xff]  }
  0x5e   :  { %1389 = vmatprep.subr.bf16.mxu0 %v3649_v15  ;;  %v3705_v55 = vld [vmem:[#allocation7 + $0x460] ss:$40 sps:$4 sm:$0xff]   ;;  %v3736_v58 = vld [vmem:[#allocation7 + $0x41c] ss:$40 sps:$4 sm:$0xff]   ;;  %v3711_v59 = vld [vmem:[#allocation7 + $0x4b0] ss:$40 sps:$4 sm:$0xff]  }
  0x5f   :  { %v3729_v57 = vld [vmem:[#allocation7 + $0x3c8] ss:$40 sps:$4 sm:$0xff]   ;;  %v3738_v60 = vld [vmem:[#allocation7 + $0x418] ss:$40 sps:$4 sm:$0xff]   ;;  %v3720_v61 = vld [vmem:[#allocation7 + $0x504] ss:$40 sps:$4 sm:$0xff]  }
  0x60   :  { %1494 = vmatpush1.bf16.msra.mxu1 %v3678_v24  ;;  %v3742_v62 = vld [vmem:[#allocation7 + $0x46c] ss:$40 sps:$4 sm:$0xff]   ;;  %v3718_v0 = vld [vmem:[#allocation7 + $0x500] ss:$40 sps:$4 sm:$0xff]   ;;  %v3749_v4 = vld [vmem:[#allocation7 + $0x4bc] ss:$40 sps:$4 sm:$0xff]  }
  0x61   :  { %1390 = vmatpush1.bf16.msra.mxu0 %v3651_v18  ;;  %1495 = vmatprep.subr.bf16.mxu1 %v3682_v25  ;;  %v4293_v63 = vld [vmem:[#allocation2] ss:$12 sps:$4 sm:$0xff]   ;;  %v4295_v1 = vld [vmem:[#allocation2 + $0x1c] ss:$12 sps:$4 sm:$0xff]   ;;  %v4299_v9 = vld [vmem:[#allocation2 + $0x18] ss:$12 sps:$4 sm:$0xff]  }
  0x62   :  { %1391 = vmatprep.subr.bf16.mxu0 %v3655_v19  ;;  %v3726_v2 = vld [vmem:[#allocation7 + $0x554] ss:$40 sps:$4 sm:$0xff]   ;;  %v3744_v3 = vld [vmem:[#allocation7 + $0x468] ss:$40 sps:$4 sm:$0xff]   ;;  %v3735_v6 = vld [vmem:[#allocation7 + $0x5a4] ss:$40 sps:$4 sm:$0xff]  }
  0x63   :  { %v3724_v5 = vld [vmem:[#allocation7 + $0x550] ss:$40 sps:$4 sm:$0xff]   ;;  %v3757_v8 = vld [vmem:[#allocation7 + $0x50c] ss:$40 sps:$4 sm:$0xff]   ;;  %v3733_v10 = vld [vmem:[#allocation7 + $0x5a0] ss:$40 sps:$4 sm:$0xff]  }
  0x64   :  { %1496 = vmatpush1.bf16.msra.mxu1 %v3684_v28  ;;  %v3751_v7 = vld [vmem:[#allocation7 + $0x4b8] ss:$40 sps:$4 sm:$0xff]   ;;  %v3741_v11 = vld [vmem:[#allocation7 + $0x5f4] ss:$40 sps:$4 sm:$0xff]   ;;  %v3755_v12 = vld [vmem:[#allocation7 + $0x508] ss:$40 sps:$4 sm:$0xff]  }
  0x65   :  { %1392 = vmatpush1.bf16.msra.mxu0 %v3657_v22  ;;  %1497 = vmatprep.subr.bf16.mxu1 %v3688_v29  ;;  %v3764_v13 = vld [vmem:[#allocation7 + $0x55c] ss:$40 sps:$4 sm:$0xff]   ;;  %v3739_v14 = vld [vmem:[#allocation7 + $0x5f0] ss:$40 sps:$4 sm:$0xff]   ;;  %v4197_v15 = vmov 0   ;;  %vm1372_vm0 = vcmask 523264  }
  0x66   :  { %1393 = vmatprep.subr.bf16.mxu0 %v3661_v23  ;;  %v3748_v16 = vld [vmem:[#allocation7 + $0x14] ss:$40 sps:$4 sm:$0xff]   ;;  %v3762_v18 = vld [vmem:[#allocation7 + $0x558] ss:$40 sps:$4 sm:$0xff]   ;;  %v3754_v21 = vld [vmem:[#allocation7 + $0x64] ss:$40 sps:$4 sm:$0xff]  }
  0x67   :  { %v4304_v17 = vld [vmem:[#allocation2 + $0x8] ss:$12 sps:$4 sm:$0xff]   ;;  %v3746_v20 = vld [vmem:[#allocation7 + $0x10] ss:$40 sps:$4 sm:$0xff]   ;;  %v3776_v23 = vld [vmem:[#allocation7 + $0x5fc] ss:$40 sps:$4 sm:$0xff]  }
  0x68   :  { %1498 = vmatpush1.bf16.msra.mxu1 %v3690_v32  ;;  %v3770_v19 = vld [vmem:[#allocation7 + $0x5ac] ss:$40 sps:$4 sm:$0xff]   ;;  %v3768_v22 = vld [vmem:[#allocation7 + $0x5a8] ss:$40 sps:$4 sm:$0xff]   ;;  %v3782_v28 = vld [vmem:[#allocation7 + $0x1c] ss:$40 sps:$4 sm:$0xff]  }
  0x69   :  { %1394 = vmatpush1.bf16.msra.mxu0 %v3663_v26  ;;  %1499 = vmatprep.subr.bf16.mxu1 %v3694_v33  ;;  %v3752_v24 = vld [vmem:[#allocation7 + $0x60] ss:$40 sps:$4 sm:$0xff]   ;;  %v3761_v25 = vld [vmem:[#allocation7 + $0xb4] ss:$40 sps:$4 sm:$0xff]   ;;  %v4311_v26 = vld [vmem:[#allocation2 + $0x20] ss:$12 sps:$4 sm:$0xff]  }
  0x6a   :  { %1395 = vmatprep.subr.bf16.mxu0 %v3667_v27  ;;  %v3774_v27 = vld [vmem:[#allocation7 + $0x5f8] ss:$40 sps:$4 sm:$0xff]   ;;  %v3788_v32 = vld [vmem:[#allocation7 + $0x6c] ss:$40 sps:$4 sm:$0xff]   ;;  %vm2030_vm1 = vcmask 261120  }
  0x6b   :  { %v3759_v29 = vld [vmem:[#allocation7 + $0xb0] ss:$40 sps:$4 sm:$0xff]   ;;  %v3765_v33 = vld [vmem:[#allocation7 + $0x100] ss:$40 sps:$4 sm:$0xff]  }
  0x6c   :  { %1500 = vmatpush1.bf16.msra.mxu1 %v3696_v36  ;;  %v3794_v36 = vld [vmem:[#allocation7 + $0xbc] ss:$40 sps:$4 sm:$0xff]  }
  0x6d   :  { %1396 = vmatpush1.bf16.msra.mxu0 %v3669_v30  ;;  %1501 = vmatprep.subr.bf16.mxu1 %v3700_v37  ;;  %v3767_v30 = vld [vmem:[#allocation7 + $0x104] ss:$40 sps:$4 sm:$0xff]   ;;  %v3771_v37 = vld [vmem:[#allocation7 + $0x150] ss:$40 sps:$4 sm:$0xff]  }
  0x6e   :  { %1397 = vmatprep.subr.bf16.mxu0 %v3673_v31  ;;  %v3780_v31 = vld [vmem:[#allocation7 + $0x18] ss:$40 sps:$4 sm:$0xff]  }
  0x70   :  { %1502 = vmatpush1.bf16.msra.mxu1 %v3702_v41  ;;  %v3800_v41 = vld [vmem:[#allocation7 + $0x10c] ss:$40 sps:$4 sm:$0xff]  }
  0x71   :  { %1398 = vmatpush1.bf16.msra.mxu0 %v3675_v34  ;;  %1503 = vmatprep.subr.bf16.mxu1 %v3706_v42  ;;  %v3773_v34 = vld [vmem:[#allocation7 + $0x154] ss:$40 sps:$4 sm:$0xff]   ;;  %v3777_v42 = vld [vmem:[#allocation7 + $0x1a0] ss:$40 sps:$4 sm:$0xff]  }
  0x72   :  { %1399 = vmatprep.subr.bf16.mxu0 %v3679_v35  ;;  %v3786_v35 = vld [vmem:[#allocation7 + $0x68] ss:$40 sps:$4 sm:$0xff]  }
  0x74   :  { %1504 = vmatpush1.bf16.msra.mxu1 %v3708_v45  ;;  %v3806_v45 = vld [vmem:[#allocation7 + $0x15c] ss:$40 sps:$4 sm:$0xff]  }
  0x75   :  { %1400 = vmatpush1.bf16.msra.mxu0 %v3681_v39  ;;  %1505 = vmatprep.subr.bf16.mxu1 %v3712_v46  ;;  %v3779_v39 = vld [vmem:[#allocation7 + $0x1a4] ss:$40 sps:$4 sm:$0xff]   ;;  %v3783_v46 = vld [vmem:[#allocation7 + $0x1f0] ss:$40 sps:$4 sm:$0xff]  }
  0x76   :  { %1401 = vmatprep.subr.bf16.mxu0 %v3685_v40  ;;  %v3792_v40 = vld [vmem:[#allocation7 + $0xb8] ss:$40 sps:$4 sm:$0xff]  }
  0x78   :  { %1506 = vmatpush1.bf16.msra.mxu1 %v3714_v49  ;;  %v3812_v49 = vld [vmem:[#allocation7 + $0x1ac] ss:$40 sps:$4 sm:$0xff]  }
  0x79   :  { %1402 = vmatpush1.bf16.msra.mxu0 %v3687_v43  ;;  %1507 = vmatprep.subr.bf16.mxu1 %v3721_v50  ;;  %v3785_v43 = vld [vmem:[#allocation7 + $0x1f4] ss:$40 sps:$4 sm:$0xff]   ;;  %v3789_v50 = vld [vmem:[#allocation7 + $0x240] ss:$40 sps:$4 sm:$0xff]  }
  0x7a   :  { %1403 = vmatprep.subr.bf16.mxu0 %v3691_v44  ;;  %v3798_v44 = vld [vmem:[#allocation7 + $0x108] ss:$40 sps:$4 sm:$0xff]  }
  0x7c   :  { %1508 = vmatpush1.bf16.msra.mxu1 %v3723_v52  ;;  %v3810_v52 = vld [vmem:[#allocation7 + $0x1a8] ss:$40 sps:$4 sm:$0xff]  }
  0x7d   :  { %1404 = vmatpush1.bf16.msra.mxu0 %v3693_v47  ;;  %1509 = vmatprep.subr.bf16.mxu1 %v3727_v54  ;;  %v3791_v47 = vld [vmem:[#allocation7 + $0x244] ss:$40 sps:$4 sm:$0xff]  }
  0x7e   :  { %1405 = vmatprep.subr.bf16.mxu0 %v3697_v48  ;;  %v3804_v48 = vld [vmem:[#allocation7 + $0x158] ss:$40 sps:$4 sm:$0xff]   ;;  %v3803_v54 = vld [vmem:[#allocation7 + $0x2e4] ss:$40 sps:$4 sm:$0xff]  }
  0x80   :  { %1510 = vmatpush1.bf16.msra.mxu1 %v3729_v57  ;;  %v3801_v57 = vld [vmem:[#allocation7 + $0x2e0] ss:$40 sps:$4 sm:$0xff]  }
  0x81   :  { %1406 = vmatpush1.bf16.msra.mxu0 %v3699_v51  ;;  %1511 = vmatprep.subr.bf16.mxu1 %v3736_v58  ;;  %v3797_v51 = vld [vmem:[#allocation7 + $0x294] ss:$40 sps:$4 sm:$0xff]  }
  0x82   :  { %1407 = vmatprep.subr.bf16.mxu0 %v3703_v53  ;;  %v3818_v53 = vld [vmem:[#allocation7 + $0x1fc] ss:$40 sps:$4 sm:$0xff]  }
  0x83   :  { %v3809_v58 = vld [vmem:[#allocation7 + $0x334] ss:$40 sps:$4 sm:$0xff]  }
  0x84   :  { %1512 = vmatpush1.bf16.msra.mxu1 %v3738_v60  ;;  %v3830_v60 = vld [vmem:[#allocation7 + $0x29c] ss:$40 sps:$4 sm:$0xff]  }
  0x85   :  { %1408 = vmatpush1.bf16.msra.mxu0 %v3705_v55  ;;  %1513 = vmatprep.subr.bf16.mxu1 %v3742_v62  ;;  %v3816_v55 = vld [vmem:[#allocation7 + $0x1f8] ss:$40 sps:$4 sm:$0xff]   ;;  %v3815_v62 = vld [vmem:[#allocation7 + $0x384] ss:$40 sps:$4 sm:$0xff]  }
  0x86   :  { %1409 = vmatprep.subr.bf16.mxu0 %v3709_v56  ;;  %v3824_v56 = vld [vmem:[#allocation7 + $0x24c] ss:$40 sps:$4 sm:$0xff]  }
  0x88   :  { %1514 = vmatpush1.bf16.msra.mxu1 %v3744_v3  ;;  %v3813_v3 = vld [vmem:[#allocation7 + $0x380] ss:$40 sps:$4 sm:$0xff]  }
  0x89   :  { %1410 = vmatpush1.bf16.msra.mxu0 %v3711_v59  ;;  %1515 = vmatprep.subr.bf16.mxu1 %v3749_v4  ;;  %v3822_v59 = vld [vmem:[#allocation7 + $0x248] ss:$40 sps:$4 sm:$0xff]   ;;  %v3821_v4 = vld [vmem:[#allocation7 + $0x3d4] ss:$40 sps:$4 sm:$0xff]  }
  0x8a   :  { %1432 = vmatprep.subr.bf16.mxu0 %v3720_v61  ;;  %v3807_v61 = vld [vmem:[#allocation7 + $0x330] ss:$40 sps:$4 sm:$0xff]  }
  0x8c   :  { %1412 = vmatmul.mubr.bf16.vlgmr.msra.gmra.mrb[0].mxu0 %v4293_v63  ;;  %1516 = vmatpush1.bf16.msra.mxu1 %v3751_v7  ;;  %v3819_v7 = vld [vmem:[#allocation7 + $0x3d0] ss:$40 sps:$4 sm:$0xff]  }
  0x8d   :  { %1433 = vmatpush1.bf16.msra.mxu0 %v3718_v0  ;;  %1421 = vmatprep.mubr.bf16.mxu0 %v4295_v1  ;;  %v3828_v0 = vld [vmem:[#allocation7 + $0x298] ss:$40 sps:$4 sm:$0xff]  }
  0x8e   :  { %1434 = vmatprep.subr.bf16.mxu0 %v3726_v2  ;;  %1538 = vmatprep.subr.bf16.mxu1 %v3757_v8  ;;  %v3836_v2 = vld [vmem:[#allocation7 + $0x2ec] ss:$40 sps:$4 sm:$0xff]  }
  0x8f   :  { %1518 = vmatmul.mubr.bf16.vlgmr.msra.gmra.mrb[0].mxu1 %v4293_v63  ;;  %v3827_v8 = vld [vmem:[#allocation7 + $0x424] ss:$40 sps:$4 sm:$0xff]  }
  0x90   :  { %1539 = vmatpush1.bf16.msra.mxu1 %v3755_v12  ;;  %1527 = vmatprep.mubr.bf16.mxu1 %v4295_v1  ;;  %v3825_v12 = vld [vmem:[#allocation7 + $0x420] ss:$40 sps:$4 sm:$0xff]  }
  0x91   :  { %1435 = vmatpush1.bf16.msra.mxu0 %v3724_v5  ;;  %1540 = vmatprep.subr.bf16.mxu1 %v3764_v13  ;;  %v3834_v5 = vld [vmem:[#allocation7 + $0x2e8] ss:$40 sps:$4 sm:$0xff]   ;;  %v3833_v13 = vld [vmem:[#allocation7 + $0x474] ss:$40 sps:$4 sm:$0xff]  }
  0x92   :  { %1436 = vmatprep.subr.bf16.mxu0 %v3735_v6  ;;  %v3842_v6 = vld [vmem:[#allocation7 + $0x33c] ss:$40 sps:$4 sm:$0xff]  }
  0x94   :  { %1422 = vmatmul.mubr.bf16.gmra.mrb[4].mxu0 %v4299_v9  ;;  %1541 = vmatpush1.bf16.msra.mxu1 %v3762_v18  ;;  %v3831_v18 = vld [vmem:[#allocation7 + $0x470] ss:$40 sps:$4 sm:$0xff]  }
  0x95   :  { %1437 = vmatpush1.bf16.msra.mxu0 %v3733_v10  ;;  %1464 = vmatprep.mubr.bf16.mxu0 %v4197_v15  ;;  %v3840_v10 = vld [vmem:[#allocation7 + $0x338] ss:$40 sps:$4 sm:$0xff]  }
  0x96   :  { %1438 = vmatprep.subr.bf16.mxu0 %v3741_v11  ;;  %1542 = vmatprep.subr.bf16.mxu1 %v3770_v19  ;;  %v3848_v11 = vld [vmem:[#allocation7 + $0x38c] ss:$40 sps:$4 sm:$0xff]  }
  0x97   :  { %1528 = vmatmul.mubr.bf16.gmra.mrb[4].mxu1 %v4299_v9  ;;  %v3839_v19 = vld [vmem:[#allocation7 + $0x4c4] ss:$40 sps:$4 sm:$0xff]  }
  0x98   :  { %1543 = vmatpush1.bf16.msra.mxu1 %v3768_v22  ;;  %1570 = vmatprep.mubr.bf16.mxu1 %v4197_v15  ;;  %v3845_v22 = vld [vmem:[#allocation7 + $0x514] ss:$40 sps:$4 sm:$0xff]  }
  0x99   :  { %1439 = vmatpush1.bf16.msra.mxu0 %v3739_v14  ;;  %1544 = vmatprep.subr.bf16.mxu1 %v3776_v23  ;;  %v3846_v14 = vld [vmem:[#allocation7 + $0x388] ss:$40 sps:$4 sm:$0xff]   ;;  %v3860_v23 = vld [vmem:[#allocation7 + $0x42c] ss:$40 sps:$4 sm:$0xff]  }
  0x9a   :  { %1591 = vmatprep.subr.bf16.mxu0 %v3748_v16  ;;  %v3854_v16 = vld [vmem:[#allocation7 + $0x3dc] ss:$40 sps:$4 sm:$0xff]  }
  0x9c   :  { %3336 = vmatmul.mubr.msk.bf16.vlgmr.msra.gmra.mrb[0].mxu0 %vm1372_vm0, %v4304_v17  ;;  %1545 = vmatpush1.bf16.msra.mxu1 %v3774_v27  ;;  %v3843_v27 = vld [vmem:[#allocation7 + $0x510] ss:$40 sps:$4 sm:$0xff]  }
  0x9d   :  { %1592 = vmatpush1.bf16.msra.mxu0 %v3746_v20  ;;  %1474 = vmatprep.mubr.bf16.mxu0 %v4197_v15  ;;  %v3837_v20 = vld [vmem:[#allocation7 + $0x4c0] ss:$40 sps:$4 sm:$0xff]  }
  0x9e   :  { %1593 = vmatprep.subr.bf16.mxu0 %v3754_v21  ;;  %1697 = vmatprep.subr.bf16.mxu1 %v3782_v28  ;;  %v3852_v21 = vld [vmem:[#allocation7 + $0x3d8] ss:$40 sps:$4 sm:$0xff]   ;;  %v3851_v28 = vld [vmem:[#allocation7 + $0x564] ss:$40 sps:$4 sm:$0xff]  }
  0x9f   :  { %3338 = vmatmul.mubr.msk.bf16.vlgmr.msra.gmra.mrb[0].mxu1 %vm1372_vm0, %v4304_v17 }
  0xa0   :  { %1698 = vmatpush1.bf16.msra.mxu1 %v3780_v31  ;;  %1580 = vmatprep.mubr.bf16.mxu1 %v4197_v15  ;;  %v3849_v31 = vld [vmem:[#allocation7 + $0x560] ss:$40 sps:$4 sm:$0xff]  }
  0xa1   :  { %1594 = vmatpush1.bf16.msra.mxu0 %v3752_v24  ;;  %1699 = vmatprep.subr.bf16.mxu1 %v3788_v32  ;;  %v3858_v24 = vld [vmem:[#allocation7 + $0x428] ss:$40 sps:$4 sm:$0xff]   ;;  %v3857_v32 = vld [vmem:[#allocation7 + $0x5b4] ss:$40 sps:$4 sm:$0xff]  }
  0xa2   :  { %1595 = vmatprep.subr.bf16.mxu0 %v3761_v25  ;;  %v3866_v25 = vld [vmem:[#allocation7 + $0x47c] ss:$40 sps:$4 sm:$0xff]  }
  0xa4   :  { %3337 = vmatmul.mubr.msk.bf16.gmra.mrb[4].mxu0 %vm1372_vm0, %v4311_v26  ;;  %1700 = vmatpush1.bf16.msra.mxu1 %v3786_v35  ;;  %v3855_v35 = vld [vmem:[#allocation7 + $0x5b0] ss:$40 sps:$4 sm:$0xff]  }
  0xa5   :  { %1596 = vmatpush1.bf16.msra.mxu0 %v3759_v29  ;;  %1623 = vmatprep.mubr.bf16.mxu0 %v4289_v38  ;;  %v3864_v29 = vld [vmem:[#allocation7 + $0x478] ss:$40 sps:$4 sm:$0xff]  }
  0xa6   :  { %1597 = vmatprep.subr.bf16.mxu0 %v3767_v30  ;;  %1701 = vmatprep.subr.bf16.mxu1 %v3794_v36  ;;  %v3872_v30 = vld [vmem:[#allocation7 + $0x4cc] ss:$40 sps:$4 sm:$0xff]  }
  0xa7   :  { %3339 = vmatmul.mubr.msk.bf16.gmra.mrb[4].mxu1 %vm1372_vm0, %v4311_v26  ;;  %v3863_v36 = vld [vmem:[#allocation7 + $0x604] ss:$40 sps:$4 sm:$0xff]  }
  0xa8   :  { %1702 = vmatpush1.bf16.msra.mxu1 %v3792_v40  ;;  %1729 = vmatprep.mubr.bf16.mxu1 %v4289_v38  ;;  %v3795_v38 = vld [vmem:[#allocation7 + $0x290] ss:$40 sps:$4 sm:$0xff]   ;;  %v3861_v40 = vld [vmem:[#allocation7 + $0x600] ss:$40 sps:$4 sm:$0xff]  }
  0xa9   :  { %1598 = vmatpush1.bf16.msra.mxu0 %v3765_v33  ;;  %1703 = vmatprep.subr.bf16.mxu1 %v3800_v41  ;;  %v3870_v33 = vld [vmem:[#allocation7 + $0x4c8] ss:$40 sps:$4 sm:$0xff]   ;;  %v3869_v41 = vld [vmem:[#allocation7 + $0x24] ss:$40 sps:$4 sm:$0xff]  }
  0xaa   :  { %1599 = vmatprep.subr.bf16.mxu0 %v3773_v34  ;;  %v3878_v34 = vld [vmem:[#allocation7 + $0x51c] ss:$40 sps:$4 sm:$0xff]  }
  0xac   :  { %1704 = vmatpush1.bf16.msra.mxu1 %v3798_v44  ;;  %v3867_v44 = vld [vmem:[#allocation7 + $0x20] ss:$40 sps:$4 sm:$0xff]  }
  0xad   :  { %1600 = vmatpush1.bf16.msra.mxu0 %v3771_v37  ;;  %1705 = vmatprep.subr.bf16.mxu1 %v3806_v45  ;;  %v3876_v37 = vld [vmem:[#allocation7 + $0x518] ss:$40 sps:$4 sm:$0xff]   ;;  %v3875_v45 = vld [vmem:[#allocation7 + $0x74] ss:$40 sps:$4 sm:$0xff]  }
  0xae   :  { %1601 = vmatprep.subr.bf16.mxu0 %v3779_v39  ;;  %v3884_v39 = vld [vmem:[#allocation7 + $0x56c] ss:$40 sps:$4 sm:$0xff]  }
  0xb0   :  { %1706 = vmatpush1.bf16.msra.mxu1 %v3804_v48  ;;  %v3873_v48 = vld [vmem:[#allocation7 + $0x70] ss:$40 sps:$4 sm:$0xff]  }
  0xb1   :  { %1602 = vmatpush1.bf16.msra.mxu0 %v3777_v42  ;;  %1707 = vmatprep.subr.bf16.mxu1 %v3812_v49  ;;  %v3882_v42 = vld [vmem:[#allocation7 + $0x568] ss:$40 sps:$4 sm:$0xff]   ;;  %v3881_v49 = vld [vmem:[#allocation7 + $0xc4] ss:$40 sps:$4 sm:$0xff]  }
  0xb2   :  { %1603 = vmatprep.subr.bf16.mxu0 %v3785_v43  ;;  %v3890_v43 = vld [vmem:[#allocation7 + $0x5bc] ss:$40 sps:$4 sm:$0xff]  }
  0xb4   :  { %1708 = vmatpush1.bf16.msra.mxu1 %v3810_v52  ;;  %v3893_v52 = vld [vmem:[#allocation7 + $0x164] ss:$40 sps:$4 sm:$0xff]  }
  0xb5   :  { %1604 = vmatpush1.bf16.msra.mxu0 %v3783_v46  ;;  %1709 = vmatprep.subr.bf16.mxu1 %v3818_v53  ;;  %v3888_v46 = vld [vmem:[#allocation7 + $0x5b8] ss:$40 sps:$4 sm:$0xff]   ;;  %v4064_v53 = vld [vmem:[#allocation2 + $0x4] ss:$12 sps:$4 sm:$0xff]  }
  0xb6   :  { %1605 = vmatprep.subr.bf16.mxu0 %v3791_v47  ;;  %v3896_v47 = vld [vmem:[#allocation7 + $0x60c] ss:$40 sps:$4 sm:$0xff]  }
  0xb8   :  { %1710 = vmatpush1.bf16.msra.mxu1 %v3816_v55  ;;  %v3902_v55 = vld [vmem:[#allocation7 + $0x204] ss:$40 sps:$4 sm:$0xff]  }
  0xb9   :  { %1606 = vmatpush1.bf16.msra.mxu0 %v3789_v50  ;;  %1711 = vmatprep.subr.bf16.mxu1 %v3824_v56  ;;  %v3887_v50 = vld [vmem:[#allocation7 + $0x114] ss:$40 sps:$4 sm:$0xff]   ;;  %v3900_v56 = vld [vmem:[#allocation7 + $0x200] ss:$40 sps:$4 sm:$0xff]  }
  0xba   :  { %1607 = vmatprep.subr.bf16.mxu0 %v3797_v51  ;;  %v3885_v51 = vld [vmem:[#allocation7 + $0x110] ss:$40 sps:$4 sm:$0xff]  }
  0xbc   :  { %1712 = vmatpush1.bf16.msra.mxu1 %v3822_v59  ;;  %v3906_v59 = vld [vmem:[#allocation7 + $0x2a0] ss:$40 sps:$4 sm:$0xff]  }
  0xbd   :  { %1608 = vmatpush1.bf16.msra.mxu0 %v3795_v38  ;;  %1713 = vmatprep.subr.bf16.mxu1 %v3830_v60  ;;  %v3899_v38 = vld [vmem:[#allocation7 + $0x1b4] ss:$40 sps:$4 sm:$0xff]  }
  0xbe   :  { %1609 = vmatprep.subr.bf16.mxu0 %v3803_v54  ;;  %v3897_v54 = vld [vmem:[#allocation7 + $0x1b0] ss:$40 sps:$4 sm:$0xff]   ;;  %v3911_v60 = vld [vmem:[#allocation7 + $0x2f4] ss:$40 sps:$4 sm:$0xff]  }
  0xc0   :  { %1714 = vmatpush1.bf16.msra.mxu1 %v3828_v0  ;;  %v3912_v0 = vld [vmem:[#allocation7 + $0x340] ss:$40 sps:$4 sm:$0xff]  }
  0xc1   :  { %1610 = vmatpush1.bf16.msra.mxu0 %v3801_v57  ;;  %1715 = vmatprep.subr.bf16.mxu1 %v3836_v2  ;;  %v3905_v57 = vld [vmem:[#allocation7 + $0x254] ss:$40 sps:$4 sm:$0xff]  }
  0xc2   :  { %1611 = vmatprep.subr.bf16.mxu0 %v3809_v58  ;;  %v3908_v58 = vld [vmem:[#allocation7 + $0x2a4] ss:$40 sps:$4 sm:$0xff]   ;;  %v3917_v2 = vld [vmem:[#allocation7 + $0x394] ss:$40 sps:$4 sm:$0xff]  }
  0xc4   :  { %1716 = vmatpush1.bf16.msra.mxu1 %v3834_v5  ;;  %v3918_v5 = vld [vmem:[#allocation7 + $0x3e0] ss:$40 sps:$4 sm:$0xff]  }
  0xc5   :  { %1612 = vmatpush1.bf16.msra.mxu0 %v3807_v61  ;;  %1717 = vmatprep.subr.bf16.mxu1 %v3842_v6  ;;  %v3909_v61 = vld [vmem:[#allocation7 + $0x2f0] ss:$40 sps:$4 sm:$0xff]   ;;  %v3923_v6 = vld [vmem:[#allocation7 + $0x434] ss:$40 sps:$4 sm:$0xff]  }
  0xc6   :  { %1613 = vmatprep.subr.bf16.mxu0 %v3815_v62  ;;  %v3914_v62 = vld [vmem:[#allocation7 + $0x344] ss:$40 sps:$4 sm:$0xff]  }
  0xc8   :  { %1718 = vmatpush1.bf16.msra.mxu1 %v3840_v10  ;;  %v3924_v10 = vld [vmem:[#allocation7 + $0x480] ss:$40 sps:$4 sm:$0xff]  }
  0xc9   :  { %1614 = vmatpush1.bf16.msra.mxu0 %v3813_v3  ;;  %1719 = vmatprep.subr.bf16.mxu1 %v3848_v11  ;;  %v3915_v3 = vld [vmem:[#allocation7 + $0x390] ss:$40 sps:$4 sm:$0xff]   ;;  %v3929_v11 = vld [vmem:[#allocation7 + $0x4d4] ss:$40 sps:$4 sm:$0xff]  }
  0xca   :  { %1615 = vmatprep.subr.bf16.mxu0 %v3821_v4  ;;  %v3920_v4 = vld [vmem:[#allocation7 + $0x3e4] ss:$40 sps:$4 sm:$0xff]  }
  0xcc   :  { %1720 = vmatpush1.bf16.msra.mxu1 %v3846_v14  ;;  %v3930_v14 = vld [vmem:[#allocation7 + $0x520] ss:$40 sps:$4 sm:$0xff]  }
  0xcd   :  { %1616 = vmatpush1.bf16.msra.mxu0 %v3819_v7  ;;  %1721 = vmatprep.subr.bf16.mxu1 %v3854_v16  ;;  %v3921_v7 = vld [vmem:[#allocation7 + $0x430] ss:$40 sps:$4 sm:$0xff]   ;;  %v3935_v16 = vld [vmem:[#allocation7 + $0x574] ss:$40 sps:$4 sm:$0xff]  }
  0xce   :  { %1617 = vmatprep.subr.bf16.mxu0 %v3827_v8  ;;  %v3926_v8 = vld [vmem:[#allocation7 + $0x484] ss:$40 sps:$4 sm:$0xff]  }
  0xd0   :  { %1722 = vmatpush1.bf16.msra.mxu1 %v3852_v21  ;;  %v3938_v21 = vld [vmem:[#allocation7 + $0x5c4] ss:$40 sps:$4 sm:$0xff]  }
  0xd1   :  { %1618 = vmatpush1.bf16.msra.mxu0 %v3825_v12  ;;  %1723 = vmatprep.subr.bf16.mxu1 %v3860_v23  ;;  %v3927_v12 = vld [vmem:[#allocation7 + $0x4d0] ss:$40 sps:$4 sm:$0xff]   ;;  %v3941_v23 = vld [vmem:[#allocation7 + $0x614] ss:$40 sps:$4 sm:$0xff]  }
  0xd2   :  { %1619 = vmatprep.subr.bf16.mxu0 %v3833_v13  ;;  %v3932_v13 = vld [vmem:[#allocation7 + $0x524] ss:$40 sps:$4 sm:$0xff]  }
  0xd4   :  { %1724 = vmatpush1.bf16.msra.mxu1 %v3858_v24  ;;  %v4067_v24 = vld [vmem:[#allocation2 + $0x18] ss:$12 sps:$4 sm:$0xff]  }
  0xd5   :  { %1620 = vmatpush1.bf16.msra.mxu0 %v3831_v18  ;;  %1725 = vmatprep.subr.bf16.mxu1 %v3866_v25  ;;  %v4065_v18 = vld [vmem:[#allocation2] ss:$12 sps:$4 sm:$0xff]  }
  0xd6   :  { %1621 = vmatprep.subr.bf16.mxu0 %v3839_v19  ;;  %v3933_v19 = vld [vmem:[#allocation7 + $0x570] ss:$40 sps:$4 sm:$0xff]  }
  0xd7   :  { %v3939_v25 = vld [vmem:[#allocation7 + $0x610] ss:$40 sps:$4 sm:$0xff]  }
  0xd8   :  { %1726 = vmatpush1.bf16.msra.mxu1 %v3864_v29 }
  0xd9   :  { %1622 = vmatpush1.bf16.msra.mxu0 %v3837_v20  ;;  %1727 = vmatprep.subr.bf16.mxu1 %v3872_v30  ;;  %v4066_v20 = vld [vmem:[#allocation2 + $0x1c] ss:$12 sps:$4 sm:$0xff]  }
  0xda   :  { %1644 = vmatprep.subr.bf16.mxu0 %v3845_v22  ;;  %v3936_v22 = vld [vmem:[#allocation7 + $0x5c0] ss:$40 sps:$4 sm:$0xff]  }
  0xdc   :  { %1624 = vmatmul.mubr.bf16.vlgmr.msra.gmra.mrb[8].mxu0 %v4293_v63  ;;  %1728 = vmatpush1.bf16.msra.mxu1 %v3870_v33 }
  0xdd   :  { %1645 = vmatpush1.bf16.msra.mxu0 %v3843_v27  ;;  %1633 = vmatprep.mubr.bf16.mxu0 %v4295_v1  ;;  %v4068_v27 = vld [vmem:[#allocation2 + $0x8] ss:$12 sps:$4 sm:$0xff]  }
  0xde   :  { %1646 = vmatprep.subr.bf16.mxu0 %v3851_v28  ;;  %1750 = vmatprep.subr.bf16.mxu1 %v3878_v34  ;;  %v292_v28 = vlaneseq }
  0xdf   :  { %1730 = vmatmul.mubr.bf16.vlgmr.msra.gmra.mrb[8].mxu1 %v4293_v63  ;;  %v3894_v63 = vld [vmem:[#allocation7 + $0x608] ss:$40 sps:$4 sm:$0xff]  }
  0xe0   :  { %1751 = vmatpush1.bf16.msra.mxu1 %v3876_v37  ;;  %1739 = vmatprep.mubr.bf16.mxu1 %v4295_v1  ;;  %v3879_v1 = vld [vmem:[#allocation7 + $0xc0] ss:$40 sps:$4 sm:$0xff]   ;;  %v4347_v29 = vshrl.u32 %v292_v28, 7 }
  0xe1   :  { %1647 = vmatpush1.bf16.msra.mxu0 %v3849_v31  ;;  %1752 = vmatprep.subr.bf16.mxu1 %v3884_v39  ;;  %v4353_v31 = vld [vmem:[%s4423_s3] sm:$0xff] }
  0xe2   :  { %1648 = vmatprep.subr.bf16.mxu0 %v3857_v32  ;;  %v294_v30 = vsub.s32 0, %v4347_v29  ;;  %v298_v32 = vsub.s32 1, %v4347_v29 }
  0xe4   :  { %1634 = vmatmul.mubr.bf16.gmra.mrb[12].mxu0 %v4299_v9  ;;  %1753 = vmatpush1.bf16.msra.mxu1 %v3882_v42  ;;  %v295_v33 = vrot.slane %v4353_v31, %v294_v30 }
  0xe5   :  { %1649 = vmatpush1.bf16.msra.mxu0 %v3855_v35  ;;  %1676 = vmatprep.mubr.bf16.mxu0 %v4197_v15 }
  0xe6   :  { %1650 = vmatprep.subr.bf16.mxu0 %v3863_v36  ;;  %1754 = vmatprep.subr.bf16.mxu1 %v3890_v43 }
  0xe7   :  { %1740 = vmatmul.mubr.bf16.gmra.mrb[12].mxu1 %v4299_v9  ;;  %v3891_v9 = vld [vmem:[#allocation7 + $0x160] ss:$40 sps:$4 sm:$0xff]  }
  0xe8   :  { %1755 = vmatpush1.bf16.msra.mxu1 %v3888_v46  ;;  %1782 = vmatprep.mubr.bf16.mxu1 %v4197_v15 }
  0xe9   :  { %1651 = vmatpush1.bf16.msra.mxu0 %v3861_v40  ;;  %1756 = vmatprep.subr.bf16.mxu1 %v3896_v47 }
  0xea   :  { %1803 = vmatprep.subr.bf16.mxu0 %v3869_v41  ;;  %v302_v41 = vsub.s32 2, %v4347_v29 }
  0xec   :  { %3340 = vmatmul.mubr.msk.bf16.vlgmr.msra.gmra.mrb[8].mxu0 %vm1372_vm0, %v4304_v17  ;;  %1757 = vmatpush1.bf16.msra.mxu1 %v3894_v63 }
  0xed   :  { %1804 = vmatpush1.bf16.msra.mxu0 %v3867_v44  ;;  %1686 = vmatprep.mubr.bf16.mxu0 %v4197_v15  ;;  %v306_v44 = vsub.s32 3, %v4347_v29 }
  0xee   :  { %1805 = vmatprep.subr.bf16.mxu0 %v3875_v45 }
  0xef   :  { %3342 = vmatmul.mubr.msk.bf16.vlgmr.msra.gmra.mrb[8].mxu1 %vm1372_vm0, %v4304_v17  ;;  %v3903_v17 = vld [vmem:[#allocation7 + $0x250] ss:$40 sps:$4 sm:$0xff]  }
  0xf0   :  { %1792 = vmatprep.mubr.bf16.mxu1 %v4197_v15 }
  0xf1   :  { %1806 = vmatpush1.bf16.msra.mxu0 %v3873_v48  ;;  %v303_v48 = vrot.slane %v4353_v31, %v302_v41 }
  0xf2   :  { %1807 = vmatprep.subr.bf16.mxu0 %v3881_v49 }
  0xf4   :  { %3341 = vmatmul.mubr.msk.bf16.gmra.mrb[12].mxu0 %vm1372_vm0, %v4311_v26 }
  0xf5   :  { %1808 = vmatpush1.bf16.msra.mxu0 %v3879_v1  ;;  %1835 = vmatprep.mubr.bf16.mxu0 %v4064_v53  ;;  %v307_v1 = vrot.slane %v4353_v31, %v306_v44 }
  0xf6   :  { %1809 = vmatprep.subr.bf16.mxu0 %v3887_v50 }
  0xf7   :  { %3343 = vmatmul.mubr.msk.bf16.gmra.mrb[12].mxu1 %vm1372_vm0, %v4311_v26 }
  0xf8   :  { %2066 = vmatprep.mubr.bf16.mxu1 %v4197_v15 }
  0xf9   :  { %1810 = vmatpush1.bf16.msra.mxu0 %v3885_v51 }
  0xfa   :  { %1811 = vmatprep.subr.bf16.mxu0 %v3893_v52 }
  0xfd   :  { %1812 = vmatpush1.bf16.msra.mxu0 %v3891_v9 }
  0xfe   :  { %1813 = vmatprep.subr.bf16.mxu0 %v3899_v38 }
 0x101   :  { %1814 = vmatpush1.bf16.msra.mxu0 %v3897_v54 }
 0x102   :  { %1815 = vmatprep.subr.bf16.mxu0 %v3902_v55 }
 0x105   :  { %1816 = vmatpush1.bf16.msra.mxu0 %v3900_v56 }
 0x106   :  { %1817 = vmatprep.subr.bf16.mxu0 %v3905_v57 }
 0x109   :  { %1818 = vmatpush1.bf16.msra.mxu0 %v3903_v17 }
 0x10a   :  { %1819 = vmatprep.subr.bf16.mxu0 %v3908_v58 }
 0x10d   :  { %1820 = vmatpush1.bf16.msra.mxu0 %v3906_v59 }
 0x10e   :  { %1821 = vmatprep.subr.bf16.mxu0 %v3911_v60 }
 0x111   :  { %1822 = vmatpush1.bf16.msra.mxu0 %v3909_v61 }
 0x112   :  { %1823 = vmatprep.subr.bf16.mxu0 %v3914_v62 }
 0x115   :  { %1824 = vmatpush1.bf16.msra.mxu0 %v3912_v0 }
 0x116   :  { %1825 = vmatprep.subr.bf16.mxu0 %v3917_v2 }
 0x119   :  { %1826 = vmatpush1.bf16.msra.mxu0 %v3915_v3 }
 0x11a   :  { %1827 = vmatprep.subr.bf16.mxu0 %v3920_v4 }
 0x11d   :  { %1828 = vmatpush1.bf16.msra.mxu0 %v3918_v5 }
 0x11e   :  { %1829 = vmatprep.subr.bf16.mxu0 %v3923_v6 }
 0x121   :  { %1830 = vmatpush1.bf16.msra.mxu0 %v3921_v7 }
 0x122   :  { %1831 = vmatprep.subr.bf16.mxu0 %v3926_v8 }
 0x125   :  { %1832 = vmatpush1.bf16.msra.mxu0 %v3924_v10 }
 0x126   :  { %1833 = vmatprep.subr.bf16.mxu0 %v3929_v11 }
 0x129   :  { %1834 = vmatpush1.bf16.msra.mxu0 %v3927_v12 }
 0x12a   :  { %1856 = vmatprep.subr.bf16.mxu0 %v3932_v13 }
 0x12c   :  { %1836 = vmatmul.mubr.bf16.vlgmr.msra.gmra.mrb[16].mxu0 %v4065_v18 }
 0x12d   :  { %1857 = vmatpush1.bf16.msra.mxu0 %v3930_v14  ;;  %1845 = vmatprep.mubr.bf16.mxu0 %v4066_v20 }
 0x12e   :  { %1858 = vmatprep.subr.bf16.mxu0 %v3935_v16 }
 0x131   :  { %1859 = vmatpush1.bf16.msra.mxu0 %v3933_v19 }
 0x132   :  { %1860 = vmatprep.subr.bf16.mxu0 %v3938_v21 }
 0x134   :  { %1846 = vmatmul.mubr.bf16.gmra.mrb[20].mxu0 %v4067_v24 }
 0x135   :  { %1861 = vmatpush1.bf16.msra.mxu0 %v3936_v22  ;;  %1888 = vmatprep.mubr.bf16.mxu0 %v4197_v15 }
 0x136   :  { %1862 = vmatprep.subr.bf16.mxu0 %v3941_v23 }
 0x139   :  { %1863 = vmatpush1.bf16.msra.mxu0 %v3939_v25 }
 0x13c   :  { %3344 = vmatmul.mubr.msk.bf16.vlgmr.msra.gmra.mrb[16].mxu0 %vm1372_vm0, %v4068_v27 }
 0x13d   :  { %1898 = vmatprep.mubr.bf16.mxu0 %v4197_v15 }
 0x144   :  { %3345 = vmatmul.mubr.msk.bf16.gmra.mrb[20].mxu0 %vm1372_vm0, %v4311_v26  ;;  %v299_v26 = vrot.slane %v4353_v31, %v298_v32 }
 0x16f   :  { %v1466_v34 = vpop.f32.mrb[0].mxu0 }
 0x170   :  { %v1468_v35 = vpop.f32.mrb[1].mxu0  ;;  %v3542_v37 = vadd.f32 %v1466_v34, %v295_v33 }
 0x171   :  { %v1470_v36 = vpop.f32.mrb[2].mxu0  ;;  %v3543_v42 = vadd.f32 %v1468_v35, %v299_v26 }
 0x172   :  { %v3544_v39 = vadd.f32 %v1470_v36, %v295_v33  ;;  %v1472_v40 = vpop.f32.mrb[3].mxu0  ;;  %v1572_v52 = vpop.f32.mrb[0].mxu1 }
 0x173   :  { %v3545_v43 = vadd.f32 %v1472_v40, %v299_v26  ;;  %v3550_v54 = vadd.f32 %v1572_v52, %v303_v48  ;;  %v1574_v55 = vpop.f32.mrb[1].mxu1 }
 0x174   :  { %v1909_v45 = vpack.c.bf16 %v3544_v39, %v3542_v37  ;;  %v3551_v17 = vadd.f32 %v1574_v55, %v307_v1  ;;  %v1576_v58 = vpop.f32.mrb[2].mxu1 }
 0x175   :  { %v1910_v46 = vpack.c.bf16 %v3545_v43, %v3543_v42  ;;  %v3552_v60 = vadd.f32 %v1576_v58, %v303_v48  ;;  %v1578_v61 = vpop.f32.mrb[3].mxu1  ;;  %v310_v58 = vsub.s32 4, %v4347_v29 }
 0x176   :  { %v1929_v47 = vmul.bf16 1056980736, %v1909_v45  ;;  %v3553_v0 = vadd.f32 %v1578_v61, %v307_v1  ;;  %v3949_v61 = vld [vmem:[#allocation8 + $0x88] sm:$0xff]  }
 0x177   :  { %v1930_v49 = vmul.bf16 1056980736, %v1910_v46  ;;  %v1476_v63 = vpop.f32.mrb[4].mxu0  ;;  %v1911_v3 = vpack.c.bf16 %v3552_v60, %v3550_v54  ;;  %v3948_v60 = vld [vmem:[#allocation8 + $0xc8] sm:$0xff]  }
 0x178   :  { %4022 = vtanh.bf16 %v1929_v47  ;;  %v1478_v50 = vpop.f32.mrb[5].mxu0  ;;  %v3546_v53 = vadd.f32 %v1476_v63, %v295_v33  ;;  %v1912_v5 = vpack.c.bf16 %v3553_v0, %v3551_v17  ;;  %v3945_v17 = vld [vmem:[#allocation8 + $0x80] sm:$0xff]  }
 0x179   :  { %4024 = vtanh.bf16 %v1930_v49  ;;  %v1480_v51 = vpop.f32.mrb[6].mxu0  ;;  %v3547_v56 = vadd.f32 %v1478_v50, %v299_v26  ;;  %v1931_v6 = vmul.bf16 1056980736, %v1911_v3  ;;  %v4366_v50 = vld [vmem:[#allocation5] sm:$0xf] }
 0x17a   :  { %v3548_v9 = vadd.f32 %v1480_v51, %v295_v33  ;;  %v1482_v38 = vpop.f32.mrb[7].mxu0  ;;  %v1932_v7 = vmul.bf16 1056980736, %v1912_v5  ;;  %v1582_v8 = vpop.f32.mrb[4].mxu1 }
 0x17b   :  { %v3549_v57 = vadd.f32 %v1482_v38, %v299_v26  ;;  %v3554_v10 = vadd.f32 %v1582_v8, %v303_v48  ;;  %v1584_v11 = vpop.f32.mrb[5].mxu1 }
 0x17c   :  { %v1919_v59 = vpack.c.bf16 %v3548_v9, %v3546_v53  ;;  %v3555_v13 = vadd.f32 %v1584_v11, %v307_v1  ;;  %v1586_v14 = vpop.f32.mrb[6].mxu1  ;;  %v318_v11 = vsub.s32 6, %v4347_v29 }
 0x17d   :  { %v1920_v62 = vpack.c.bf16 %v3549_v57, %v3547_v56  ;;  %v3556_v19 = vadd.f32 %v1586_v14, %v303_v48  ;;  %v1588_v20 = vpop.f32.mrb[7].mxu1  ;;  %v3944_v57 = vld [vmem:[#allocation8 + $0xc0] sm:$0xff]   ;;  %v322_v14 = vsub.s32 7, %v4347_v29 }
 0x17e   :  { %v1939_v2 = vmul.bf16 1056980736, %v1919_v59  ;;  %v3557_v22 = vadd.f32 %v1588_v20, %v307_v1  ;;  %3454 = vmatprep.subr.bf16.mxu0 %v3944_v57 }
 0x17f   :  { %v1940_v4 = vmul.bf16 1056980736, %v1920_v62  ;;  %v1921_v24 = vpack.c.bf16 %v3556_v19, %v3554_v10  ;;  %3455 = vmatpush3.bf16.msra.mxu0 %v3945_v17  ;;  %v3957_v19 = vld [vmem:[#allocation8 + $0x98] sm:$0xff]  }
 0x180   :  { %4026 = vtanh.bf16 %v1939_v2  ;;  %v1922_v27 = vpack.c.bf16 %v3557_v22, %v3555_v13  ;;  %3456 = vmatprep.subr.bf16.mxu0 %v3948_v60  ;;  %v319_v22 = vrot.slane %v4353_v31, %v318_v11 }
 0x181   :  { %4028 = vtanh.bf16 %v1940_v4  ;;  %v1941_v28 = vmul.bf16 1056980736, %v1921_v24  ;;  %v3952_v4 = vld [vmem:[#allocation8 + $0xd0] sm:$0xff]  }
 0x182   :  { %4030 = vtanh.bf16 %v1931_v6  ;;  %v1942_v34 = vmul.bf16 1056980736, %v1922_v27 }
 0x183   :  { %v4023_v12 = vpop.eup %4022  ;;  %4032 = vtanh.bf16 %v1932_v7  ;;  %3457 = vmatpush3.bf16.msra.mxu0 %v3949_v61 }
 0x184   :  { %v4025_v16 = vpop.eup %4024  ;;  %v1969_v18 = vadd.bf16 1065369472, %v4023_v12  ;;  %4034 = vtanh.bf16 %v1941_v28  ;;  %3458 = vmatprep.subr.bf16.mxu0 %v3952_v4  ;;  %v3960_v28 = vld [vmem:[#allocation8 + $0xe0] sm:$0xff]  }
 0x185   :  { %v1970_v21 = vadd.bf16 1065369472, %v4025_v16  ;;  %4036 = vtanh.bf16 %v1942_v34 }
 0x186   :  { %v1989_v23 = vmul.bf16 1056980736, %v1969_v18  ;;  %v3956_v18 = vld [vmem:[#allocation8 + $0xd8] sm:$0xff]  }
 0x187   :  { %v1990_v25 = vmul.bf16 1056980736, %v1970_v21 }
 0x188   :  { %v2009_v26 = vmul.bf16 %v1989_v23, %v1909_v45 }
 0x189   :  { %v2010_v33 = vmul.bf16 %v1990_v25, %v1910_v46  ;;  %v323_v25 = vrot.slane %v4353_v31, %v322_v14 }
 0x18b   :  { %v4027_v35 = vpop.eup %4026  ;;  %2034 = vmatprep.subr.bf16.mxu1 %v2010_v33  ;;  %v3961_v33 = vld [vmem:[#allocation8 + $0xa0] sm:$0xff]  }
 0x18c   :  { %v4029_v36 = vpop.eup %4028  ;;  %v1979_v37 = vadd.bf16 1065369472, %v4027_v35  ;;  %2035 = vmatpush1.bf16.msra.mxu1 %v2009_v26 }
 0x18d   :  { %v4031_v39 = vpop.eup %4030  ;;  %v1980_v40 = vadd.bf16 1065369472, %v4029_v36 }
 0x18e   :  { %v4033_v41 = vpop.eup %4032  ;;  %v1999_v42 = vmul.bf16 1056980736, %v1979_v37  ;;  %v1971_v43 = vadd.bf16 1065369472, %v4031_v39 }
 0x18f   :  { %v2000_v44 = vmul.bf16 1056980736, %v1980_v40  ;;  %v1972_v47 = vadd.bf16 1065369472, %v4033_v41  ;;  %v4035_v51 = vpop.eup %4034 }
 0x190   :  { %v1991_v48 = vmul.bf16 1056980736, %v1971_v43  ;;  %v2019_v46 = vmul.bf16 %v1999_v42, %v1919_v59  ;;  %v4037_v52 = vpop.eup %4036  ;;  %v1981_v53 = vadd.bf16 1065369472, %v4035_v51  ;;  %v314_v59 = vsub.s32 5, %v4347_v29 }
 0x191   :  { %v2020_v49 = vmul.bf16 %v2000_v44, %v1920_v62  ;;  %v1992_v63 = vmul.bf16 1056980736, %v1972_v47  ;;  %v1982_v9 = vadd.bf16 1065369472, %v4037_v52  ;;  %v311_v62 = vrot.slane %v4353_v31, %v310_v58 }
 0x192   :  { %v2011_v1 = vmul.bf16 %v1991_v48, %v1911_v3  ;;  %v2001_v38 = vmul.bf16 1056980736, %v1981_v53  ;;  %v315_v2 = vrot.slane %v4353_v31, %v314_v59 }
 0x193   :  { %2036 = vmatprep.subr.bf16.mxu1 %v2020_v49  ;;  %v2012_v45 = vmul.bf16 %v1992_v63, %v1912_v5  ;;  %v2002_v54 = vmul.bf16 1056980736, %v1982_v9  ;;  %v3953_v5 = vld [vmem:[#allocation8 + $0x90] sm:$0xff]   ;;  %v3964_v49 = vld [vmem:[#allocation8 + $0xe8] sm:$0xff]  }
 0x194   :  { %2037 = vmatpush1.bf16.msra.mxu1 %v2019_v46  ;;  %v2021_v55 = vmul.bf16 %v2001_v38, %v1921_v24  ;;  %3459 = vmatpush3.bf16.msra.mxu0 %v3953_v5  ;;  %v3965_v63 = vld [vmem:[#allocation8 + $0xa8] sm:$0xff]  }
 0x195   :  { %2075 = vmatprep.subr.bf16.mxu1 %v2012_v45  ;;  %v2022_v56 = vmul.bf16 %v2002_v54, %v1922_v27  ;;  %3460 = vmatprep.subr.bf16.mxu0 %v3956_v18 }
 0x197   :  { %3346 = vmatmul.mubr.msk.bf16.vlgmr.msra.gmra.mrb[16].mxu1 %vm2030_vm1, %v4366_v50 }
 0x198   :  { %2076 = vmatpush1.bf16.msra.mxu1 %v2011_v1  ;;  %2107 = vmatprep.mubr.bf16.mxu1 %v4197_v15 }
 0x199   :  { %2077 = vmatprep.subr.bf16.mxu1 %v2022_v56  ;;  %3461 = vmatpush3.bf16.msra.mxu0 %v3957_v19 }
 0x19a   :  { %3462 = vmatprep.subr.bf16.mxu0 %v3960_v28 }
 0x19c   :  { %2078 = vmatpush1.bf16.msra.mxu1 %v2021_v55 }
 0x19d   :  { %3463 = vmatpush3.bf16.msra.mxu0 %v3961_v33 }
 0x19e   :  { %3464 = vmatprep.subr.bf16.mxu0 %v3964_v49  ;;  %v289_v49 = vld [vmem:[%s4423_s3 + $0x8] sm:$0x3] }
 0x19f   :  { %3347 = vmatmul.mubr.msk.bf16.vlgmr.msra.gmra.mrb[20].mxu1 %vm2030_vm1, %v4366_v50 }
 0x1a0   :  { %2148 = vmatprep.mubr.bf16.mxu1 %v4197_v15 }
 0x1a1   :  { %3465 = vmatpush3.bf16.msra.mxu0 %v3965_v63  ;;  %v327_v63 = vrot.slane %v289_v49, %v294_v30 }
 0x1bf   :  { %v1678_v0 = vpop.f32.mrb[8].mxu0 }
 0x1c0   :  { %v1680_v3 = vpop.f32.mrb[9].mxu0  ;;  %v3558_v7 = vadd.f32 %v1678_v0, %v311_v62 }
 0x1c1   :  { %v1682_v6 = vpop.f32.mrb[10].mxu0  ;;  %v3559_v12 = vadd.f32 %v1680_v3, %v315_v2 }
 0x1c2   :  { %v3560_v8 = vadd.f32 %v1682_v6, %v311_v62  ;;  %v1684_v10 = vpop.f32.mrb[11].mxu0  ;;  %v1784_v26 = vpop.f32.mrb[8].mxu1 }
 0x1c3   :  { %v3561_v13 = vadd.f32 %v1684_v10, %v315_v2  ;;  %v3566_v39 = vadd.f32 %v1784_v26, %v319_v22  ;;  %v1786_v40 = vpop.f32.mrb[9].mxu1 }
 0x1c4   :  { %v4380_v16 = vpack.c.bf16 %v3560_v8, %v3558_v7  ;;  %v3567_v43 = vadd.f32 %v1786_v40, %v323_v25  ;;  %v1788_v44 = vpop.f32.mrb[10].mxu1 }
 0x1c5   :  { %v4382_v20 = vpack.c.bf16 %v3561_v13, %v3559_v12  ;;  %v3568_v47 = vadd.f32 %v1788_v44, %v319_v22  ;;  %v1790_v48 = vpop.f32.mrb[11].mxu1  ;;  %v3969_v44 = vld [vmem:[#allocation8 + $0xb0] sm:$0xff]  }
 0x1c6   :  { %v1933_v21 = vmul.bf16 1056980736, %v4380_v16  ;;  %v3569_v45 = vadd.f32 %v1790_v48, %v323_v25  ;;  %v3976_v48 = vld [vmem:[#allocation8 + $0x1c0] sm:$0xff]  }
 0x1c7   :  { %v1934_v23 = vmul.bf16 1056980736, %v4382_v20  ;;  %v1688_v24 = vpop.f32.mrb[12].mxu0  ;;  %v1915_v51 = vpack.c.bf16 %v3568_v47, %v3566_v39  ;;  %v3973_v47 = vld [vmem:[#allocation8 + $0xb8] sm:$0xff]  }
 0x1c8   :  { %4038 = vtanh.bf16 %v1933_v21  ;;  %v1690_v27 = vpop.f32.mrb[13].mxu0  ;;  %v3562_v35 = vadd.f32 %v1688_v24, %v311_v62  ;;  %v1916_v53 = vpack.c.bf16 %v3569_v45, %v3567_v43  ;;  %v3968_v43 = vld [vmem:[#allocation8 + $0xf0] sm:$0xff]   ;;  %v331_v45 = vrot.slane %v289_v49, %v298_v32 }
 0x1c9   :  { %4040 = vtanh.bf16 %v1934_v23  ;;  %v1692_v34 = vpop.f32.mrb[14].mxu0  ;;  %v3563_v41 = vadd.f32 %v1690_v27, %v315_v2  ;;  %v1935_v9 = vmul.bf16 1056980736, %v1915_v51  ;;  %3466 = vmatprep.subr.bf16.mxu0 %v3968_v43  ;;  %v3974_v43 = vld [vmem:[#allocation8 + $0x140] sm:$0xff]  }
 0x1ca   :  { %v3564_v36 = vadd.f32 %v1692_v34, %v311_v62  ;;  %v1694_v37 = vpop.f32.mrb[15].mxu0  ;;  %v1936_v38 = vmul.bf16 1056980736, %v1916_v53  ;;  %v1794_v54 = vpop.f32.mrb[12].mxu1  ;;  %3467 = vmatpush3.bf16.msra.mxu0 %v3969_v44 }
 0x1cb   :  { %v3565_v42 = vadd.f32 %v1694_v37, %v315_v2  ;;  %v3570_v55 = vadd.f32 %v1794_v54, %v319_v22  ;;  %v1796_v56 = vpop.f32.mrb[13].mxu1 }
 0x1cc   :  { %v1923_v31 = vpack.c.bf16 %v3564_v36, %v3562_v35  ;;  %v3571_v17 = vadd.f32 %v1796_v56, %v323_v25  ;;  %v1798_v58 = vpop.f32.mrb[14].mxu1 }
 0x1cd   :  { %v1924_v46 = vpack.c.bf16 %v3565_v42, %v3563_v41  ;;  %v3572_v61 = vadd.f32 %v1798_v58, %v319_v22  ;;  %v1800_v62 = vpop.f32.mrb[15].mxu1 }
 0x1ce   :  { %v1943_v1 = vmul.bf16 1056980736, %v1923_v31  ;;  %v3573_v2 = vadd.f32 %v1800_v62, %v323_v25 }
 0x1cf   :  { %v1944_v52 = vmul.bf16 1056980736, %v1924_v46  ;;  %v1925_v4 = vpack.c.bf16 %v3572_v61, %v3570_v55 }
 0x1d0   :  { %4042 = vtanh.bf16 %v1943_v1  ;;  %v1926_v6 = vpack.c.bf16 %v3573_v2, %v3571_v17 }
 0x1d1   :  { %4044 = vtanh.bf16 %v1944_v52  ;;  %v1945_v7 = vmul.bf16 1056980736, %v1925_v4 }
 0x1d2   :  { %4046 = vtanh.bf16 %v1935_v9  ;;  %v1946_v10 = vmul.bf16 1056980736, %v1926_v6 }
 0x1d3   :  { %v4039_v57 = vpop.eup %4038  ;;  %4048 = vtanh.bf16 %v1936_v38 }
 0x1d4   :  { %v4041_v59 = vpop.eup %4040  ;;  %v1973_v60 = vadd.bf16 1065369472, %v4039_v57  ;;  %4050 = vtanh.bf16 %v1945_v7 }
 0x1d5   :  { %v1974_v0 = vadd.bf16 1065369472, %v4041_v59  ;;  %4052 = vtanh.bf16 %v1946_v10 }
 0x1d6   :  { %v1993_v3 = vmul.bf16 1056980736, %v1973_v60 }
 0x1d7   :  { %v1994_v5 = vmul.bf16 1056980736, %v1974_v0 }
 0x1d8   :  { %v2013_v11 = vmul.bf16 %v1993_v3, %v4380_v16 }
 0x1d9   :  { %v2014_v8 = vmul.bf16 %v1994_v5, %v4382_v20 }
 0x1db   :  { %v4043_v12 = vpop.eup %4042  ;;  %2116 = vmatprep.subr.bf16.mxu1 %v2014_v8 }
 0x1dc   :  { %v4045_v13 = vpop.eup %4044  ;;  %v1983_v14 = vadd.bf16 1065369472, %v4043_v12  ;;  %2117 = vmatpush1.bf16.msra.mxu1 %v2013_v11 }
 0x1dd   :  { %v4047_v18 = vpop.eup %4046  ;;  %v1984_v19 = vadd.bf16 1065369472, %v4045_v13 }
 0x1de   :  { %v4049_v21 = vpop.eup %4048  ;;  %v2003_v22 = vmul.bf16 1056980736, %v1983_v14  ;;  %v1975_v23 = vadd.bf16 1065369472, %v4047_v18 }
 0x1df   :  { %v2004_v24 = vmul.bf16 1056980736, %v1984_v19  ;;  %v1976_v25 = vadd.bf16 1065369472, %v4049_v21  ;;  %v4051_v26 = vpop.eup %4050 }
 0x1e0   :  { %v1995_v27 = vmul.bf16 1056980736, %v1975_v23  ;;  %v2023_v33 = vmul.bf16 %v2003_v22, %v1923_v31  ;;  %v4053_v35 = vpop.eup %4052  ;;  %v1985_v36 = vadd.bf16 1065369472, %v4051_v26  ;;  %v3972_v31 = vld [vmem:[#allocation8 + $0xf8] sm:$0xff]  }
 0x1e1   :  { %v2024_v28 = vmul.bf16 %v2004_v24, %v1924_v46  ;;  %v1996_v20 = vmul.bf16 1056980736, %v1976_v25  ;;  %v1986_v37 = vadd.bf16 1065369472, %v4053_v35  ;;  %3468 = vmatprep.subr.bf16.mxu0 %v3972_v31  ;;  %v3942_v24 = vld [vmem:[#allocation8 + $0x40] sm:$0xff]   ;;  %v3955_v26 = vld [vmem:[#allocation8 + $0x18] sm:$0xff]  }
 0x1e2   :  { %v2015_v34 = vmul.bf16 %v1995_v27, %v1915_v51  ;;  %v2005_v39 = vmul.bf16 1056980736, %v1985_v36  ;;  %3469 = vmatpush3.bf16.msra.mxu0 %v3973_v47  ;;  %v3943_v27 = vld [vmem:[#allocation8] sm:$0xff]  }
 0x1e3   :  { %2118 = vmatprep.subr.bf16.mxu1 %v2024_v28  ;;  %v2016_v16 = vmul.bf16 %v1996_v20, %v1916_v53  ;;  %v2006_v40 = vmul.bf16 1056980736, %v1986_v37  ;;  %3498 = vmatprep.subr.bf16.mxu0 %v3976_v48  ;;  %v3946_v28 = vld [vmem:[#allocation8 + $0x48] sm:$0xff]   ;;  %v3958_v35 = vld [vmem:[#allocation8 + $0x60] sm:$0xff]  }
 0x1e4   :  { %2119 = vmatpush1.bf16.msra.mxu1 %v2023_v33  ;;  %v2025_v41 = vmul.bf16 %v2005_v39, %v1925_v4  ;;  %v3947_v20 = vld [vmem:[#allocation8 + $0x8] sm:$0xff]   ;;  %v3950_v33 = vld [vmem:[#allocation8 + $0x50] sm:$0xff]   ;;  %v3959_v36 = vld [vmem:[#allocation8 + $0x20] sm:$0xff]  }
 0x1e5   :  { %2157 = vmatprep.subr.bf16.mxu1 %v2016_v16  ;;  %v2026_v42 = vmul.bf16 %v2006_v40, %v1926_v6  ;;  %v3951_v16 = vld [vmem:[#allocation8 + $0x10] sm:$0xff]   ;;  %v3962_v37 = vld [vmem:[#allocation8 + $0x68] sm:$0xff]  }
 0x1e6   :  { %v3963_v39 = vld [vmem:[#allocation8 + $0x28] sm:$0xff]   ;;  %v3967_v40 = vld [vmem:[#allocation8 + $0x30] sm:$0xff]  }
 0x1e7   :  { %3348 = vmatmul.mubr.msk.bf16.vlgmr.msra.gmra.mrb[24].mxu1 %vm2030_vm1, %v4366_v50 }
 0x1e8   :  { %2158 = vmatpush1.bf16.msra.mxu1 %v2015_v34  ;;  %2189 = vmatprep.mubr.bf16.mxu1 %v4197_v15  ;;  %v3954_v34 = vld [vmem:[#allocation8 + $0x58] sm:$0xff]  }
 0x1e9   :  { %2159 = vmatprep.subr.bf16.mxu1 %v2026_v42  ;;  %v3971_v42 = vld [vmem:[#allocation8 + $0x38] sm:$0xff]  }
 0x1ec   :  { %2160 = vmatpush1.bf16.msra.mxu1 %v2025_v41  ;;  %v3970_v41 = vld [vmem:[#allocation8 + $0x78] sm:$0xff]  }
 0x1ef   :  { %3349 = vmatmul.mubr.msk.bf16.vlgmr.msra.gmra.mrb[28].mxu1 %vm2030_vm1, %v4366_v50 }
 0x1f0   :  { %2230 = vmatprep.mubr.bf16.mxu1 %v4197_v15 }
 0x20f   :  { %v1890_v46 = vpop.f32.mrb[16].mxu0 }
 0x210   :  { %v1892_v1 = vpop.f32.mrb[17].mxu0  ;;  %v3574_v15 = vadd.f32 %v1890_v46, %v327_v63 }
 0x211   :  { %v1894_v51 = vpop.f32.mrb[18].mxu0  ;;  %v3575_v9 = vadd.f32 %v1892_v1, %v331_v45  ;;  %v3975_v1 = vld [vmem:[#allocation8 + $0x100] sm:$0xff]  }
 0x212   :  { %v3576_v52 = vadd.f32 %v1894_v51, %v327_v63  ;;  %v1896_v53 = vpop.f32.mrb[19].mxu0  ;;  %v3978_v51 = vld [vmem:[#allocation8 + $0x148] sm:$0xff]  }
 0x213   :  { %v3577_v38 = vadd.f32 %v1896_v53, %v331_v45 }
 0x214   :  { %v1917_v54 = vpack.c.bf16 %v3576_v52, %v3574_v15  ;;  %v3979_v15 = vld [vmem:[#allocation8 + $0x108] sm:$0xff]   ;;  %v3982_v52 = vld [vmem:[#allocation8 + $0x150] sm:$0xff]  }
 0x215   :  { %v1918_v55 = vpack.c.bf16 %v3577_v38, %v3575_v9 }
 0x216   :  { %v1937_v56 = vmul.bf16 1056980736, %v1917_v54 }
 0x217   :  { %v1938_v57 = vmul.bf16 1056980736, %v1918_v55  ;;  %v1900_v17 = vpop.f32.mrb[20].mxu0 }
 0x218   :  { %4054 = vtanh.bf16 %v1937_v56  ;;  %v1902_v58 = vpop.f32.mrb[21].mxu0  ;;  %v3578_v59 = vadd.f32 %v1900_v17, %v327_v63  ;;  %v3986_v17 = vld [vmem:[#allocation8 + $0x158] sm:$0xff]  }
 0x219   :  { %4056 = vtanh.bf16 %v1938_v57  ;;  %v1904_v30 = vpop.f32.mrb[22].mxu0  ;;  %v3579_v32 = vadd.f32 %v1902_v58, %v331_v45 }
 0x21a   :  { %v3580_v60 = vadd.f32 %v1904_v30, %v327_v63  ;;  %v1906_v29 = vpop.f32.mrb[23].mxu0 }
 0x21b   :  { %v3581_v61 = vadd.f32 %v1906_v29, %v331_v45  ;;  %v3987_v29 = vld [vmem:[#allocation8 + $0x118] sm:$0xff]  }
 0x21c   :  { %v1927_v62 = vpack.c.bf16 %v3580_v60, %v3578_v59  ;;  %v3977_v59 = vld [vmem:[#allocation8 + $0x180] sm:$0xff]   ;;  %v3980_v60 = vld [vmem:[#allocation8 + $0x1c8] sm:$0xff]  }
 0x21d   :  { %v1928_v0 = vpack.c.bf16 %v3581_v61, %v3579_v32  ;;  %v3990_v32 = vld [vmem:[#allocation8 + $0x160] sm:$0xff]   ;;  %v3981_v61 = vld [vmem:[#allocation8 + $0x188] sm:$0xff]  }
 0x21e   :  { %v1947_v2 = vmul.bf16 1056980736, %v1927_v62 }
 0x21f   :  { %v1948_v3 = vmul.bf16 1056980736, %v1928_v0 }
 0x220   :  { %4058 = vtanh.bf16 %v1947_v2  ;;  %v3994_v2 = vld [vmem:[#allocation8 + $0x168] sm:$0xff]  }
 0x221   :  { %4060 = vtanh.bf16 %v1948_v3  ;;  %v3985_v3 = vld [vmem:[#allocation8 + $0x190] sm:$0xff]  }
 0x223   :  { %v4055_v4 = vpop.eup %4054 }
 0x224   :  { %v4057_v5 = vpop.eup %4056  ;;  %v1977_v6 = vadd.bf16 1065369472, %v4055_v4  ;;  %v3988_v4 = vld [vmem:[#allocation8 + $0x1d8] sm:$0xff]  }
 0x225   :  { %v1978_v7 = vadd.bf16 1065369472, %v4057_v5  ;;  %v3995_v5 = vld [vmem:[#allocation8 + $0x128] sm:$0xff]  }
 0x226   :  { %v1997_v8 = vmul.bf16 1056980736, %v1977_v6  ;;  %v3998_v6 = vld [vmem:[#allocation8 + $0x170] sm:$0xff]  }
 0x227   :  { %v1998_v10 = vmul.bf16 1056980736, %v1978_v7  ;;  %v3989_v7 = vld [vmem:[#allocation8 + $0x198] sm:$0xff]  }
 0x228   :  { %v2017_v12 = vmul.bf16 %v1997_v8, %v1917_v54  ;;  %v3992_v8 = vld [vmem:[#allocation8 + $0x1e0] sm:$0xff]  }
 0x229   :  { %v2018_v11 = vmul.bf16 %v1998_v10, %v1918_v55  ;;  %v3983_v55 = vld [vmem:[#allocation8 + $0x110] sm:$0xff]  }
 0x22a   :  { %v3999_v10 = vld [vmem:[#allocation8 + $0x130] sm:$0xff]  }
 0x22b   :  { %v4059_v13 = vpop.eup %4058  ;;  %2198 = vmatprep.subr.bf16.mxu1 %v2018_v11  ;;  %v4002_v11 = vld [vmem:[#allocation8 + $0x178] sm:$0xff]  }
 0x22c   :  { %v4061_v14 = vpop.eup %4060  ;;  %v1987_v18 = vadd.bf16 1065369472, %v4059_v13  ;;  %2199 = vmatpush1.bf16.msra.mxu1 %v2017_v12  ;;  %v3993_v12 = vld [vmem:[#allocation8 + $0x1a0] sm:$0xff]   ;;  %v3996_v13 = vld [vmem:[#allocation8 + $0x1e8] sm:$0xff]  }
 0x22d   :  { %v1988_v19 = vadd.bf16 1065369472, %v4061_v14  ;;  %v4003_v14 = vld [vmem:[#allocation8 + $0x138] sm:$0xff]  }
 0x22e   :  { %v2007_v21 = vmul.bf16 1056980736, %v1987_v18  ;;  %v4006_v18 = vld [vmem:[#allocation8 + $0x240] sm:$0xff]  }
 0x22f   :  { %v2008_v22 = vmul.bf16 1056980736, %v1988_v19  ;;  %v3997_v19 = vld [vmem:[#allocation8 + $0x1a8] sm:$0xff]  }
 0x230   :  { %v2027_v25 = vmul.bf16 %v2007_v21, %v1927_v62  ;;  %v3984_v62 = vld [vmem:[#allocation8 + $0x1d0] sm:$0xff]  }
 0x231   :  { %v2028_v23 = vmul.bf16 %v2008_v22, %v1928_v0  ;;  %v3991_v0 = vld [vmem:[#allocation8 + $0x120] sm:$0xff]   ;;  %v4000_v21 = vld [vmem:[#allocation8 + $0x1f0] sm:$0xff]  }
 0x232   :  { %v4001_v22 = vld [vmem:[#allocation8 + $0x1b0] sm:$0xff]  }
 0x233   :  { %2200 = vmatprep.subr.bf16.mxu1 %v2028_v23  ;;  %v4004_v23 = vld [vmem:[#allocation8 + $0x1f8] sm:$0xff]  }
 0x234   :  { %2201 = vmatpush1.bf16.msra.mxu1 %v2027_v25 }
 0x235   :  { %3432 = vmatprep.subr.bf16.mxu1 %v3942_v24  ;;  %v4005_v24 = vld [vmem:[#allocation8 + $0x1b8] sm:$0xff]  }
 0x237   :  { %3350 = vmatmul.mubr.msk.bf16.vlgmr.msra.gmra.mrb[32].mxu1 %vm2030_vm1, %v4366_v50  ;;  %v3966_v50 = vld [vmem:[#allocation8 + $0x70] sm:$0xff]  }
 0x238   :  { %3433 = vmatpush3.bf16.msra.mxu1 %v3943_v27 }
 0x239   :  { %3434 = vmatprep.subr.bf16.mxu1 %v3946_v28 }
 0x23c   :  { %3435 = vmatpush3.bf16.msra.mxu1 %v3947_v20 }
 0x23d   :  { %3436 = vmatprep.subr.bf16.mxu1 %v3950_v33 }
 0x240   :  { %3437 = vmatpush3.bf16.msra.mxu1 %v3951_v16 }
 0x241   :  { %3438 = vmatprep.subr.bf16.mxu1 %v3954_v34 }
 0x244   :  { %3439 = vmatpush3.bf16.msra.mxu1 %v3955_v26 }
 0x245   :  { %3440 = vmatprep.subr.bf16.mxu1 %v3958_v35  ;;  %v4007_v35 = vld [vmem:[#allocation8 + $0x200] sm:$0xff]  }
 0x248   :  { %3441 = vmatpush3.bf16.msra.mxu1 %v3959_v36  ;;  %v4008_v36 = vld [vmem:[#allocation8 + $0x248] sm:$0xff]  }
 0x249   :  { %3442 = vmatprep.subr.bf16.mxu1 %v3962_v37  ;;  %v4009_v37 = vld [vmem:[#allocation8 + $0x208] sm:$0xff]  }
 0x24c   :  { %3443 = vmatpush3.bf16.msra.mxu1 %v3963_v39  ;;  %v4010_v39 = vld [vmem:[#allocation8 + $0x250] sm:$0xff]  }
 0x24d   :  { %3444 = vmatprep.subr.bf16.mxu1 %v3966_v50 }
 0x250   :  { %3445 = vmatpush3.bf16.msra.mxu1 %v3967_v40 }
 0x251   :  { %3446 = vmatprep.subr.bf16.mxu1 %v3970_v41 }
 0x254   :  { %3447 = vmatpush3.bf16.msra.mxu1 %v3971_v42 }
 0x255   :  { %3476 = vmatprep.subr.bf16.mxu1 %v3974_v43  ;;  %v4011_v43 = vld [vmem:[#allocation8 + $0x210] sm:$0xff]  }
 0x26a   :  { %v2068_v44 = vpop.f32.mrb[16].mxu1 }
 0x26b   :  { %v2239_v31 = vmul.f32 0.25, %v2068_v44  ;;  %v2070_v47 = vpop.f32.mrb[17].mxu1 }
 0x26c   :  { %v2240_v48 = vmul.f32 0.25, %v2070_v47  ;;  %v2072_v49 = vpop.f32.mrb[18].mxu1  ;;  %v4012_v47 = vld [vmem:[#allocation8 + $0x258] sm:$0xff]  }
 0x26d   :  { %v2249_v63 = vpack.c.bf16 %v2239_v31, %v2239_v31  ;;  %v2073_v46 = vpop.f32.mrb[19].mxu1 }
 0x26e   :  { %v2250_v45 = vpack.c.bf16 %v2240_v48, %v2240_v48  ;;  %v4014_v46 = vld [vmem:[#allocation8 + $0x260] sm:$0xff]  }
 0x270   :  { %2938 = vmatprep.mubr.bf16.mxu1 %v2250_v45  ;;  %v4015_v45 = vld [vmem:[#allocation8 + $0x220] sm:$0xff]  }
 0x271   :  { %2939 = vmatmul.mubr.bf16.vlgmr.msra.gmra.mrb[36].mxu1 %v2249_v63  ;;  %v4013_v63 = vld [vmem:[#allocation8 + $0x218] sm:$0xff]  }
 0x272   :  { %3477 = vmatpush3.bf16.msra.mxu1 %v3975_v1  ;;  %v2109_v53 = vpop.f32.mrb[20].mxu1  ;;  %v4016_v1 = vld [vmem:[#allocation8 + $0x268] sm:$0xff]  }
 0x273   :  { %3478 = vmatprep.subr.bf16.mxu1 %v3978_v51  ;;  %v2241_v9 = vmul.f32 0.25, %v2109_v53  ;;  %v2111_v38 = vpop.f32.mrb[21].mxu1  ;;  %v4017_v51 = vld [vmem:[#allocation8 + $0x228] sm:$0xff]   ;;  %v4020_v53 = vld [vmem:[#allocation8 + $0x278] sm:$0xff]  }
 0x274   :  { %v2242_v54 = vmul.f32 0.25, %v2111_v38  ;;  %v2113_v56 = vpop.f32.mrb[22].mxu1 }
 0x275   :  { %v2251_v57 = vpack.c.bf16 %v2241_v9, %v2241_v9  ;;  %v2114_v58 = vpop.f32.mrb[23].mxu1  ;;  %v4021_v9 = vld [vmem:[#allocation8 + $0x238] sm:$0xff]  }
 0x276   :  { %3479 = vmatpush3.bf16.msra.mxu1 %v3979_v15  ;;  %v2252_v30 = vpack.c.bf16 %v2242_v54, %v2242_v54  ;;  %v4018_v15 = vld [vmem:[#allocation8 + $0x270] sm:$0xff]  }
 0x277   :  { %3480 = vmatprep.subr.bf16.mxu1 %v3982_v52  ;;  %v4019_v52 = vld [vmem:[#allocation8 + $0x230] sm:$0xff]  }
 0x278   :  { %2978 = vmatprep.mubr.bf16.mxu0 %v2252_v30 }
 0x279   :  { %2979 = vmatmul.mubr.bf16.vlgmr.msra.gmra.mrb[24].mxu0 %v2251_v57 }
 0x27a   :  { %3481 = vmatpush3.bf16.msra.mxu1 %v3983_v55  ;;  %3499 = vmatpush3.bf16.msra.mxu0 %v3977_v59 }
 0x27b   :  { %3482 = vmatprep.subr.bf16.mxu1 %v3986_v17  ;;  %3500 = vmatprep.subr.bf16.mxu0 %v3980_v60 }
 0x27e   :  { %3483 = vmatpush3.bf16.msra.mxu1 %v3987_v29  ;;  %3501 = vmatpush3.bf16.msra.mxu0 %v3981_v61 }
 0x27f   :  { %3484 = vmatprep.subr.bf16.mxu1 %v3990_v32  ;;  %3502 = vmatprep.subr.bf16.mxu0 %v3984_v62  ;;  %v3351_v62 = vld [vmem:[%s4425_s5] ss:$0 sm:$0xff]  ;;  %s4198_s5 = smov [#allocation10]  }
 0x280   :  { %s3119_s28 = sshll.u32 %s4198_s5, 4  ;;  %s3120_s28 = int_to_ptr.vmem [resolvable:$true] %s3119_s28 }
 0x281   :  { %s4157_s29 = scalar_lea.vmem %s3120_s28, 128  ;;  %p4162_p5 = scmp.lt.s32.totalorder %s3120_s28, %s3120_s28 }
 0x282   :  { %3485 = vmatpush3.bf16.msra.mxu1 %v3991_v0  ;;  %3503 = vmatpush3.bf16.msra.mxu0 %v3985_v3  ;;  %p4158_p4 = scmp.ne.s32.totalorder %s3120_s28, %s4157_s29  ;;  %p4163_p6 = scmp.lt.s32.totalorder %s4157_s29, %s4157_s29 }
 0x283   :  { %3486 = vmatprep.subr.bf16.mxu1 %v3994_v2  ;;  %3504 = vmatprep.subr.bf16.mxu0 %v3988_v4 }
 0x284   :  { %p4164_p7 = por %p4163_p6, %p4162_p5 }
 0x286   :  { %3487 = vmatpush3.bf16.msra.mxu1 %v3995_v5  ;;  %3505 = vmatpush3.bf16.msra.mxu0 %v3989_v7  ;;  %p4165_p8 = pnand %p4164_p7, %p4158_p4 }
 0x287   :  { %3488 = vmatprep.subr.bf16.mxu1 %v3998_v6  ;;  %3506 = vmatprep.subr.bf16.mxu0 %v3992_v8 }
 0x28a   :  { %3489 = vmatpush3.bf16.msra.mxu1 %v3999_v10  ;;  %3507 = vmatpush3.bf16.msra.mxu0 %v3993_v12 }
 0x28b   :  { %3490 = vmatprep.subr.bf16.mxu1 %v4002_v11  ;;  %3508 = vmatprep.subr.bf16.mxu0 %v3996_v13 }
 0x28e   :  { %3491 = vmatpush3.bf16.msra.mxu1 %v4003_v14  ;;  %3509 = vmatpush3.bf16.msra.mxu0 %v3997_v19 }
 0x28f   :  { %3520 = vmatprep.subr.bf16.mxu1 %v4006_v18  ;;  %3510 = vmatprep.subr.bf16.mxu0 %v4000_v21 }
 0x292   :  { %3511 = vmatpush3.bf16.msra.mxu0 %v4001_v22 }
 0x293   :  { %3512 = vmatprep.subr.bf16.mxu0 %v4004_v23 }
 0x296   :  { %3513 = vmatpush3.bf16.msra.mxu0 %v4005_v24 }
 0x2ba   :  { %v2150_v25 = vpop.f32.mrb[24].mxu1 }
 0x2bb   :  { %v2243_v27 = vmul.f32 0.25, %v2150_v25  ;;  %v2152_v28 = vpop.f32.mrb[25].mxu1 }
 0x2bc   :  { %v2244_v20 = vmul.f32 0.25, %v2152_v28  ;;  %v2154_v33 = vpop.f32.mrb[26].mxu1 }
 0x2bd   :  { %v2253_v16 = vpack.c.bf16 %v2243_v27, %v2243_v27  ;;  %v2155_v34 = vpop.f32.mrb[27].mxu1 }
 0x2be   :  { %v2254_v26 = vpack.c.bf16 %v2244_v20, %v2244_v20 }
 0x2c0   :  { %3018 = vmatprep.mubr.bf16.mxu1 %v2254_v26 }
 0x2c1   :  { %3019 = vmatmul.mubr.bf16.vlgmr.msra.gmra.mrb[40].mxu1 %v2253_v16 }
 0x2c2   :  { %3521 = vmatpush3.bf16.msra.mxu1 %v4007_v35  ;;  %v2191_v50 = vpop.f32.mrb[28].mxu1 }
 0x2c3   :  { %3522 = vmatprep.subr.bf16.mxu1 %v4008_v36  ;;  %v2245_v40 = vmul.f32 0.25, %v2191_v50  ;;  %v2193_v41 = vpop.f32.mrb[29].mxu1 }
 0x2c4   :  { %v2246_v42 = vmul.f32 0.25, %v2193_v41  ;;  %v2195_v44 = vpop.f32.mrb[30].mxu1 }
 0x2c5   :  { %v2255_v31 = vpack.c.bf16 %v2245_v40, %v2245_v40  ;;  %v2196_v48 = vpop.f32.mrb[31].mxu1 }
 0x2c6   :  { %3523 = vmatpush3.bf16.msra.mxu1 %v4009_v37  ;;  %v2256_v49 = vpack.c.bf16 %v2246_v42, %v2246_v42 }
 0x2c7   :  { %3524 = vmatprep.subr.bf16.mxu1 %v4010_v39 }
 0x2c8   :  { %3058 = vmatprep.mubr.bf16.mxu0 %v2256_v49 }
 0x2c9   :  { %3059 = vmatmul.mubr.bf16.vlgmr.msra.gmra.mrb[28].mxu0 %v2255_v31 }
 0x2ca   :  { %3525 = vmatpush3.bf16.msra.mxu1 %v4011_v43 }
 0x2cb   :  { %3526 = vmatprep.subr.bf16.mxu1 %v4012_v47 }
 0x2ce   :  { %3527 = vmatpush3.bf16.msra.mxu1 %v4013_v63 }
 0x2cf   :  { %3528 = vmatprep.subr.bf16.mxu1 %v4014_v46 }
 0x2d2   :  { %3529 = vmatpush3.bf16.msra.mxu1 %v4015_v45 }
 0x2d3   :  { %3530 = vmatprep.subr.bf16.mxu1 %v4016_v1 }
 0x2d6   :  { %3531 = vmatpush3.bf16.msra.mxu1 %v4017_v51 }
 0x2d7   :  { %3532 = vmatprep.subr.bf16.mxu1 %v4018_v15 }
 0x2da   :  { %3533 = vmatpush3.bf16.msra.mxu1 %v4019_v52 }
 0x2db   :  { %3534 = vmatprep.subr.bf16.mxu1 %v4020_v53 }
 0x2de   :  { %3535 = vmatpush3.bf16.msra.mxu1 %v4021_v9 }
 0x30a   :  { %v2232_v38 = vpop.f32.mrb[32].mxu1 }
 0x30b   :  { %v2247_v54 = vmul.f32 0.25, %v2232_v38  ;;  %v2234_v55 = vpop.f32.mrb[33].mxu1 }
 0x30c   :  { %v2248_v56 = vmul.f32 0.25, %v2234_v55  ;;  %v2236_v57 = vpop.f32.mrb[34].mxu1 }
 0x30d   :  { %v2237_v17 = vpop.f32.mrb[35].mxu1  ;;  %v2257_v30 = vpack.c.bf16 %v2247_v54, %v2247_v54 }
 0x30e   :  { %v2258_v58 = vpack.c.bf16 %v2248_v56, %v2248_v56 }
 0x310   :  { %3098 = vmatprep.mubr.bf16.mxu1 %v2258_v58 }
 0x311   :  { %3099 = vmatmul.mubr.bf16.vlgmr.msra.gmra.mrb[44].mxu1 %v2257_v30 }
 0x344   :  { %v3448_v59 = vpop.f32.mrb[36].mxu1 }
 0x345   :  { %v3449_v60 = vpop.f32.mrb[37].mxu1 }
 0x346   :  { %v3450_v29 = vadd.f32 %v3449_v60, %v3448_v59  ;;  %v3451_v32 = vpop.f32.mrb[38].mxu1 }
 0x347   :  { %v3452_v61 = vpop.f32.mrb[39].mxu1 }
 0x348   :  { %v2941_v0 = vadd.f32 %v3450_v29, %v3351_v62 }
 0x34c   :  { %v3470_v2 = vpop.f32.mrb[24].mxu0 }
 0x34d   :  { %v3471_v3 = vpop.f32.mrb[25].mxu0 }
 0x34e   :  { %v3472_v4 = vadd.f32 %v3471_v3, %v3470_v2  ;;  %v3473_v5 = vpop.f32.mrb[26].mxu0 }
 0x34f   :  { %v3474_v6 = vpop.f32.mrb[27].mxu0 }
 0x350   :  { %v2981_v7 = vadd.f32 %v3472_v4, %v2941_v0 }
 0x394   :  { %v3492_v8 = vpop.f32.mrb[40].mxu1 }
 0x395   :  { %v3493_v10 = vpop.f32.mrb[41].mxu1 }
 0x396   :  { %v3494_v11 = vadd.f32 %v3493_v10, %v3492_v8  ;;  %v3495_v12 = vpop.f32.mrb[42].mxu1 }
 0x397   :  { %v3496_v13 = vpop.f32.mrb[43].mxu1 }
 0x398   :  { %v3021_v14 = vadd.f32 %v3494_v11, %v2981_v7 }
 0x39c   :  { %v3514_v18 = vpop.f32.mrb[28].mxu0 }
 0x39d   :  { %v3515_v19 = vpop.f32.mrb[29].mxu0 }
 0x39e   :  { %v3516_v21 = vadd.f32 %v3515_v19, %v3514_v18  ;;  %v3517_v22 = vpop.f32.mrb[30].mxu0 }
 0x39f   :  { %v3518_v23 = vpop.f32.mrb[31].mxu0 }
 0x3a0   :  { %v3061_v24 = vadd.f32 %v3516_v21, %v3021_v14 }
 0x3e4   :  { %v3536_v25 = vpop.f32.mrb[44].mxu1 }
 0x3e5   :  { %v3537_v27 = vpop.f32.mrb[45].mxu1 }
 0x3e6   :  { %v3538_v28 = vadd.f32 %v3537_v27, %v3536_v25  ;;  %v3539_v20 = vpop.f32.mrb[46].mxu1 }
 0x3e7   :  { %v3540_v33 = vpop.f32.mrb[47].mxu1 }
 0x3e8   :  { %v3101_v16 = vadd.f32 %v3538_v28, %v3061_v24 }
 0x3ea   :  { %v3106_v34 = vmul.f32 %v3101_v16, %v3101_v16 }
 0x3ec   :  { %3107 = vadd.xlane.f32.xlu0 %v3106_v34 }
 0x479   :  { %v3108_v26 = vpop.xlane.xlu0 %3107 }
 0x47a   :  { %v3109_v35 = vmax.f32 %v3108_v26, 1e-24 }
 0x47c   :  { %4062 = vrsqrt.f32 %v3109_v35 }
 0x486   :  { %v4063_v36 = vpop.eup %4062 }
 0x487   :  { %v3111_v37 = vmul.f32 %v4063_v36, %v3101_v16 }
 0x489   :  { %3112 = vst [vmem:[#allocation10] sm:$0xff] %v3111_v37 }
 0x48a   :  { %4168 = shalt.err (!%p4165_p8)
}
 0x48b   :  { %s4169_s8 = scalar_lea.hbm %s4426_s6, 128 }
 0x48c   :  { %p4170_p9 = scmp.ne.s32.totalorder %s4426_s6, %s4169_s8  ;;  %p4173_p10 = scmp.lt.u32.totalorder %s4169_s8, %s4426_s6 }
 0x48e   :  { %p4175_p11 = pnand %p4173_p10, %p4170_p9 }
 0x490   :  { %4178 = shalt.err (!%p4175_p11)
}
 0x491   :  { %3122 = dma.vmem_to_hbm [thread:$0]  %s3120_s28, 128, %s4426_s6, [#allocation4]  }
 0x492   :  { %4185 = dma.done.wait [#allocation4], 128  }
 0x493   :  { %4186 = vsyncadd [#allocation4], 4294967168 }
 0x494   :  { %3126 = vsyncpa [#allocation3], 1 }
 0x495   :  { %3127 = vsyncpa [#allocation6], 1 }
 0x496   :  { %3128 = vsyncpa [#allocation9], 1 }
 0x497   :  { %3129 = vsyncpa [#allocation4], 1 }

</bundles_post_ra>
